<compile_context>
chip_gen: v6e
topology: v6e:2x2x1
jax: 0.10.0
libtpu: 0.0.40
codegen_flags: <defaults>
</compile_context>

<pallas_src>
import math

import jax
import jax.numpy as jnp
from jax.experimental import pallas as pl
from jax.experimental.pallas import tpu as pltpu


def _round_up(x, m):
    return (x + m - 1) // m * m


def _nbytes(a):
    return math.prod(a.shape) * jnp.dtype(a.dtype).itemsize


def _vmem_capacity_bytes():
    try:
        return int(pltpu.get_tpu_info().vmem_capacity_bytes)
    except Exception:
        return 64 << 20  # conservative default (v7x per-TC VMEM)


# ----------------------------------------------------------------------------
# Kernel 1: fused news encoder (title pool + title_fc + cat_fc + feature pool)
# ----------------------------------------------------------------------------
def news_encoder_kernel(x_ref, m_ref, cat_ref,
                        tp_w1_ref, tp_b1_ref, tp_v_ref,
                        tfc_w_ref, tfc_b_ref,
                        cfc_w_ref, cfc_b_ref,
                        fp_w1_ref, fp_b1_ref, fp_v_ref,
                        o_ref):
    """One tile of TB news items -> (TB, Ep) news representation.

    x_ref  : (TB, S, D)  bf16 title token features
    m_ref  : (TB, S)     f32  token mask (1 = valid)
    cat_ref: (TB, Dc)    bf16 gathered category embeddings
    tp_*   : title AdditiveAttention   (W1 (D,H) bf16, b1 (1,H) f32, v (1,H) f32)
    tfc_*  : title_fc  ((D,Ep) bf16, (1,Ep) f32)   Ep = 128-padded emb dim
    cfc_*  : cat_fc    ((Dc,Ep) bf16, (1,Ep) f32)
    fp_*   : feature_pooler AdditiveAttention ((Ep,H) bf16, (1,H) f32, (1,H) f32)
    o_ref  : (TB, Ep)    f32  lane-dense output
    """
    tb, s, d = x_ref.shape
    x_bf = x_ref[...]                                                    # (TB,S,D) bf16

    # --- title additive attention ---------------------------------------
    # hidden projection as ONE long-M 2D matmul on the MXU: (TB*S, D)@(D, H)
    h2 = jnp.dot(x_bf.reshape(tb * s, d), tp_w1_ref[...],
                 preferred_element_type=jnp.float32)                     # (TB*S, H) f32
    h = jnp.tanh(h2.reshape(tb, s, -1) + tp_b1_ref[...])                 # (TB, S, H)
    # width-1 score: VPU multiply + lane reduce (not a 1-lane MXU matmul)
    sc = jnp.sum(h * tp_v_ref[...], axis=-1)                             # (TB, S)
    sc = jnp.where(m_ref[...] > 0.0, sc, -1e30)
    sc = sc - jnp.max(sc, axis=-1, keepdims=True)                        # all-masked -> uniform, no NaN
    w = jnp.exp(sc)
    w = w / jnp.sum(w, axis=-1, keepdims=True)                           # (TB, S)
    pooled = jnp.sum(w[:, :, None] * x_bf.astype(jnp.float32), axis=1)   # (TB, D) f32

    # --- title_fc / cat_fc (bf16 weights, f32 accumulation) --------------
    title = jnp.dot(pooled.astype(jnp.bfloat16), tfc_w_ref[...],
                    preferred_element_type=jnp.float32) + tfc_b_ref[...]  # (TB, Ep)
    cat = jnp.dot(cat_ref[...], cfc_w_ref[...],
                  preferred_element_type=jnp.float32) + cfc_b_ref[...]    # (TB, Ep)

    # --- feature pooler over the 2 stacked features ------------------------
    # fuse both projections into ONE (2*TB, Ep)@(Ep, H) matmul + one tanh
    both = jnp.concatenate([title, cat], axis=0).astype(jnp.bfloat16)     # (2TB, Ep)
    hb = jnp.tanh(jnp.dot(both, fp_w1_ref[...],
                          preferred_element_type=jnp.float32) + fp_b1_ref[...])
    s_both = jnp.sum(hb * fp_v_ref[...], axis=-1, keepdims=True)          # (2TB, 1)
    st, sct = s_both[:tb], s_both[tb:]
    mx = jnp.maximum(st, sct)
    et = jnp.exp(st - mx)
    ec = jnp.exp(sct - mx)
    o_ref[...] = (et * title + ec * cat) / (et + ec)                      # (TB, Ep) f32


def news_encoder(x, tok_mask, cat_emb, prep):
    """x: (N,S,D) bf16, tok_mask: (N,S) f32, cat_emb: (N,Dc) bf16 -> (N, Ep) f32."""
    n, s_len, d = x.shape
    dc = cat_emb.shape[1]
    h_dim = prep["tp_w1"].shape[1]
    e_pad = prep["tfc_w"].shape[1]

    weight_keys = ("tp_w1", "tp_b1", "tp_v", "tfc_w", "tfc_b",
                   "cfc_w", "cfc_b", "fp_w1", "fp_b1", "fp_v")
    weight_bytes = sum(_nbytes(prep[k]) for k in weight_keys)
    # per-item block bytes: bf16 tokens + f32 mask + bf16 cat + f32 output
    per_item = s_len * d * 2 + s_len * 4 + dc * 2 + e_pad * 4

    # item tile from a VMEM budget (double-buffered input/output blocks),
    # multiple of 8 sublanes; no forced multi-step split.
    vmem_cap = _vmem_capacity_bytes()
    budget = max(vmem_cap // 2 - 2 * weight_bytes, 1 << 20)
    tb = max(8, min((budget // (2 * per_item)) // 8 * 8, 1024))
    tb = min(tb, _round_up(n, 8))
    n_pad = _round_up(n, tb)
    pad = n_pad - n
    if pad:
        x = jnp.pad(x, ((0, pad), (0, 0), (0, 0)))
        tok_mask = jnp.pad(tok_mask, ((0, pad), (0, 0)), constant_values=1.0)
        cat_emb = jnp.pad(cat_emb, ((0, pad), (0, 0)))

    vmem_limit = int(min(vmem_cap,
                         max(32 << 20, 2 * tb * per_item + 2 * weight_bytes + (4 << 20))))

    def wspec(r, c):
        # constant index_map: fetched once, never re-fetched across grid steps.
        # TODO(synk): on v7x, single-buffer these (pipeline_mode=pl.Buffered(1))
        # to free VMEM headroom for a larger TB.
        return pl.BlockSpec((r, c), lambda i: (0, 0))

    out = pl.pallas_call(
        news_encoder_kernel,
        out_shape=jax.ShapeDtypeStruct((n_pad, e_pad), jnp.float32),
        grid=(n_pad // tb,),
        in_specs=[
            pl.BlockSpec((tb, s_len, d), lambda i: (i, 0, 0)),
            pl.BlockSpec((tb, s_len), lambda i: (i, 0)),
            pl.BlockSpec((tb, dc), lambda i: (i, 0)),
            wspec(d, h_dim), wspec(1, h_dim), wspec(1, h_dim),       # title pooler
            wspec(d, e_pad), wspec(1, e_pad),                        # title_fc
            wspec(dc, e_pad), wspec(1, e_pad),                       # cat_fc
            wspec(e_pad, h_dim), wspec(1, h_dim), wspec(1, h_dim),   # feature pooler
        ],
        out_specs=pl.BlockSpec((tb, e_pad), lambda i: (i, 0)),
        compiler_params=pltpu.CompilerParams(
            dimension_semantics=("parallel",),
            vmem_limit_bytes=vmem_limit),
    )(x, tok_mask, cat_emb,
      prep["tp_w1"], prep["tp_b1"], prep["tp_v"],
      prep["tfc_w"], prep["tfc_b"], prep["cfc_w"], prep["cfc_b"],
      prep["fp_w1"], prep["fp_b1"], prep["fp_v"])
    return out[:n]


# ----------------------------------------------------------------------------
# Kernel 2: fused user encoder (masked additive attention) + dot-product score
# ----------------------------------------------------------------------------
def user_score_kernel(hist_ref, m_ref, cand_ref,
                      ue_w1_ref, ue_b1_ref, ue_v_ref, o_ref):
    """hist_ref: (TBB,NH,Ep) bf16, m_ref: (TBB,NH) f32, cand_ref: (TBB,NCp,Ep) bf16
    -> o_ref (TBB, NCp) f32 (lane-dense, candidate axis padded to 128)."""
    tbb, nh, ep = hist_ref.shape
    hist_bf = hist_ref[...]
    # user AdditiveAttention hidden proj: ONE (TBB*NH, Ep)@(Ep, H) 2D matmul
    h2 = jnp.dot(hist_bf.reshape(tbb * nh, ep), ue_w1_ref[...],
                 preferred_element_type=jnp.float32)                     # (TBB*NH, H)
    h = jnp.tanh(h2.reshape(tbb, nh, -1) + ue_b1_ref[...])               # (TBB, NH, H)
    sc = jnp.sum(h * ue_v_ref[...], axis=-1)                             # (TBB, NH)
    sc = jnp.where(m_ref[...] > 0.0, sc, -1e30)
    sc = sc - jnp.max(sc, axis=-1, keepdims=True)
    w = jnp.exp(sc)
    w = w / jnp.sum(w, axis=-1, keepdims=True)
    urep = jnp.sum(w[:, :, None] * hist_bf.astype(jnp.float32), axis=1)  # (TBB, Ep)
    # rec_model: dot-product scoring (VPU multiply + lane reduce; padded lanes are 0)
    cand = cand_ref[...].astype(jnp.float32)                             # (TBB, NCp, Ep)
    o_ref[...] = jnp.sum(urep[:, None, :] * cand, axis=-1)               # (TBB, NCp)


def user_score(hist_rep, hist_mask, cand_rep, prep):
    """hist_rep: (B,NH,Ep) bf16, hist_mask: (B,NH) f32, cand_rep: (B,NC,Ep) bf16
    -> (B, NC) f32 scores."""
    b, nh, e_pad = hist_rep.shape
    nc = cand_rep.shape[1]
    h_dim = prep["ue_w1"].shape[1]
    nc_pad = _round_up(nc, 128)           # lane-dense score store, sliced below
    tbb = min(_round_up(b, 8), 64)        # batch tile (multiple of 8 sublanes)
    b_pad = _round_up(b, tbb)
    pb = b_pad - b
    if pb or nc_pad != nc:
        hist_rep = jnp.pad(hist_rep, ((0, pb), (0, 0), (0, 0)))
        hist_mask = jnp.pad(hist_mask, ((0, pb), (0, 0)))
        cand_rep = jnp.pad(cand_rep, ((0, pb), (0, nc_pad - nc), (0, 0)))

    out = pl.pallas_call(
        user_score_kernel,
        out_shape=jax.ShapeDtypeStruct((b_pad, nc_pad), jnp.float32),
        grid=(b_pad // tbb,),
        in_specs=[
            pl.BlockSpec((tbb, nh, e_pad), lambda i: (i, 0, 0)),
            pl.BlockSpec((tbb, nh), lambda i: (i, 0)),
            pl.BlockSpec((tbb, nc_pad, e_pad), lambda i: (i, 0, 0)),
            pl.BlockSpec((e_pad, h_dim), lambda i: (0, 0)),
            pl.BlockSpec((1, h_dim), lambda i: (0, 0)),
            pl.BlockSpec((1, h_dim), lambda i: (0, 0)),
        ],
        out_specs=pl.BlockSpec((tbb, nc_pad), lambda i: (i, 0)),
        compiler_params=pltpu.CompilerParams(dimension_semantics=("parallel",)),
    )(hist_rep, hist_mask, cand_rep, prep["ue_w1"], prep["ue_b1"], prep["ue_v"])
    return out[:b, :nc]


# ----------------------------------------------------------------------------
# Parameters (deterministic synthetic init — shapes per SmallNAML.__init__)
# ----------------------------------------------------------------------------
def init_params(key, d_backbone, title_emb_dim, total_emb_dim, cat_emb_dim,
                n_categories, hidden=256):
    ks = jax.random.split(key, 16)
    f = lambda k, shape: (jax.random.normal(k, shape, jnp.float32) * 0.05)
    return {
        # title_pooler: AdditiveAttention(in=d_backbone, hidden=256)
        "tp_w1": f(ks[0], (d_backbone, hidden)),
        "tp_b1": f(ks[1], (1, hidden)),
        "tp_v": f(ks[2], (hidden, 1)),
        "tp_bv": f(ks[3], (1, 1)),        # cancels under softmax; unused by kernels
        # title_encoder output projection: Linear(d_backbone -> title_emb_dim)
        "title_fc_w": f(ks[4], (d_backbone, title_emb_dim)),
        "title_fc_b": f(ks[5], (title_emb_dim,)),
        # cat_embedder: Embedding(n_categories + 1, cat_emb_dim)
        "cat_table": f(ks[6], (n_categories + 1, cat_emb_dim)),
        # cat_fc: Linear(cat_emb_dim -> total_emb_dim)
        "cat_fc_w": f(ks[7], (cat_emb_dim, total_emb_dim)),
        "cat_fc_b": f(ks[8], (total_emb_dim,)),
        # feature_pooler: AdditiveAttention(in=total_emb_dim, hidden=256)
        "fp_w1": f(ks[9], (total_emb_dim, hidden)),
        "fp_b1": f(ks[10], (1, hidden)),
        "fp_v": f(ks[11], (hidden, 1)),
        "fp_bv": f(ks[12], (1, 1)),       # cancels under softmax; unused by kernels
        # user_encoder: AdditiveAttention(in=title_emb_dim, hidden=256)
        "ue_w1": f(ks[13], (title_emb_dim, hidden)),
        "ue_b1": f(ks[14], (1, hidden)),
        "ue_v": f(ks[15], (hidden, 1)),
        "ue_bv": jnp.zeros((1, 1), jnp.float32),  # cancels under softmax; unused
    }


def prepare_params(params):
    """One-time weight prep, hoisted OUT of the jitted forward:
    pad the emb axis to 128 lanes (numerically exact: padded rows/cols are 0),
    cast matmul weights to bf16, reshape v-vectors to (1, H) rows."""
    emb = params["title_fc_w"].shape[1]
    e_pad = _round_up(emb, 128)
    pe = e_pad - emb
    bf = jnp.bfloat16
    f32 = jnp.float32
    return {
        # title pooler; tp_bv dropped (constant across softmax axis cancels)
        "tp_w1": params["tp_w1"].astype(bf),
        "tp_b1": params["tp_b1"].astype(f32),
        "tp_v": params["tp_v"].reshape(1, -1).astype(f32),
        # title_fc / cat_fc, output columns zero-padded to Ep
        "tfc_w": jnp.pad(params["title_fc_w"], ((0, 0), (0, pe))).astype(bf),
        "tfc_b": jnp.pad(params["title_fc_b"], (0, pe)).reshape(1, e_pad).astype(f32),
        "cfc_w": jnp.pad(params["cat_fc_w"], ((0, 0), (0, pe))).astype(bf),
        "cfc_b": jnp.pad(params["cat_fc_b"], (0, pe)).reshape(1, e_pad).astype(f32),
        # feature pooler / user encoder: input rows zero-padded to Ep
        "fp_w1": jnp.pad(params["fp_w1"], ((0, pe), (0, 0))).astype(bf),
        "fp_b1": params["fp_b1"].astype(f32),
        "fp_v": params["fp_v"].reshape(1, -1).astype(f32),
        "ue_w1": jnp.pad(params["ue_w1"], ((0, pe), (0, 0))).astype(bf),
        "ue_b1": params["ue_b1"].astype(f32),
        "ue_v": params["ue_v"].reshape(1, -1).astype(f32),
        # category embedding table (gathered in JAX glue)
        "cat_table": params["cat_table"].astype(bf),
    }


# ----------------------------------------------------------------------------
# Forward pass (glue in JAX, hot paths in the two fused Pallas kernels)
# ----------------------------------------------------------------------------
@jax.jit
def small_naml_forward(prep, hist_title, hist_tok_mask, hist_ctg,
                       cand_title, cand_tok_mask, cand_ctg):
    b, nh, s, d = hist_title.shape
    nc = cand_title.shape[1]
    e_pad = prep["tfc_w"].shape[1]

    # merge history + candidate items into ONE batched news-encoder call
    x_all = jnp.concatenate([hist_title.reshape(b * nh, s, d),
                             cand_title.reshape(b * nc, s, d)],
                            axis=0).astype(jnp.bfloat16)
    m_all = jnp.concatenate([hist_tok_mask.reshape(b * nh, s),
                             cand_tok_mask.reshape(b * nc, s)],
                            axis=0).astype(jnp.float32)
    cat_idx = jnp.concatenate([hist_ctg.reshape(-1), cand_ctg.reshape(-1)], axis=0)
    cat_all = prep["cat_table"][cat_idx]          # (N, Dc) bf16 embedding gather (glue)

    news = news_encoder(x_all, m_all, cat_all, prep)              # (N, Ep) f32

    hist_rep = news[:b * nh].reshape(b, nh, e_pad).astype(jnp.bfloat16)
    cand_rep = news[b * nh:].reshape(b, nc, e_pad).astype(jnp.bfloat16)
    # item-level mask: an item is valid iff it has at least one valid token
    hist_mask = (jnp.sum(hist_tok_mask, axis=-1) > 0).astype(jnp.float32)

    # user encoder + dot-product scoring (fused, batch-gridded kernel)
    return user_score(hist_rep, hist_mask, cand_rep, prep)        # (b, nc) f32


# ----------------------------------------------------------------------------
if __name__ == "__main__":
    # small config consistent with the module
    b, nh, nc, s = 2, 4, 3, 8
    d_backbone = 32
    title_emb_dim = total_emb_dim = 16           # must match for torch.stack(dim=2)
    cat_emb_dim = 8
    n_categories = 10

    key = jax.random.PRNGKey(0)
    kp, k1, k2, k3, k4, k5, k6 = jax.random.split(key, 7)

    params = init_params(kp, d_backbone, title_emb_dim, total_emb_dim,
                         cat_emb_dim, n_categories)
    prep = prepare_params(params)                # one-time weight prep (outside jit)

    hist_title = jax.random.normal(k1, (b, nh, s, d_backbone), jnp.float32)
    cand_title = jax.random.normal(k2, (b, nc, s, d_backbone), jnp.float32)
    # token masks: guarantee at least the first token is valid
    hist_tok_mask = (jax.random.uniform(k3, (b, nh, s)) > 0.3).astype(jnp.float32)
    hist_tok_mask = hist_tok_mask.at[..., 0].set(1.0)
    cand_tok_mask = (jax.random.uniform(k4, (b, nc, s)) > 0.3).astype(jnp.float32)
    cand_tok_mask = cand_tok_mask.at[..., 0].set(1.0)
    hist_ctg = jax.random.randint(k5, (b, nh), 0, n_categories + 1, jnp.int32)
    cand_ctg = jax.random.randint(k6, (b, nc), 0, n_categories + 1, jnp.int32)

    score = small_naml_forward(prep, hist_title, hist_tok_mask, hist_ctg,
                               cand_title, cand_tok_mask, cand_ctg)
    score = jax.block_until_ready(score)
    assert score.shape == (b, nc) and score.dtype == jnp.float32
    assert bool(jnp.all(jnp.isfinite(score)))
    print("KERNEL_OK")
</pallas_src>

<mosaic_0001>
module attributes {stable_mosaic.version = 11 : i64} {
  func.func @news_encoder_kernel(%arg0: i32, %arg1: memref<16x8x32xbf16, #tpu.memory_space<vmem>>, %arg2: memref<16x8xf32, #tpu.memory_space<vmem>>, %arg3: memref<16x8xbf16, #tpu.memory_space<vmem>>, %arg4: memref<32x256xbf16, #tpu.memory_space<vmem>>, %arg5: memref<1x256xf32, #tpu.memory_space<vmem>>, %arg6: memref<1x256xf32, #tpu.memory_space<vmem>>, %arg7: memref<32x128xbf16, #tpu.memory_space<vmem>>, %arg8: memref<1x128xf32, #tpu.memory_space<vmem>>, %arg9: memref<8x128xbf16, #tpu.memory_space<vmem>>, %arg10: memref<1x128xf32, #tpu.memory_space<vmem>>, %arg11: memref<128x256xbf16, #tpu.memory_space<vmem>>, %arg12: memref<1x256xf32, #tpu.memory_space<vmem>>, %arg13: memref<1x256xf32, #tpu.memory_space<vmem>>, %arg14: memref<16x128xf32, #tpu.memory_space<vmem>>) attributes {dimension_semantics = [#tpu.dimension_semantics<parallel>], iteration_bounds = array<i64: 1>, scalar_prefetch = 0 : i64, scratch_operands = 0 : i64, tpu.core_type = #tpu.core_type<tc>, window_params = [{transform_indices = @transform_0, window_bounds = array<i64: 16, 8, 32>}, {transform_indices = @transform_1, window_bounds = array<i64: 16, 8>}, {transform_indices = @transform_2, window_bounds = array<i64: 16, 8>}, {pipeline_mode = #tpu.pipeline_mode<synchronous>, transform_indices = @transform_3, window_bounds = array<i64: 32, 256>}, {pipeline_mode = #tpu.pipeline_mode<synchronous>, transform_indices = @transform_4, window_bounds = array<i64: 1, 256>}, {pipeline_mode = #tpu.pipeline_mode<synchronous>, transform_indices = @transform_5, window_bounds = array<i64: 1, 256>}, {pipeline_mode = #tpu.pipeline_mode<synchronous>, transform_indices = @transform_6, window_bounds = array<i64: 32, 128>}, {pipeline_mode = #tpu.pipeline_mode<synchronous>, transform_indices = @transform_7, window_bounds = array<i64: 1, 128>}, {pipeline_mode = #tpu.pipeline_mode<synchronous>, transform_indices = @transform_8, window_bounds = array<i64: 8, 128>}, {pipeline_mode = #tpu.pipeline_mode<synchronous>, transform_indices = @transform_9, window_bounds = array<i64: 1, 128>}, {pipeline_mode = #tpu.pipeline_mode<synchronous>, transform_indices = @transform_10, window_bounds = array<i64: 128, 256>}, {pipeline_mode = #tpu.pipeline_mode<synchronous>, transform_indices = @transform_11, window_bounds = array<i64: 1, 256>}, {pipeline_mode = #tpu.pipeline_mode<synchronous>, transform_indices = @transform_12, window_bounds = array<i64: 1, 256>}, {transform_indices = @transform_13, window_bounds = array<i64: 16, 128>}]} {
    %c0 = arith.constant 0 : index
    %c0_0 = arith.constant 0 : index
    %c0_1 = arith.constant 0 : index
    %0 = vector.load %arg1[%c0, %c0_0, %c0_1] : memref<16x8x32xbf16, #tpu.memory_space<vmem>>, vector<16x8x32xbf16>
    %1 = vector.shape_cast %0 : vector<16x8x32xbf16> to vector<128x32xbf16>
    %c0_2 = arith.constant 0 : index
    %c0_3 = arith.constant 0 : index
    %2 = vector.load %arg4[%c0_2, %c0_3] : memref<32x256xbf16, #tpu.memory_space<vmem>>, vector<32x256xbf16>
    %cst = arith.constant dense<0.000000e+00> : vector<128x256xf32>
    %3 = tpu.matmul %1, %2, %cst {dimension_numbers = #tpu.dot_dimension_numbers<[1], [0], [0], [1], [0, 0, 1, 1], [], []>} : vector<128x32xbf16>, vector<32x256xbf16>, vector<128x256xf32> -> vector<128x256xf32>
    %4 = vector.shape_cast %3 : vector<128x256xf32> to vector<16x8x256xf32>
    %c0_4 = arith.constant 0 : index
    %c0_5 = arith.constant 0 : index
    %5 = vector.load %arg5[%c0_4, %c0_5] : memref<1x256xf32, #tpu.memory_space<vmem>>, vector<1x256xf32>
    %6 = vector.shape_cast %5 : vector<1x256xf32> to vector<1x1x256xf32>
    %7 = vector.broadcast %6 : vector<1x1x256xf32> to vector<16x8x256xf32>
    %8 = arith.addf %4, %7 : vector<16x8x256xf32>
    %9 = math.tanh %8 : vector<16x8x256xf32>
    %c0_6 = arith.constant 0 : index
    %c0_7 = arith.constant 0 : index
    %10 = vector.load %arg6[%c0_6, %c0_7] : memref<1x256xf32, #tpu.memory_space<vmem>>, vector<1x256xf32>
    %11 = vector.shape_cast %10 : vector<1x256xf32> to vector<1x1x256xf32>
    %12 = vector.broadcast %11 : vector<1x1x256xf32> to vector<16x8x256xf32>
    %13 = arith.mulf %9, %12 : vector<16x8x256xf32>
    %cst_8 = arith.constant dense<0.000000e+00> : vector<16x8xf32>
    %14 = vector.multi_reduction <add>, %13, %cst_8 [2] : vector<16x8x256xf32> to vector<16x8xf32>
    %c0_9 = arith.constant 0 : index
    %c0_10 = arith.constant 0 : index
    %15 = vector.load %arg2[%c0_9, %c0_10] : memref<16x8xf32, #tpu.memory_space<vmem>>, vector<16x8xf32>
    %cst_11 = arith.constant 0.000000e+00 : f32
    %16 = vector.broadcast %cst_11 : f32 to vector<16x8xf32>
    %17 = arith.cmpf ogt, %15, %16 : vector<16x8xf32>
    %cst_12 = arith.constant -1.000000e+30 : f32
    %18 = vector.broadcast %cst_12 : f32 to vector<16x8xf32>
    %19 = arith.select %17, %14, %18 : vector<16x8xi1>, vector<16x8xf32>
    %cst_13 = arith.constant dense<0xFF800000> : vector<16xf32>
    %20 = vector.multi_reduction <maximumf>, %19, %cst_13 [1] : vector<16x8xf32> to vector<16xf32>
    %21 = vector.shape_cast %20 : vector<16xf32> to vector<16x1xf32>
    %22 = vector.broadcast %21 : vector<16x1xf32> to vector<16x8xf32>
    %23 = arith.subf %19, %22 : vector<16x8xf32>
    %24 = math.exp %23 : vector<16x8xf32>
    %cst_14 = arith.constant dense<0.000000e+00> : vector<16xf32>
    %25 = vector.multi_reduction <add>, %24, %cst_14 [1] : vector<16x8xf32> to vector<16xf32>
    %26 = vector.shape_cast %25 : vector<16xf32> to vector<16x1xf32>
    %27 = vector.broadcast %26 : vector<16x1xf32> to vector<16x8xf32>
    %28 = arith.divf %24, %27 : vector<16x8xf32>
    %29 = vector.shape_cast %28 : vector<16x8xf32> to vector<16x8x1xf32>
    %30 = arith.extf %0 : vector<16x8x32xbf16> to vector<16x8x32xf32>
    %31 = vector.broadcast %29 : vector<16x8x1xf32> to vector<16x8x32xf32>
    %32 = arith.mulf %31, %30 : vector<16x8x32xf32>
    %cst_15 = arith.constant dense<0.000000e+00> : vector<16x32xf32>
    %33 = vector.multi_reduction <add>, %32, %cst_15 [1] : vector<16x8x32xf32> to vector<16x32xf32>
    %34 = arith.truncf %33 : vector<16x32xf32> to vector<16x32xbf16>
    %c0_16 = arith.constant 0 : index
    %c0_17 = arith.constant 0 : index
    %35 = vector.load %arg7[%c0_16, %c0_17] : memref<32x128xbf16, #tpu.memory_space<vmem>>, vector<32x128xbf16>
    %cst_18 = arith.constant dense<0.000000e+00> : vector<16x128xf32>
    %36 = tpu.matmul %34, %35, %cst_18 {dimension_numbers = #tpu.dot_dimension_numbers<[1], [0], [0], [1], [0, 0, 1, 1], [], []>} : vector<16x32xbf16>, vector<32x128xbf16>, vector<16x128xf32> -> vector<16x128xf32>
    %c0_19 = arith.constant 0 : index
    %c0_20 = arith.constant 0 : index
    %37 = vector.load %arg8[%c0_19, %c0_20] : memref<1x128xf32, #tpu.memory_space<vmem>>, vector<1x128xf32>
    %38 = vector.broadcast %37 : vector<1x128xf32> to vector<16x128xf32>
    %39 = arith.addf %36, %38 : vector<16x128xf32>
    %c0_21 = arith.constant 0 : index
    %c0_22 = arith.constant 0 : index
    %40 = vector.load %arg3[%c0_21, %c0_22] : memref<16x8xbf16, #tpu.memory_space<vmem>>, vector<16x8xbf16>
    %c0_23 = arith.constant 0 : index
    %c0_24 = arith.constant 0 : index
    %41 = vector.load %arg9[%c0_23, %c0_24] : memref<8x128xbf16, #tpu.memory_space<vmem>>, vector<8x128xbf16>
    %cst_25 = arith.constant dense<0.000000e+00> : vector<16x128xf32>
    %42 = tpu.matmul %40, %41, %cst_25 {dimension_numbers = #tpu.dot_dimension_numbers<[1], [0], [0], [1], [0, 0, 1, 1], [], []>} : vector<16x8xbf16>, vector<8x128xbf16>, vector<16x128xf32> -> vector<16x128xf32>
    %c0_26 = arith.constant 0 : index
    %c0_27 = arith.constant 0 : index
    %43 = vector.load %arg10[%c0_26, %c0_27] : memref<1x128xf32, #tpu.memory_space<vmem>>, vector<1x128xf32>
    %44 = vector.broadcast %43 : vector<1x128xf32> to vector<16x128xf32>
    %45 = arith.addf %42, %44 : vector<16x128xf32>
    %46 = tpu.concatenate %39, %45 in 0 : vector<16x128xf32>, vector<16x128xf32> -> vector<32x128xf32>
    %47 = arith.truncf %46 : vector<32x128xf32> to vector<32x128xbf16>
    %c0_28 = arith.constant 0 : index
    %c0_29 = arith.constant 0 : index
    %48 = vector.load %arg11[%c0_28, %c0_29] : memref<128x256xbf16, #tpu.memory_space<vmem>>, vector<128x256xbf16>
    %cst_30 = arith.constant dense<0.000000e+00> : vector<32x256xf32>
    %49 = tpu.matmul %47, %48, %cst_30 {dimension_numbers = #tpu.dot_dimension_numbers<[1], [0], [0], [1], [0, 0, 1, 1], [], []>} : vector<32x128xbf16>, vector<128x256xbf16>, vector<32x256xf32> -> vector<32x256xf32>
    %c0_31 = arith.constant 0 : index
    %c0_32 = arith.constant 0 : index
    %50 = vector.load %arg12[%c0_31, %c0_32] : memref<1x256xf32, #tpu.memory_space<vmem>>, vector<1x256xf32>
    %51 = vector.broadcast %50 : vector<1x256xf32> to vector<32x256xf32>
    %52 = arith.addf %49, %51 : vector<32x256xf32>
    %53 = math.tanh %52 : vector<32x256xf32>
    %c0_33 = arith.constant 0 : index
    %c0_34 = arith.constant 0 : index
    %54 = vector.load %arg13[%c0_33, %c0_34] : memref<1x256xf32, #tpu.memory_space<vmem>>, vector<1x256xf32>
    %55 = vector.broadcast %54 : vector<1x256xf32> to vector<32x256xf32>
    %56 = arith.mulf %53, %55 : vector<32x256xf32>
    %cst_35 = arith.constant dense<0.000000e+00> : vector<32xf32>
    %57 = vector.multi_reduction <add>, %56, %cst_35 [1] : vector<32x256xf32> to vector<32xf32>
    %58 = vector.shape_cast %57 : vector<32xf32> to vector<32x1xf32>
    %59 = vector.extract_strided_slice %58 {offsets = [0, 0], sizes = [16, 1], strides = [1, 1]} : vector<32x1xf32> to vector<16x1xf32>
    %60 = vector.extract_strided_slice %58 {offsets = [16, 0], sizes = [16, 1], strides = [1, 1]} : vector<32x1xf32> to vector<16x1xf32>
    %61 = arith.maximumf %59, %60 : vector<16x1xf32>
    %62 = arith.subf %59, %61 : vector<16x1xf32>
    %63 = math.exp %62 : vector<16x1xf32>
    %64 = arith.subf %60, %61 : vector<16x1xf32>
    %65 = math.exp %64 : vector<16x1xf32>
    %66 = vector.broadcast %63 : vector<16x1xf32> to vector<16x128xf32>
    %67 = arith.mulf %66, %39 : vector<16x128xf32>
    %68 = vector.broadcast %65 : vector<16x1xf32> to vector<16x128xf32>
    %69 = arith.mulf %68, %45 : vector<16x128xf32>
    %70 = arith.addf %67, %69 : vector<16x128xf32>
    %71 = arith.addf %63, %65 : vector<16x1xf32>
    %72 = vector.broadcast %71 : vector<16x1xf32> to vector<16x128xf32>
    %73 = arith.divf %70, %72 : vector<16x128xf32>
    %c0_36 = arith.constant 0 : index
    %c0_37 = arith.constant 0 : index
    %74 = vector.load %arg14[%c0_36, %c0_37] : memref<16x128xf32, #tpu.memory_space<vmem>>, vector<16x128xf32>
    tpu.vector_store %arg14[%c0_36, %c0_37], %73 {strides = array<i32>} : memref<16x128xf32, #tpu.memory_space<vmem>>, vector<16x128xf32>,
    return
  }
  func.func @transform_0(%arg0: i32) -> (i32, i32, i32) {
    %c0_i32 = arith.constant 0 : i32
    %c0_i32_0 = arith.constant 0 : i32
    %c0_i32_1 = arith.constant 0 : i32
    return %arg0, %c0_i32, %c0_i32_0 : i32, i32, i32
  }
  func.func @transform_1(%arg0: i32) -> (i32, i32) {
    %c0_i32 = arith.constant 0 : i32
    %c0_i32_0 = arith.constant 0 : i32
    return %arg0, %c0_i32 : i32, i32
  }
  func.func @transform_2(%arg0: i32) -> (i32, i32) {
    %c0_i32 = arith.constant 0 : i32
    %c0_i32_0 = arith.constant 0 : i32
    return %arg0, %c0_i32 : i32, i32
  }
  func.func @transform_3(%arg0: i32) -> (i32, i32) {
    %c0_i32 = arith.constant 0 : i32
    %c0_i32_0 = arith.constant 0 : i32
    %c0_i32_1 = arith.constant 0 : i32
    return %c0_i32, %c0_i32_0 : i32, i32
  }
  func.func @transform_4(%arg0: i32) -> (i32, i32) {
    %c0_i32 = arith.constant 0 : i32
    %c0_i32_0 = arith.constant 0 : i32
    %c0_i32_1 = arith.constant 0 : i32
    return %c0_i32, %c0_i32_0 : i32, i32
  }
  func.func @transform_5(%arg0: i32) -> (i32, i32) {
    %c0_i32 = arith.constant 0 : i32
    %c0_i32_0 = arith.constant 0 : i32
    %c0_i32_1 = arith.constant 0 : i32
    return %c0_i32, %c0_i32_0 : i32, i32
  }
  func.func @transform_6(%arg0: i32) -> (i32, i32) {
    %c0_i32 = arith.constant 0 : i32
    %c0_i32_0 = arith.constant 0 : i32
    %c0_i32_1 = arith.constant 0 : i32
    return %c0_i32, %c0_i32_0 : i32, i32
  }
  func.func @transform_7(%arg0: i32) -> (i32, i32) {
    %c0_i32 = arith.constant 0 : i32
    %c0_i32_0 = arith.constant 0 : i32
    %c0_i32_1 = arith.constant 0 : i32
    return %c0_i32, %c0_i32_0 : i32, i32
  }
  func.func @transform_8(%arg0: i32) -> (i32, i32) {
    %c0_i32 = arith.constant 0 : i32
    %c0_i32_0 = arith.constant 0 : i32
    %c0_i32_1 = arith.constant 0 : i32
    return %c0_i32, %c0_i32_0 : i32, i32
  }
  func.func @transform_9(%arg0: i32) -> (i32, i32) {
    %c0_i32 = arith.constant 0 : i32
    %c0_i32_0 = arith.constant 0 : i32
    %c0_i32_1 = arith.constant 0 : i32
    return %c0_i32, %c0_i32_0 : i32, i32
  }
  func.func @transform_10(%arg0: i32) -> (i32, i32) {
    %c0_i32 = arith.constant 0 : i32
    %c0_i32_0 = arith.constant 0 : i32
    %c0_i32_1 = arith.constant 0 : i32
    return %c0_i32, %c0_i32_0 : i32, i32
  }
  func.func @transform_11(%arg0: i32) -> (i32, i32) {
    %c0_i32 = arith.constant 0 : i32
    %c0_i32_0 = arith.constant 0 : i32
    %c0_i32_1 = arith.constant 0 : i32
    return %c0_i32, %c0_i32_0 : i32, i32
  }
  func.func @transform_12(%arg0: i32) -> (i32, i32) {
    %c0_i32 = arith.constant 0 : i32
    %c0_i32_0 = arith.constant 0 : i32
    %c0_i32_1 = arith.constant 0 : i32
    return %c0_i32, %c0_i32_0 : i32, i32
  }
  func.func @transform_13(%arg0: i32) -> (i32, i32) {
    %c0_i32 = arith.constant 0 : i32
    %c0_i32_0 = arith.constant 0 : i32
    return %arg0, %c0_i32 : i32, i32
  }
}

module attributes {stable_mosaic.version = 11 : i64} {
  func.func @user_score_kernel(%arg0: i32, %arg1: memref<8x4x128xbf16, #tpu.memory_space<vmem>>, %arg2: memref<8x4xf32, #tpu.memory_space<vmem>>, %arg3: memref<8x128x128xbf16, #tpu.memory_space<vmem>>, %arg4: memref<128x256xbf16, #tpu.memory_space<vmem>>, %arg5: memref<1x256xf32, #tpu.memory_space<vmem>>, %arg6: memref<1x256xf32, #tpu.memory_space<vmem>>, %arg7: memref<8x128xf32, #tpu.memory_space<vmem>>) attributes {dimension_semantics = [#tpu.dimension_semantics<parallel>], iteration_bounds = array<i64: 1>, scalar_prefetch = 0 : i64, scratch_operands = 0 : i64, tpu.core_type = #tpu.core_type<tc>, window_params = [{transform_indices = @transform_0, window_bounds = array<i64: 8, 4, 128>}, {transform_indices = @transform_1, window_bounds = array<i64: 8, 4>}, {transform_indices = @transform_2, window_bounds = array<i64: 8, 128, 128>}, {pipeline_mode = #tpu.pipeline_mode<synchronous>, transform_indices = @transform_3, window_bounds = array<i64: 128, 256>}, {pipeline_mode = #tpu.pipeline_mode<synchronous>, transform_indices = @transform_4, window_bounds = array<i64: 1, 256>}, {pipeline_mode = #tpu.pipeline_mode<synchronous>, transform_indices = @transform_5, window_bounds = array<i64: 1, 256>}, {transform_indices = @transform_6, window_bounds = array<i64: 8, 128>}]} {
    %c0 = arith.constant 0 : index
    %c0_0 = arith.constant 0 : index
    %c0_1 = arith.constant 0 : index
    %0 = vector.load %arg1[%c0, %c0_0, %c0_1] : memref<8x4x128xbf16, #tpu.memory_space<vmem>>, vector<8x4x128xbf16>
    %1 = vector.shape_cast %0 : vector<8x4x128xbf16> to vector<32x128xbf16>
    %c0_2 = arith.constant 0 : index
    %c0_3 = arith.constant 0 : index
    %2 = vector.load %arg4[%c0_2, %c0_3] : memref<128x256xbf16, #tpu.memory_space<vmem>>, vector<128x256xbf16>
    %cst = arith.constant dense<0.000000e+00> : vector<32x256xf32>
    %3 = tpu.matmul %1, %2, %cst {dimension_numbers = #tpu.dot_dimension_numbers<[1], [0], [0], [1], [0, 0, 1, 1], [], []>} : vector<32x128xbf16>, vector<128x256xbf16>, vector<32x256xf32> -> vector<32x256xf32>
    %4 = vector.shape_cast %3 : vector<32x256xf32> to vector<8x4x256xf32>
    %c0_4 = arith.constant 0 : index
    %c0_5 = arith.constant 0 : index
    %5 = vector.load %arg5[%c0_4, %c0_5] : memref<1x256xf32, #tpu.memory_space<vmem>>, vector<1x256xf32>
    %6 = vector.shape_cast %5 : vector<1x256xf32> to vector<1x1x256xf32>
    %7 = vector.broadcast %6 : vector<1x1x256xf32> to vector<8x4x256xf32>
    %8 = arith.addf %4, %7 : vector<8x4x256xf32>
    %9 = math.tanh %8 : vector<8x4x256xf32>
    %c0_6 = arith.constant 0 : index
    %c0_7 = arith.constant 0 : index
    %10 = vector.load %arg6[%c0_6, %c0_7] : memref<1x256xf32, #tpu.memory_space<vmem>>, vector<1x256xf32>
    %11 = vector.shape_cast %10 : vector<1x256xf32> to vector<1x1x256xf32>
    %12 = vector.broadcast %11 : vector<1x1x256xf32> to vector<8x4x256xf32>
    %13 = arith.mulf %9, %12 : vector<8x4x256xf32>
    %cst_8 = arith.constant dense<0.000000e+00> : vector<8x4xf32>
    %14 = vector.multi_reduction <add>, %13, %cst_8 [2] : vector<8x4x256xf32> to vector<8x4xf32>
    %c0_9 = arith.constant 0 : index
    %c0_10 = arith.constant 0 : index
    %15 = vector.load %arg2[%c0_9, %c0_10] : memref<8x4xf32, #tpu.memory_space<vmem>>, vector<8x4xf32>
    %cst_11 = arith.constant 0.000000e+00 : f32
    %16 = vector.broadcast %cst_11 : f32 to vector<8x4xf32>
    %17 = arith.cmpf ogt, %15, %16 : vector<8x4xf32>
    %cst_12 = arith.constant -1.000000e+30 : f32
    %18 = vector.broadcast %cst_12 : f32 to vector<8x4xf32>
    %19 = arith.select %17, %14, %18 : vector<8x4xi1>, vector<8x4xf32>
    %cst_13 = arith.constant dense<0xFF800000> : vector<8xf32>
    %20 = vector.multi_reduction <maximumf>, %19, %cst_13 [1] : vector<8x4xf32> to vector<8xf32>
    %21 = vector.shape_cast %20 : vector<8xf32> to vector<8x1xf32>
    %22 = vector.broadcast %21 : vector<8x1xf32> to vector<8x4xf32>
    %23 = arith.subf %19, %22 : vector<8x4xf32>
    %24 = math.exp %23 : vector<8x4xf32>
    %cst_14 = arith.constant dense<0.000000e+00> : vector<8xf32>
    %25 = vector.multi_reduction <add>, %24, %cst_14 [1] : vector<8x4xf32> to vector<8xf32>
    %26 = vector.shape_cast %25 : vector<8xf32> to vector<8x1xf32>
    %27 = vector.broadcast %26 : vector<8x1xf32> to vector<8x4xf32>
    %28 = arith.divf %24, %27 : vector<8x4xf32>
    %29 = vector.shape_cast %28 : vector<8x4xf32> to vector<8x4x1xf32>
    %30 = arith.extf %0 : vector<8x4x128xbf16> to vector<8x4x128xf32>
    %31 = vector.broadcast %29 : vector<8x4x1xf32> to vector<8x4x128xf32>
    %32 = arith.mulf %31, %30 : vector<8x4x128xf32>
    %cst_15 = arith.constant dense<0.000000e+00> : vector<8x128xf32>
    %33 = vector.multi_reduction <add>, %32, %cst_15 [1] : vector<8x4x128xf32> to vector<8x128xf32>
    %c0_16 = arith.constant 0 : index
    %c0_17 = arith.constant 0 : index
    %c0_18 = arith.constant 0 : index
    %34 = vector.load %arg3[%c0_16, %c0_17, %c0_18] : memref<8x128x128xbf16, #tpu.memory_space<vmem>>, vector<8x128x128xbf16>
    %35 = arith.extf %34 : vector<8x128x128xbf16> to vector<8x128x128xf32>
    %36 = vector.shape_cast %33 : vector<8x128xf32> to vector<8x1x128xf32>
    %37 = vector.broadcast %36 : vector<8x1x128xf32> to vector<8x128x128xf32>
    %38 = arith.mulf %37, %35 : vector<8x128x128xf32>
    %cst_19 = arith.constant dense<0.000000e+00> : vector<8x128xf32>
    %39 = vector.multi_reduction <add>, %38, %cst_19 [2] : vector<8x128x128xf32> to vector<8x128xf32>
    %c0_20 = arith.constant 0 : index
    %c0_21 = arith.constant 0 : index
    %40 = vector.load %arg7[%c0_20, %c0_21] : memref<8x128xf32, #tpu.memory_space<vmem>>, vector<8x128xf32>
    tpu.vector_store %arg7[%c0_20, %c0_21], %39 {strides = array<i32>} : memref<8x128xf32, #tpu.memory_space<vmem>>, vector<8x128xf32>,
    return
  }
  func.func @transform_0(%arg0: i32) -> (i32, i32, i32) {
    %c0_i32 = arith.constant 0 : i32
    %c0_i32_0 = arith.constant 0 : i32
    %c0_i32_1 = arith.constant 0 : i32
    return %arg0, %c0_i32, %c0_i32_0 : i32, i32, i32
  }
  func.func @transform_1(%arg0: i32) -> (i32, i32) {
    %c0_i32 = arith.constant 0 : i32
    %c0_i32_0 = arith.constant 0 : i32
    return %arg0, %c0_i32 : i32, i32
  }
  func.func @transform_2(%arg0: i32) -> (i32, i32, i32) {
    %c0_i32 = arith.constant 0 : i32
    %c0_i32_0 = arith.constant 0 : i32
    %c0_i32_1 = arith.constant 0 : i32
    return %arg0, %c0_i32, %c0_i32_0 : i32, i32, i32
  }
  func.func @transform_3(%arg0: i32) -> (i32, i32) {
    %c0_i32 = arith.constant 0 : i32
    %c0_i32_0 = arith.constant 0 : i32
    %c0_i32_1 = arith.constant 0 : i32
    return %c0_i32, %c0_i32_0 : i32, i32
  }
  func.func @transform_4(%arg0: i32) -> (i32, i32) {
    %c0_i32 = arith.constant 0 : i32
    %c0_i32_0 = arith.constant 0 : i32
    %c0_i32_1 = arith.constant 0 : i32
    return %c0_i32, %c0_i32_0 : i32, i32
  }
  func.func @transform_5(%arg0: i32) -> (i32, i32) {
    %c0_i32 = arith.constant 0 : i32
    %c0_i32_0 = arith.constant 0 : i32
    %c0_i32_1 = arith.constant 0 : i32
    return %c0_i32, %c0_i32_0 : i32, i32
  }
  func.func @transform_6(%arg0: i32) -> (i32, i32) {
    %c0_i32 = arith.constant 0 : i32
    %c0_i32_0 = arith.constant 0 : i32
    return %arg0, %c0_i32 : i32, i32
  }
}

</mosaic_0001>

<bundles_post_ra>
// kernel: small_naml_forward.2
= control target key start
LH: loop header
LB: loop body
LE: loop exit
PB: predicated region body
PF: predicated region fallthrough
CT: control target
= control target key end

     0   :  { %v1463_v1 = vmov 0   ;;  %vm125_vm0 = vcmask 261120   ;;  %v265_v13 = vlaneseq  ;;  %vm517_vm1 = vcmask 1041409   ;;  %s1904_s3 = inlined_call_operand.vmem [shape: bf16[32,256], index: 3, kind: input, shape index: {}]   ;;  %s1905_s0 = inlined_call_operand.vmem [shape: bf16[16,8,32], index: 0, kind: input, shape index: {}]   ;;  %s1906_s4 = inlined_call_operand.vmem [shape: f32[1,256], index: 4, kind: input, shape index: {}]   ;;  %s1907_s5 = inlined_call_operand.vmem [shape: f32[1,256], index: 5, kind: input, shape index: {}]   ;;  %s1908_s1 = inlined_call_operand.vmem [shape: f32[16,8], index: 1, kind: input, shape index: {}]   ;;  %s1909_s6 = inlined_call_operand.vmem [shape: bf16[32,128], index: 6, kind: input, shape index: {}]   ;;  %s1910_s2 = inlined_call_operand.vmem [shape: bf16[16,8], index: 2, kind: input, shape index: {}]   ;;  %s1911_s10 = inlined_call_operand.vmem [shape: bf16[128,256], index: 10, kind: input, shape index: {}]   ;;  %s1912_s8 = inlined_call_operand.vmem [shape: bf16[8,128], index: 8, kind: input, shape index: {}]   ;;  %s1913_s7 = inlined_call_operand.vmem [shape: f32[1,128], index: 7, kind: input, shape index: {}]   ;;  %s1914_s9 = inlined_call_operand.vmem [shape: f32[1,128], index: 9, kind: input, shape index: {}]   ;;  %s1915_s11 = inlined_call_operand.vmem [shape: f32[1,256], index: 11, kind: input, shape index: {}]   ;;  %s1916_s12 = inlined_call_operand.vmem [shape: f32[1,256], index: 12, kind: input, shape index: {}]   ;;  %s1917_s13 = inlined_call_operand.vmem [shape: f32[16,128], index: 13, kind: output, shape index: {}]  }
   0x1   :  { %v1314_v0 = vld [vmem:[%s1904_s3 + $0x14] ss:$8 sps:$4 sm:$0xff]   ;;  %182 = vmatprep.mubr.bf16.mxu0 %v1463_v1  ;;  %v1316_v2 = vld [vmem:[%s1904_s3 + $0x10] ss:$8 sps:$4 sm:$0xff]   ;;  %v1317_v3 = vld [vmem:[%s1904_s3 + $0x4] ss:$8 sps:$4 sm:$0xff]  }
   0x2   :  { %162 = vmatprep.subr.bf16.mxu0 %v1314_v0  ;;  %v1319_v4 = vld [vmem:[%s1904_s3] ss:$8 sps:$4 sm:$0xff]   ;;  %v1568_v7 = vld [vmem:[%s1905_s0 + $0x10] sm:$0xff]   ;;  %v1576_v8 = vld [vmem:[%s1905_s0 + $0x18] sm:$0xff]   ;;  %v1613_v14 = vshrl.u32 %v265_v13, 7  ;;  %vm519_vm2 = vcmask 1042434  }
   0x3   :  { %163 = vmatpush1.bf16.msra.mxu0 %v1316_v2  ;;  %v1552_v5 = vld [vmem:[%s1905_s0] sm:$0xff]   ;;  %v1560_v6 = vld [vmem:[%s1905_s0 + $0x8] sm:$0xff]   ;;  %v1600_v11 = vld [vmem:[%s1905_s0 + $0x30] sm:$0xff]   ;;  %vm521_vm3 = vcmask 1043459   ;;  %vm523_vm4 = vcmask 1044484   ;;  %vm525_vm5 = vcmask 1045509  }
   0x4   :  { %164 = vmatprep.subr.bf16.mxu0 %v1317_v3  ;;  %v1584_v9 = vld [vmem:[%s1905_s0 + $0x20] sm:$0xff]   ;;  %v1592_v10 = vld [vmem:[%s1905_s0 + $0x28] sm:$0xff]   ;;  %v1608_v12 = vld [vmem:[%s1905_s0 + $0x38] sm:$0xff]   ;;  %v1616_v15 = vsub.s32 0, %v1613_v14  ;;  %v1622_v17 = vsub.s32 1, %v1613_v14  ;;  %vm527_vm6 = vcmask 1046534  }
   0x5   :  { %v263_v16 = vld [vmem:[%s1906_s4] sm:$0x3]  ;;  %vm529_vm7 = vcmask 1047559   ;;  %vm542_vm9 = vcmask 64512   ;;  %vm1465_vm11 = vmmov 0   ;;  %vm969_vm12 = vcmask 1043456  }
   0x6   :  { %v1625_v18 = vrot.slane %v263_v16, %v1616_v15  ;;  %v1628_v19 = vrot.slane %v263_v16, %v1622_v17  ;;  %v339_v33 = vld [vmem:[%s1907_s5] sm:$0x3] }
   0x7   :  { %165 = vmatpush1.bf16.msra.mxu0 %v1319_v4  ;;  %v1642_v37 = vrot.slane %v339_v33, %v1616_v15  ;;  %v1645_v38 = vrot.slane %v339_v33, %v1622_v17 }
   0xa   :  { %1261 = vmatmul.mubr.msk.bf16.vlgmr.msra.gmra.mxu0 %vm125_vm0, %v1552_v5 }
   0xb   :  { %192 = vmatprep.mubr.bf16.mxu0 %v1463_v1 }
  0x12   :  { %1262 = vmatmul.mubr.msk.bf16.gmra.mxu0 %vm125_vm0, %v1560_v6 }
  0x13   :  { %202 = vmatprep.mubr.bf16.mxu0 %v1463_v1 }
  0x1a   :  { %1263 = vmatmul.mubr.msk.bf16.gmra.mxu0 %vm125_vm0, %v1568_v7 }
  0x1b   :  { %212 = vmatprep.mubr.bf16.mxu0 %v1463_v1 }
  0x22   :  { %1264 = vmatmul.mubr.msk.bf16.gmra.mxu0 %vm125_vm0, %v1576_v8 }
  0x23   :  { %222 = vmatprep.mubr.bf16.mxu0 %v1463_v1 }
  0x2a   :  { %1265 = vmatmul.mubr.msk.bf16.gmra.mxu0 %vm125_vm0, %v1584_v9 }
  0x2b   :  { %232 = vmatprep.mubr.bf16.mxu0 %v1463_v1 }
  0x32   :  { %1266 = vmatmul.mubr.msk.bf16.gmra.mxu0 %vm125_vm0, %v1592_v10 }
  0x33   :  { %242 = vmatprep.mubr.bf16.mxu0 %v1463_v1 }
  0x3a   :  { %1267 = vmatmul.mubr.msk.bf16.gmra.mxu0 %vm125_vm0, %v1600_v11 }
  0x3b   :  { %252 = vmatprep.mubr.bf16.mxu0 %v1463_v1 }
  0x42   :  { %1268 = vmatmul.mubr.msk.bf16.gmra.mxu0 %vm125_vm0, %v1608_v12 }
  0xca   :  { %v184_v20 = vpop.f32.mrf.mxu0 }
  0xcb   :  { %v275_v21 = vadd.f32 %v1625_v18, %v184_v20 }
  0xcc   :  { %v186_v22 = vpop.f32.mrf.mxu0 }
  0xcd   :  { %1363 = vtanh.f32 %v275_v21  ;;  %v276_v23 = vadd.f32 %v1628_v19, %v186_v22 }
  0xce   :  { %v188_v24 = vpop.f32.mrf.mxu0 }
  0xcf   :  { %1365 = vtanh.f32 %v276_v23  ;;  %v277_v25 = vadd.f32 %v1625_v18, %v188_v24 }
  0xd0   :  { %v190_v26 = vpop.f32.mrf.mxu0 }
  0xd1   :  { %1367 = vtanh.f32 %v277_v25  ;;  %v278_v27 = vadd.f32 %v1628_v19, %v190_v26 }
  0xd2   :  { %v194_v28 = vpop.f32.mrf.mxu0 }
  0xd3   :  { %1369 = vtanh.f32 %v278_v27  ;;  %v279_v29 = vadd.f32 %v1625_v18, %v194_v28 }
  0xd4   :  { %v196_v30 = vpop.f32.mrf.mxu0 }
  0xd5   :  { %1371 = vtanh.f32 %v279_v29  ;;  %v280_v31 = vadd.f32 %v1628_v19, %v196_v30 }
  0xd6   :  { %v198_v32 = vpop.f32.mrf.mxu0 }
  0xd7   :  { %1373 = vtanh.f32 %v280_v31  ;;  %v281_v34 = vadd.f32 %v1625_v18, %v198_v32 }
  0xd8   :  { %v200_v35 = vpop.f32.mrf.mxu0 }
  0xd9   :  { %1375 = vtanh.f32 %v281_v34  ;;  %v282_v36 = vadd.f32 %v1628_v19, %v200_v35 }
  0xda   :  { %v1364_v39 = vpop.eup %1363  ;;  %v204_v40 = vpop.f32.mrf.mxu0 }
  0xdb   :  { %1377 = vtanh.f32 %v282_v36  ;;  %v283_v41 = vadd.f32 %v1625_v18, %v204_v40  ;;  %v351_v45 = vmul.f32 %v1364_v39, %v1642_v37 }
  0xdc   :  { %v1366_v42 = vpop.eup %1365  ;;  %v206_v43 = vpop.f32.mrf.mxu0 }
  0xdd   :  { %1379 = vtanh.f32 %v283_v41  ;;  %v284_v44 = vadd.f32 %v1628_v19, %v206_v43  ;;  %v352_v46 = vmul.f32 %v1366_v42, %v1645_v38 }
  0xde   :  { %v1368_v47 = vpop.eup %1367  ;;  %v208_v48 = vpop.f32.mrf.mxu0 }
  0xdf   :  { %1381 = vtanh.f32 %v284_v44  ;;  %v285_v49 = vadd.f32 %v1625_v18, %v208_v48  ;;  %v383_v50 = vadd.f32 %v352_v46, %v351_v45  ;;  %v353_v54 = vmul.f32 %v1368_v47, %v1642_v37 }
  0xe0   :  { %v1370_v51 = vpop.eup %1369  ;;  %v210_v52 = vpop.f32.mrf.mxu0 }
  0xe1   :  { %1383 = vtanh.f32 %v285_v49  ;;  %v286_v53 = vadd.f32 %v1628_v19, %v210_v52  ;;  %384 = vadd.xlane.f32.xlu0 %v383_v50  ;;  %v354_v55 = vmul.f32 %v1370_v51, %v1645_v38 }
  0xe2   :  { %v1372_v56 = vpop.eup %1371  ;;  %v214_v57 = vpop.f32.mrf.mxu0 }
  0xe3   :  { %1385 = vtanh.f32 %v286_v53  ;;  %v287_v58 = vadd.f32 %v1625_v18, %v214_v57  ;;  %v386_v59 = vadd.f32 %v354_v55, %v353_v54  ;;  %v355_v63 = vmul.f32 %v1372_v56, %v1642_v37 }
  0xe4   :  { %v1374_v60 = vpop.eup %1373  ;;  %v216_v61 = vpop.f32.mrf.mxu0 }
  0xe5   :  { %1387 = vtanh.f32 %v287_v58  ;;  %v288_v62 = vadd.f32 %v1628_v19, %v216_v61  ;;  %387 = vadd.xlane.f32.xlu0 %v386_v59  ;;  %v356_v0 = vmul.f32 %v1374_v60, %v1645_v38 }
  0xe6   :  { %v1376_v2 = vpop.eup %1375  ;;  %v218_v3 = vpop.f32.mrf.mxu0 }
  0xe7   :  { %1389 = vtanh.f32 %v288_v62  ;;  %v289_v4 = vadd.f32 %v1625_v18, %v218_v3  ;;  %v389_v16 = vadd.f32 %v356_v0, %v355_v63  ;;  %v357_v23 = vmul.f32 %v1376_v2, %v1642_v37 }
  0xe8   :  { %v1378_v20 = vpop.eup %1377  ;;  %v220_v21 = vpop.f32.mrf.mxu0 }
  0xe9   :  { %1391 = vtanh.f32 %v289_v4  ;;  %v290_v22 = vadd.f32 %v1628_v19, %v220_v21  ;;  %390 = vadd.xlane.f32.xlu0 %v389_v16  ;;  %v358_v24 = vmul.f32 %v1378_v20, %v1645_v38 }
  0xea   :  { %v1380_v25 = vpop.eup %1379  ;;  %v224_v26 = vpop.f32.mrf.mxu0 }
  0xeb   :  { %1393 = vtanh.f32 %v290_v22  ;;  %v291_v27 = vadd.f32 %v1625_v18, %v224_v26  ;;  %v392_v28 = vadd.f32 %v358_v24, %v357_v23  ;;  %v359_v32 = vmul.f32 %v1380_v25, %v1642_v37 }
  0xec   :  { %v1382_v29 = vpop.eup %1381  ;;  %v226_v30 = vpop.f32.mrf.mxu0 }
  0xed   :  { %1395 = vtanh.f32 %v291_v27  ;;  %v292_v31 = vadd.f32 %v1628_v19, %v226_v30  ;;  %393 = vadd.xlane.f32.xlu0 %v392_v28  ;;  %v360_v33 = vmul.f32 %v1382_v29, %v1645_v38 }
  0xee   :  { %v1384_v34 = vpop.eup %1383  ;;  %v228_v35 = vpop.f32.mrf.mxu0 }
  0xef   :  { %1397 = vtanh.f32 %v292_v31  ;;  %v293_v36 = vadd.f32 %v1625_v18, %v228_v35  ;;  %v395_v39 = vadd.f32 %v360_v33, %v359_v32  ;;  %v361_v43 = vmul.f32 %v1384_v34, %v1642_v37 }
  0xf0   :  { %v1386_v40 = vpop.eup %1385  ;;  %v230_v41 = vpop.f32.mrf.mxu0 }
  0xf1   :  { %1399 = vtanh.f32 %v293_v36  ;;  %v294_v42 = vadd.f32 %v1628_v19, %v230_v41  ;;  %396 = vadd.xlane.f32.xlu0 %v395_v39  ;;  %v362_v44 = vmul.f32 %v1386_v40, %v1645_v38 }
  0xf2   :  { %v1388_v45 = vpop.eup %1387  ;;  %v234_v46 = vpop.f32.mrf.mxu0 }
  0xf3   :  { %1401 = vtanh.f32 %v294_v42  ;;  %v295_v47 = vadd.f32 %v1625_v18, %v234_v46  ;;  %v398_v48 = vadd.f32 %v362_v44, %v361_v43  ;;  %v363_v52 = vmul.f32 %v1388_v45, %v1642_v37 }
  0xf4   :  { %v1390_v49 = vpop.eup %1389  ;;  %v236_v50 = vpop.f32.mrf.mxu0 }
  0xf5   :  { %1403 = vtanh.f32 %v295_v47  ;;  %v296_v51 = vadd.f32 %v1628_v19, %v236_v50  ;;  %399 = vadd.xlane.f32.xlu0 %v398_v48  ;;  %v364_v53 = vmul.f32 %v1390_v49, %v1645_v38 }
  0xf6   :  { %v1392_v54 = vpop.eup %1391  ;;  %v238_v55 = vpop.f32.mrf.mxu0 }
  0xf7   :  { %1405 = vtanh.f32 %v296_v51  ;;  %v297_v56 = vadd.f32 %v1625_v18, %v238_v55  ;;  %v401_v57 = vadd.f32 %v364_v53, %v363_v52  ;;  %v365_v61 = vmul.f32 %v1392_v54, %v1642_v37 }
  0xf8   :  { %v1394_v58 = vpop.eup %1393  ;;  %v240_v59 = vpop.f32.mrf.mxu0 }
  0xf9   :  { %1407 = vtanh.f32 %v297_v56  ;;  %v298_v60 = vadd.f32 %v1628_v19, %v240_v59  ;;  %402 = vadd.xlane.f32.xlu0 %v401_v57  ;;  %v366_v62 = vmul.f32 %v1394_v58, %v1645_v38 }
  0xfa   :  { %v1396_v63 = vpop.eup %1395  ;;  %v244_v0 = vpop.f32.mrf.mxu0 }
  0xfb   :  { %1409 = vtanh.f32 %v298_v60  ;;  %v299_v2 = vadd.f32 %v1625_v18, %v244_v0  ;;  %v404_v3 = vadd.f32 %v366_v62, %v365_v61  ;;  %v367_v21 = vmul.f32 %v1396_v63, %v1642_v37 }
  0xfc   :  { %v1398_v4 = vpop.eup %1397  ;;  %v246_v16 = vpop.f32.mrf.mxu0 }
  0xfd   :  { %1411 = vtanh.f32 %v299_v2  ;;  %v300_v20 = vadd.f32 %v1628_v19, %v246_v16  ;;  %405 = vadd.xlane.f32.xlu0 %v404_v3  ;;  %v368_v22 = vmul.f32 %v1398_v4, %v1645_v38 }
  0xfe   :  { %v1400_v23 = vpop.eup %1399  ;;  %v248_v24 = vpop.f32.mrf.mxu0 }
  0xff   :  { %1413 = vtanh.f32 %v300_v20  ;;  %v301_v25 = vadd.f32 %v1625_v18, %v248_v24  ;;  %v407_v26 = vadd.f32 %v368_v22, %v367_v21  ;;  %v369_v30 = vmul.f32 %v1400_v23, %v1642_v37 }
 0x100   :  { %v1402_v27 = vpop.eup %1401  ;;  %v250_v28 = vpop.f32.mrf.mxu0 }
 0x101   :  { %1415 = vtanh.f32 %v301_v25  ;;  %v302_v29 = vadd.f32 %v1628_v19, %v250_v28  ;;  %408 = vadd.xlane.f32.xlu1 %v407_v26  ;;  %v370_v31 = vmul.f32 %v1402_v27, %v1645_v38  ;;  %v452_v26 = vand.u32 127, %v265_v13 }
 0x102   :  { %v1404_v32 = vpop.eup %1403  ;;  %v254_v33 = vpop.f32.mrf.mxu0 }
 0x103   :  { %1417 = vtanh.f32 %v302_v29  ;;  %v303_v34 = vadd.f32 %v1625_v18, %v254_v33  ;;  %v410_v35 = vadd.f32 %v370_v31, %v369_v30  ;;  %v371_v41 = vmul.f32 %v1404_v32, %v1642_v37 }
 0x104   :  { %v1406_v36 = vpop.eup %1405  ;;  %v256_v39 = vpop.f32.mrf.mxu0  ;;  %v455_v28 = vsub.s32 %v452_v26, %v1613_v14 }
 0x105   :  { %1419 = vtanh.f32 %v303_v34  ;;  %v304_v40 = vadd.f32 %v1628_v19, %v256_v39  ;;  %411 = vadd.xlane.f32.xlu1 %v410_v35  ;;  %v372_v42 = vmul.f32 %v1406_v36, %v1645_v38  ;;  %v431_v39 = vld [vmem:[%s1908_s1] sm:$0xff] }
 0x106   :  { %v1408_v43 = vpop.eup %1407  ;;  %v258_v44 = vpop.f32.mrf.mxu0  ;;  %vm433_vm8 = vcmp.gt.f32.partialorder %v431_v39, 0.0 }
 0x107   :  { %1421 = vtanh.f32 %v304_v40  ;;  %v305_v45 = vadd.f32 %v1625_v18, %v258_v44  ;;  %v413_v46 = vadd.f32 %v372_v42, %v371_v41  ;;  %v373_v50 = vmul.f32 %v1408_v43, %v1642_v37 }
 0x108   :  { %v1410_v47 = vpop.eup %1409  ;;  %v260_v48 = vpop.f32.mrf.mxu0 }
 0x109   :  { %1423 = vtanh.f32 %v305_v45  ;;  %v306_v49 = vadd.f32 %v1628_v19, %v260_v48  ;;  %414 = vadd.xlane.f32.xlu1 %v413_v46  ;;  %v374_v51 = vmul.f32 %v1410_v47, %v1645_v38 }
 0x10a   :  { %v1412_v52 = vpop.eup %1411 }
 0x10b   :  { %1425 = vtanh.f32 %v306_v49  ;;  %v416_v53 = vadd.f32 %v374_v51, %v373_v50  ;;  %v375_v55 = vmul.f32 %v1412_v52, %v1642_v37 }
 0x10c   :  { %v1414_v54 = vpop.eup %1413 }
 0x10d   :  { %417 = vadd.xlane.f32.xlu1 %v416_v53  ;;  %v376_v18 = vmul.f32 %v1414_v54, %v1645_v38 }
 0x10e   :  { %v1416_v56 = vpop.eup %1415 }
 0x10f   :  { %v419_v57 = vadd.f32 %v376_v18, %v375_v55  ;;  %v377_v19 = vmul.f32 %v1416_v56, %v1642_v37 }
 0x110   :  { %v1418_v58 = vpop.eup %1417 }
 0x111   :  { %420 = vadd.xlane.f32.xlu1 %v419_v57  ;;  %v378_v59 = vmul.f32 %v1418_v58, %v1645_v38 }
 0x112   :  { %v1420_v60 = vpop.eup %1419 }
 0x113   :  { %v422_v61 = vadd.f32 %v378_v59, %v377_v19  ;;  %v379_v63 = vmul.f32 %v1420_v60, %v1642_v37 }
 0x114   :  { %v1422_v62 = vpop.eup %1421 }
 0x115   :  { %423 = vadd.xlane.f32.xlu1 %v422_v61  ;;  %v380_v0 = vmul.f32 %v1422_v62, %v1645_v38 }
 0x116   :  { %v1424_v2 = vpop.eup %1423 }
 0x117   :  { %v425_v3 = vadd.f32 %v380_v0, %v379_v63  ;;  %v381_v16 = vmul.f32 %v1424_v2, %v1642_v37  ;;  %v432_v63 = vld [vmem:[%s1908_s1 + $0x8] sm:$0xff] }
 0x118   :  { %v1426_v4 = vpop.eup %1425  ;;  %vm434_vm10 = vcmp.gt.f32.partialorder %v432_v63, 0.0  ;;  %v677_v63 = vunpack.c.l.bf16 %v1552_v5 }
 0x119   :  { %426 = vadd.xlane.f32.xlu1 %v425_v3  ;;  %v382_v20 = vmul.f32 %v1426_v4, %v1645_v38 }
 0x11b   :  { %v428_v21 = vadd.f32 %v382_v20, %v381_v16 }
 0x11d   :  { %429 = vadd.xlane.f32.xlu1 %v428_v21 }
 0x16a   :  { %v385_v22 = vpop.xlane.xlu0 %384 }
 0x16b   :  { %v456_v32 = vrot.slane %v385_v22, %v455_v28 }
 0x16e   :  { %v388_v23 = vpop.xlane.xlu0 %387 }
 0x16f   :  { %v460_v30 = vrot.slane %v388_v23, %v455_v28 }
 0x171   :  { %v518_v34 = vsel %vm517_vm1, %v460_v30, %v456_v32 }
 0x172   :  { %v391_v24 = vpop.xlane.xlu0 %390 }
 0x173   :  { %v464_v31 = vrot.slane %v391_v24, %v455_v28 }
 0x175   :  { %v520_v36 = vsel %vm519_vm2, %v464_v31, %v518_v34 }
 0x176   :  { %v394_v25 = vpop.xlane.xlu0 %393 }
 0x177   :  { %v468_v37 = vrot.slane %v394_v25, %v455_v28 }
 0x179   :  { %v522_v40 = vsel %vm521_vm3, %v468_v37, %v520_v36 }
 0x17a   :  { %v397_v27 = vpop.xlane.xlu0 %396 }
 0x17b   :  { %v472_v38 = vrot.slane %v397_v27, %v455_v28 }
 0x17d   :  { %v524_v41 = vsel %vm523_vm4, %v472_v38, %v522_v40  ;;  %v588_v40 = vsub.s32 3, %v1613_v14 }
 0x17e   :  { %v400_v29 = vpop.xlane.xlu0 %399 }
 0x17f   :  { %v476_v35 = vrot.slane %v400_v29, %v455_v28 }
 0x181   :  { %v526_v43 = vsel %vm525_vm5, %v476_v35, %v524_v41 }
 0x182   :  { %v403_v33 = vpop.xlane.xlu0 %402 }
 0x183   :  { %v480_v13 = vrot.slane %v403_v33, %v455_v28 }
 0x185   :  { %v528_v45 = vsel %vm527_vm6, %v480_v13, %v526_v43  ;;  %v581_v13 = vsub.s32 2, %v1613_v14 }
 0x186   :  { %v406_v42 = vpop.xlane.xlu0 %405 }
 0x187   :  { %v484_v44 = vrot.slane %v406_v42, %v455_v28  ;;  %v595_v42 = vsub.s32 4, %v1613_v14 }
 0x189   :  { %v530_v46 = vsel %vm529_vm7, %v484_v44, %v528_v45  ;;  %v602_v44 = vsub.s32 5, %v1613_v14 }
 0x18a   :  { %v409_v47 = vpop.xlane.xlu1 %408  ;;  %v540_v48 = vsel %vm433_vm8, %v530_v46, -1e+30 }
 0x18b   :  { %v543_v49 = vsel %vm542_vm9, %v540_v48, -inf  ;;  %v488_v56 = vrot.slane %v409_v47, %v455_v28  ;;  %v609_v47 = vsub.s32 6, %v1613_v14 }
 0x18c   :  { %544 = vmax.xlane.f32.xlu0 %v543_v49  ;;  %v616_v49 = vsub.s32 7, %v1613_v14 }
 0x18e   :  { %v412_v50 = vpop.xlane.xlu1 %411 }
 0x18f   :  { %v492_v55 = vrot.slane %v412_v50, %v455_v28 }
 0x191   :  { %v531_v59 = vsel %vm517_vm1, %v492_v55, %v488_v56 }
 0x192   :  { %v415_v51 = vpop.xlane.xlu1 %414 }
 0x193   :  { %v496_v18 = vrot.slane %v415_v51, %v455_v28 }
 0x195   :  { %v532_v61 = vsel %vm519_vm2, %v496_v18, %v531_v59  ;;  %v1464_v59 = vmov 0.0  }
 0x196   :  { %v418_v52 = vpop.xlane.xlu1 %417  ;;  %1297 = vmatprep.subr.bf16.mxu1 %v1464_v59  ;;  %1301 = vmatprep.mubr.msk.bf16.mxu1 %vm1465_vm11, %v1464_v59 }
 0x197   :  { %v500_v57 = vrot.slane %v418_v52, %v455_v28 }
 0x199   :  { %v533_v0 = vsel %vm521_vm3, %v500_v57, %v532_v61 }
 0x19a   :  { %v421_v53 = vpop.xlane.xlu1 %420 }
 0x19b   :  { %v504_v58 = vrot.slane %v421_v53, %v455_v28 }
 0x19d   :  { %v534_v2 = vsel %vm523_vm4, %v504_v58, %v533_v0 }
 0x19e   :  { %v424_v54 = vpop.xlane.xlu1 %423 }
 0x19f   :  { %v508_v60 = vrot.slane %v424_v54, %v455_v28 }
 0x1a1   :  { %v535_v4 = vsel %vm525_vm5, %v508_v60, %v534_v2  ;;  %v1329_v60 = vld [vmem:[%s1909_s6] sm:$0xff]   ;;  %v678_v2 = vunpack.c.h.bf16 %v1552_v5  ;;  %v680_v5 = vunpack.c.h.bf16 %v1560_v6 }
 0x1a2   :  { %v427_v19 = vpop.xlane.xlu1 %426 }
 0x1a3   :  { %v512_v62 = vrot.slane %v427_v19, %v455_v28  ;;  %v1328_v19 = vld [vmem:[%s1909_s6 + $0x8] sm:$0xff]  }
 0x1a4   :  { %1298 = vmatpush3.bf16.msra.mxu1 %v1328_v19 }
 0x1a5   :  { %v536_v20 = vsel %vm527_vm6, %v512_v62, %v535_v4  ;;  %1299 = vmatprep.subr.bf16.mxu1 %v1464_v59 }
 0x1a6   :  { %v430_v3 = vpop.xlane.xlu1 %429 }
 0x1a7   :  { %v516_v16 = vrot.slane %v430_v3, %v455_v28 }
 0x1a8   :  { %1300 = vmatpush3.bf16.msra.mxu1 %v1329_v60  ;;  %v689_v60 = vunpack.c.l.bf16 %v1600_v11 }
 0x1a9   :  { %v537_v21 = vsel %vm529_vm7, %v516_v16, %v536_v20  ;;  %1305 = vmatprep.subr.bf16.mxu1 %v1464_v59 }
 0x1aa   :  { %v541_v22 = vsel %vm434_vm10, %v537_v21, -1e+30 }
 0x1ab   :  { %v546_v23 = vsel %vm542_vm9, %v541_v22, -inf }
 0x1ac   :  { %547 = vmax.xlane.f32.xlu1 %v546_v23 }
 0x215   :  { %v545_v24 = vpop.xlane.xlu0 %544 }
 0x216   :  { %v549_v25 = vsub.f32 %v540_v48, %v545_v24 }
 0x218   :  { %v551_v26 = vmul.f32 1.442695, %v549_v25 }
 0x21a   :  { %1427 = vpow2.f32 %v551_v26 }
 0x227   :  { %v1428_v27 = vpop.eup %1427 }
 0x228   :  { %v555_v29 = vsel %vm542_vm9, %v1428_v27, 0.0 }
 0x229   :  { %556 = vadd.xlane.f32.xlu0 %v555_v29 }
 0x235   :  { %v548_v30 = vpop.xlane.xlu1 %547 }
 0x236   :  { %v550_v31 = vsub.f32 %v541_v22, %v548_v30  ;;  %v679_v22 = vunpack.c.l.bf16 %v1560_v6 }
 0x238   :  { %v553_v28 = vmul.f32 1.442695, %v550_v31 }
 0x23a   :  { %1429 = vpow2.f32 %v553_v28 }
 0x247   :  { %v1430_v32 = vpop.eup %1429 }
 0x248   :  { %v558_v37 = vsel %vm542_vm9, %v1430_v32, 0.0 }
 0x249   :  { %559 = vadd.xlane.f32.xlu1 %v558_v37 }
 0x2b2   :  { %v557_v38 = vpop.xlane.xlu0 %556 }
 0x2b3   :  { %1431 = vrcp.f32 %v557_v38 }
 0x2c0   :  { %v1432_v33 = vpop.eup %1431 }
 0x2c1   :  { %v562_v34 = vmul.f32 %v1432_v33, %v1428_v27  ;;  %v681_v33 = vunpack.c.l.bf16 %v1568_v7 }
 0x2c3   :  { %v568_v35 = vrot.slane %v562_v34, %v1616_v15  ;;  %v575_v36 = vrot.slane %v562_v34, %v1622_v17  ;;  %v582_v39 = vrot.slane %v562_v34, %v581_v13  ;;  %v589_v41 = vrot.slane %v562_v34, %v588_v40 }
 0x2c4   :  { %v596_v43 = vrot.slane %v562_v34, %v595_v42  ;;  %v603_v46 = vrot.slane %v562_v34, %v602_v44  ;;  %v610_v48 = vrot.slane %v562_v34, %v609_v47  ;;  %v617_v50 = vrot.slane %v562_v34, %v616_v49 }
 0x2c5   :  { %570 = vbcast.lane.b32.xlu0 %v568_v35, 256  ;;  %577 = vbcast.lane.b32.xlu1 %v575_v36, 256  ;;  %v685_v34 = vunpack.c.l.bf16 %v1584_v9  ;;  %v686_v35 = vunpack.c.h.bf16 %v1584_v9  ;;  %v682_v36 = vunpack.c.h.bf16 %v1568_v7 }
 0x2c9   :  { %584 = vbcast.lane.b32.xlu0 %v582_v39, 256 }
 0x2cd   :  { %591 = vbcast.lane.b32.xlu0 %v589_v41, 256 }
 0x2d1   :  { %598 = vbcast.lane.b32.xlu0 %v596_v43, 256  ;;  %v687_v43 = vunpack.c.l.bf16 %v1592_v10 }
 0x2d2   :  { %v560_v45 = vpop.xlane.xlu1 %559 }
 0x2d3   :  { %1433 = vrcp.f32 %v560_v45 }
 0x2d5   :  { %605 = vbcast.lane.b32.xlu0 %v603_v46, 256 }
 0x2d9   :  { %612 = vbcast.lane.b32.xlu0 %v610_v48, 256 }
 0x2dd   :  { %619 = vbcast.lane.b32.xlu0 %v617_v50, 256 }
 0x2e0   :  { %v1434_v51 = vpop.eup %1433 }
 0x2e1   :  { %v564_v52 = vmul.f32 %v1434_v51, %v1430_v32 }
 0x2e3   :  { %v624_v53 = vrot.slane %v564_v52, %v1616_v15  ;;  %v631_v54 = vrot.slane %v564_v52, %v1622_v17  ;;  %v638_v55 = vrot.slane %v564_v52, %v581_v13  ;;  %v645_v18 = vrot.slane %v564_v52, %v588_v40 }
 0x2e4   :  { %v652_v56 = vrot.slane %v564_v52, %v595_v42  ;;  %v659_v57 = vrot.slane %v564_v52, %v602_v44  ;;  %v666_v14 = vrot.slane %v564_v52, %v609_v47  ;;  %v673_v58 = vrot.slane %v564_v52, %v616_v49 }
 0x2e5   :  { %626 = vbcast.lane.b32.xlu1 %v624_v53, 256  ;;  %v683_v40 = vunpack.c.l.bf16 %v1576_v8  ;;  %v684_v42 = vunpack.c.h.bf16 %v1576_v8  ;;  %v688_v8 = vunpack.c.h.bf16 %v1592_v10 }
 0x2e9   :  { %633 = vbcast.lane.b32.xlu1 %v631_v54, 256 }
 0x2ed   :  { %640 = vbcast.lane.b32.xlu1 %v638_v55, 256 }
 0x2f1   :  { %647 = vbcast.lane.b32.xlu1 %v645_v18, 256 }
 0x2f5   :  { %654 = vbcast.lane.b32.xlu1 %v652_v56, 256 }
 0x2f9   :  { %661 = vbcast.lane.b32.xlu1 %v659_v57, 256 }
 0x2fd   :  { %668 = vbcast.lane.b32.xlu1 %v666_v14, 256 }
 0x301   :  { %675 = vbcast.lane.b32.xlu1 %v673_v58, 256 }
 0x337   :  { %v571_v61 = vpop.permute.xlu0 %570  ;;  %v578_v4 = vpop.permute.xlu1 %577 }
 0x338   :  { %v693_v3 = vmul.f32 %v677_v63, %v571_v61  ;;  %v694_v20 = vmul.f32 %v678_v2, %v578_v4 }
 0x33a   :  { %v709_v21 = vsel %vm125_vm0, %v693_v3, 0.0  ;;  %v716_v24 = vsel %vm125_vm0, %v694_v20, 0.0 }
 0x33b   :  { %v585_v62 = vpop.permute.xlu0 %584  ;;  %v710_v23 = vrot.slane %v709_v21, 4  ;;  %v717_v27 = vrot.slane %v716_v24, 4 }
 0x33c   :  { %v695_v26 = vmul.f32 %v679_v22, %v585_v62 }
 0x33d   :  { %v711_v29 = vadd.f32 %v710_v23, %v709_v21  ;;  %v718_v31 = vadd.f32 %v717_v27, %v716_v24  ;;  %v691_v27 = vunpack.c.l.bf16 %v1608_v12 }
 0x33e   :  { %v723_v30 = vsel %vm125_vm0, %v695_v26, 0.0 }
 0x33f   :  { %v592_v0 = vpop.permute.xlu0 %591  ;;  %v712_v32 = vrot.slane %v711_v29, 2  ;;  %v724_v38 = vrot.slane %v723_v30, 4  ;;  %v719_v13 = vrot.slane %v718_v31, 2 }
 0x340   :  { %v696_v39 = vmul.f32 %v680_v5, %v592_v0  ;;  %v690_v0 = vunpack.c.h.bf16 %v1600_v11 }
 0x341   :  { %v713_v41 = vadd.f32 %v712_v32, %v711_v29  ;;  %v725_v44 = vadd.f32 %v724_v38, %v723_v30  ;;  %v720_v50 = vadd.f32 %v719_v13, %v718_v31  ;;  %v692_v38 = vunpack.c.h.bf16 %v1608_v12 }
 0x342   :  { %v730_v9 = vsel %vm125_vm0, %v696_v39, 0.0 }
 0x343   :  { %v599_v16 = vpop.permute.xlu0 %598  ;;  %v714_v52 = vrot.slane %v713_v41, 1  ;;  %v726_v55 = vrot.slane %v725_v44, 2  ;;  %v731_v14 = vrot.slane %v730_v9, 4  ;;  %v721_v61 = vrot.slane %v720_v50, 1 }
 0x344   :  { %v697_v45 = vmul.f32 %v681_v33, %v599_v16 }
 0x345   :  { %v715_v20 = vadd.f32 %v714_v52, %v713_v41  ;;  %v727_v21 = vadd.f32 %v726_v55, %v725_v44  ;;  %v732_v24 = vadd.f32 %v731_v14, %v730_v9  ;;  %v722_v29 = vadd.f32 %v721_v61, %v720_v50 }
 0x346   :  { %v737_v18 = vsel %vm125_vm0, %v697_v45, 0.0 }
 0x347   :  { %v606_v25 = vpop.permute.xlu0 %605  ;;  %v738_v10 = vrot.slane %v737_v18, 4  ;;  %v821_v33 = vpack.c.bf16 %v715_v20, %v715_v20  ;;  %v733_v13 = vrot.slane %v732_v24, 2 }
 0x348   :  { %v698_v49 = vmul.f32 %v682_v36, %v606_v25 }
 0x349   :  { %v739_v5 = vadd.f32 %v738_v10, %v737_v18  ;;  %v1779_v50 = vunpack.c.l.b16 %v821_v33 }
 0x34a   :  { %v744_v58 = vsel %vm125_vm0, %v698_v49, 0.0 }
 0x34b   :  { %v613_v28 = vpop.permute.xlu0 %612  ;;  %v745_v22 = vrot.slane %v744_v58, 4  ;;  %v740_v45 = vrot.slane %v739_v5, 2 }
 0x34c   :  { %v699_v7 = vmul.f32 %v683_v40, %v613_v28 }
 0x34e   :  { %v751_v62 = vsel %vm125_vm0, %v699_v7, 0.0 }
 0x34f   :  { %v620_v46 = vpop.permute.xlu0 %619  ;;  %v752_v25 = vrot.slane %v751_v62, 4 }
 0x350   :  { %v700_v53 = vmul.f32 %v684_v42, %v620_v46  ;;  %v822_v42 = vpack.c.bf16 %v722_v29, %v722_v29 }
 0x351   :  { %v753_v39 = vadd.f32 %v752_v25, %v751_v62 }
 0x352   :  { %v758_v2 = vsel %vm125_vm0, %v700_v53, 0.0 }
 0x353   :  { %v759_v30 = vrot.slane %v758_v2, 4  ;;  %v754_v52 = vrot.slane %v753_v39, 2 }
 0x357   :  { %v627_v37 = vpop.permute.xlu1 %626 }
 0x358   :  { %v701_v47 = vmul.f32 %v685_v34, %v627_v37  ;;  %v728_v34 = vrot.slane %v727_v21, 1 }
 0x35a   :  { %v765_v56 = vsel %vm125_vm0, %v701_v47, 0.0  ;;  %v1781_v12 = vadd.f32 %v728_v34, %v727_v21 }
 0x35b   :  { %v634_v6 = vpop.permute.xlu1 %633  ;;  %v766_v3 = vrot.slane %v765_v56, 4 }
 0x35c   :  { %v702_v48 = vmul.f32 %v686_v35, %v634_v6  ;;  %v746_v35 = vadd.f32 %v745_v22, %v744_v58  ;;  %v760_v6 = vadd.f32 %v759_v30, %v758_v2  ;;  %v823_v61 = vpack.c.bf16 %v1781_v12, %v1781_v12 }
 0x35d   :  { %v767_v28 = vadd.f32 %v766_v3, %v765_v56  ;;  %v755_v2 = vadd.f32 %v754_v52, %v753_v39 }
 0x35e   :  { %v772_v51 = vsel %vm125_vm0, %v702_v48, 0.0  ;;  %v747_v9 = vrot.slane %v746_v35, 2  ;;  %v761_v55 = vrot.slane %v760_v6, 2 }
 0x35f   :  { %v641_v54 = vpop.permute.xlu1 %640  ;;  %v773_v19 = vrot.slane %v772_v51, 4  ;;  %v768_v46 = vrot.slane %v767_v28, 2 }
 0x360   :  { %v703_v57 = vmul.f32 %v687_v43, %v641_v54  ;;  %v748_v62 = vadd.f32 %v747_v9, %v746_v35 }
 0x361   :  { %v774_v26 = vadd.f32 %v773_v19, %v772_v51  ;;  %v734_v51 = vadd.f32 %v733_v13, %v732_v24  ;;  %v769_v14 = vadd.f32 %v768_v46, %v767_v28 }
 0x362   :  { %v779_v63 = vsel %vm125_vm0, %v703_v57, 0.0  ;;  %v741_v57 = vadd.f32 %v740_v45, %v739_v5  ;;  %v749_v30 = vrot.slane %v748_v62, 1 }
 0x363   :  { %v780_v4 = vrot.slane %v779_v63, 4  ;;  %v648_v16 = vpop.permute.xlu1 %647  ;;  %v775_v40 = vrot.slane %v774_v26, 2  ;;  %v735_v10 = vrot.slane %v734_v51, 1  ;;  %v770_v24 = vrot.slane %v769_v14, 1 }
 0x364   :  { %v704_v23 = vmul.f32 %v688_v8, %v648_v16  ;;  %v1783_v8 = vunpack.c.l.b16 %v822_v42  ;;  %v762_v16 = vadd.f32 %v761_v55, %v760_v6  ;;  %v750_v6 = vadd.f32 %v749_v30, %v748_v62 }
 0x365   :  { %v781_v31 = vadd.f32 %v780_v4, %v779_v63  ;;  %v776_v53 = vadd.f32 %v775_v40, %v774_v26  ;;  %v736_v28 = vadd.f32 %v735_v10, %v734_v51  ;;  %v771_v13 = vadd.f32 %v770_v24, %v769_v14 }
 0x366   :  { %v786_v11 = vsel %vm125_vm0, %v704_v23, 0.0  ;;  %v742_v23 = vrot.slane %v741_v57, 1  ;;  %v763_v33 = vrot.slane %v762_v16, 1 }
 0x367   :  { %v787_v32 = vrot.slane %v786_v11, 4  ;;  %v655_v37 = vpop.permute.xlu1 %654  ;;  %v782_v43 = vrot.slane %v781_v31, 2  ;;  %v777_v3 = vrot.slane %v776_v53, 1  ;;  %v824_v45 = vpack.c.bf16 %v736_v28, %v736_v28 }
 0x368   :  { %v705_v36 = vmul.f32 %v689_v60, %v655_v37  ;;  %v743_v42 = vadd.f32 %v742_v23, %v741_v57 }
 0x369   :  { %v788_v41 = vadd.f32 %v787_v32, %v786_v11  ;;  %v783_v18 = vadd.f32 %v782_v43, %v781_v31  ;;  %v778_v32 = vadd.f32 %v777_v3, %v776_v53 }
 0x36a   :  { %v793_v44 = vsel %vm125_vm0, %v705_v36, 0.0  ;;  %v825_v55 = vpack.c.bf16 %v743_v42, %v743_v42  ;;  %v1330_v42 = vld [vmem:[%s1910_s2] sm:$0xff]  }
 0x36b   :  { %v789_v47 = vrot.slane %v788_v41, 2  ;;  %v794_v48 = vrot.slane %v793_v44, 4  ;;  %v662_v49 = vpop.permute.xlu1 %661  ;;  %v784_v20 = vrot.slane %v783_v18, 1  ;;  %v830_v46 = vpack.c.bf16 %v778_v32, %v778_v32 }
 0x36c   :  { %v706_v7 = vmul.f32 %v690_v0, %v662_v49  ;;  %v764_v49 = vadd.f32 %v763_v33, %v762_v16  ;;  %v880_v16 = vsel %vm517_vm1, %v1783_v8, %v1779_v50  ;;  %v953_v33 = vld [vmem:[%s1912_s8] sm:$0xf] }
 0x36d   :  { %v795_v54 = vadd.f32 %v794_v48, %v793_v44  ;;  %v790_v58 = vadd.f32 %v789_v47, %v788_v41  ;;  %v785_v34 = vadd.f32 %v784_v20, %v783_v18  ;;  %v826_v18 = vpack.c.bf16 %v750_v6, %v750_v6  ;;  %v1331_v6 = vld [vmem:[%s1911_s10 + $0x70] ss:$8 sps:$4 sm:$0xff]  }
 0x36e   :  { %v800_v56 = vsel %vm125_vm0, %v706_v7, 0.0  ;;  %v829_v7 = vpack.c.bf16 %v771_v13, %v771_v13  ;;  %v873_v57 = vunpack.c.l.b16 %v830_v46  ;;  %v1342_v46 = vld [vmem:[%s1911_s10 + $0x44] ss:$8 sps:$4 sm:$0xff]  }
 0x36f   :  { %v796_v19 = vrot.slane %v795_v54, 2  ;;  %v669_v60 = vpop.permute.xlu1 %668  ;;  %v801_v63 = vrot.slane %v800_v56, 4  ;;  %v791_v25 = vrot.slane %v790_v58, 1  ;;  %v831_v12 = vpack.c.bf16 %v785_v34, %v785_v34 }
 0x370   :  { %v707_v0 = vmul.f32 %v691_v27, %v669_v60  ;;  %v756_v27 = vrot.slane %v755_v2, 1  ;;  %v867_v60 = vunpack.c.l.b16 %v824_v45  ;;  %v872_v10 = vunpack.c.l.b16 %v829_v7  ;;  %v1337_v45 = vld [vmem:[%s1911_s10 + $0x50] ss:$8 sps:$4 sm:$0xff]  }
 0x371   :  { %v797_v4 = vadd.f32 %v796_v19, %v795_v54  ;;  %v802_v21 = vadd.f32 %v801_v63, %v800_v56  ;;  %v792_v39 = vadd.f32 %v791_v25, %v790_v58  ;;  %v866_v54 = vunpack.c.l.b16 %v823_v61  ;;  %v1349_v7 = vld [vmem:[%s1911_s10 + $0x10] ss:$8 sps:$4 sm:$0xff]  }
 0x372   :  { %v807_v22 = vsel %vm125_vm0, %v707_v0, 0.0  ;;  %v757_v48 = vadd.f32 %v756_v27, %v755_v2  ;;  %v828_v63 = vpack.c.bf16 %v764_v49, %v764_v49  ;;  %v874_v0 = vunpack.c.l.b16 %v831_v12  ;;  %v1348_v49 = vld [vmem:[%s1911_s10 + $0x24] ss:$8 sps:$4 sm:$0xff]   ;;  %v1346_v12 = vld [vmem:[%s1911_s10 + $0x20] ss:$8 sps:$4 sm:$0xff]  }
 0x373   :  { %v808_v26 = vrot.slane %v807_v22, 4  ;;  %v676_v29 = vpop.permute.xlu1 %675  ;;  %v798_v31 = vrot.slane %v797_v4, 1  ;;  %v803_v11 = vrot.slane %v802_v21, 2  ;;  %v832_v51 = vpack.c.bf16 %v792_v39, %v792_v39 }
 0x374   :  { %v708_v5 = vmul.f32 %v692_v38, %v676_v29  ;;  %v827_v62 = vpack.c.bf16 %v757_v48, %v757_v48  ;;  %v868_v61 = vunpack.c.l.b16 %v825_v55  ;;  %v881_v25 = vsel %vm519_vm2, %v866_v54, %v880_v16  ;;  %v1343_v48 = vld [vmem:[%s1911_s10 + $0x30] ss:$8 sps:$4 sm:$0xff]   ;;  %v1269_v54 = vld [vmem:[%s1913_s7] ss:$0 sm:$0xff] }
 0x375   :  { %v809_v37 = vadd.f32 %v808_v26, %v807_v22  ;;  %v804_v35 = vadd.f32 %v803_v11, %v802_v21  ;;  %v799_v43 = vadd.f32 %v798_v31, %v797_v4  ;;  %v875_v2 = vunpack.c.l.b16 %v832_v51  ;;  %v1354_v51 = vld [vmem:[%s1911_s10 + $0x4] ss:$8 sps:$4 sm:$0xff]  }
 0x376   :  { %v814_v36 = vsel %vm125_vm0, %v708_v5, 0.0  ;;  %v869_v21 = vunpack.c.l.b16 %v826_v18  ;;  %v887_v22 = vsel %vm517_vm1, %v873_v57, %v872_v10  ;;  %v870_v26 = vunpack.c.l.b16 %v827_v62 }
 0x377   :  { %v810_v40 = vrot.slane %v809_v37, 2  ;;  %v815_v41 = vrot.slane %v814_v36, 4  ;;  %v805_v44 = vrot.slane %v804_v35, 1  ;;  %v833_v56 = vpack.c.bf16 %v799_v43, %v799_v43  ;;  %v1336_v43 = vld [vmem:[%s1911_s10 + $0x64] ss:$8 sps:$4 sm:$0xff]  }
 0x378   :  { %v888_v29 = vsel %vm519_vm2, %v874_v0, %v887_v22  ;;  %v882_v31 = vsel %vm521_vm3, %v867_v60, %v881_v25  ;;  %v871_v11 = vunpack.c.l.b16 %v828_v63  ;;  %v1273_v60 = vld [vmem:[%s1914_s9] ss:$0 sm:$0xff] }
 0x379   :  { %v811_v38 = vadd.f32 %v810_v40, %v809_v37  ;;  %v816_v47 = vadd.f32 %v815_v41, %v814_v36  ;;  %v806_v9 = vadd.f32 %v805_v44, %v804_v35  ;;  %v876_v20 = vunpack.c.l.b16 %v833_v56  ;;  %v1333_v41 = vld [vmem:[%s1911_s10 + $0x74] ss:$8 sps:$4 sm:$0xff]  }
 0x37a   :  { %v889_v5 = vsel %vm521_vm3, %v875_v2, %v888_v29  ;;  %v883_v50 = vsel %vm523_vm4, %v868_v61, %v882_v31  ;;  %v971_v40 = vsel %vm969_vm12, %v953_v33, 0  ;;  %v1339_v44 = vld [vmem:[%s1911_s10 + $0x54] ss:$8 sps:$4 sm:$0xff]  }
 0x37b   :  { %v812_v52 = vrot.slane %v811_v38, 1  ;;  %v817_v53 = vrot.slane %v816_v47, 2  ;;  %v834_v14 = vpack.c.bf16 %v806_v9, %v806_v9  ;;  %v890_v8 = vsel %vm523_vm4, %v876_v20, %v889_v5  ;;  %v1351_v9 = vld [vmem:[%s1911_s10 + $0x14] ss:$8 sps:$4 sm:$0xff]  }
 0x37c   :  { %v884_v32 = vsel %vm525_vm5, %v869_v21, %v883_v50 }
 0x37d   :  { %v813_v58 = vadd.f32 %v812_v52, %v811_v38  ;;  %v818_v19 = vadd.f32 %v817_v53, %v816_v47  ;;  %v877_v23 = vunpack.c.l.b16 %v834_v14  ;;  %v885_v34 = vsel %vm527_vm6, %v870_v26, %v884_v32  ;;  %v1340_v38 = vld [vmem:[%s1911_s10 + $0x40] ss:$8 sps:$4 sm:$0xff]   ;;  %v1345_v47 = vld [vmem:[%s1911_s10 + $0x34] ss:$8 sps:$4 sm:$0xff]  }
 0x37e   :  { %v886_v36 = vsel %vm529_vm7, %v871_v11, %v885_v34  ;;  %v1352_v52 = vld [vmem:[%s1911_s10] ss:$8 sps:$4 sm:$0xff]  }
 0x37f   :  { %v835_v3 = vpack.c.bf16 %v813_v58, %v813_v58  ;;  %v819_v4 = vrot.slane %v818_v19, 1  ;;  %v891_v37 = vsel %vm525_vm5, %v877_v23, %v890_v8 }
 0x381   :  { %v820_v24 = vadd.f32 %v819_v4, %v818_v19  ;;  %v878_v30 = vunpack.c.l.b16 %v835_v3  ;;  %v1032_v4 = vld [vmem:[%s1915_s11] sm:$0x3] }
 0x382   :  { %v1037_v16 = vrot.slane %v1032_v4, %v1616_v15  ;;  %v1041_v61 = vrot.slane %v1032_v4, %v1622_v17 }
 0x383   :  { %v836_v28 = vpack.c.bf16 %v820_v24, %v820_v24  ;;  %v892_v35 = vsel %vm527_vm6, %v878_v30, %v891_v37 }
 0x385   :  { %v879_v27 = vunpack.c.l.b16 %v836_v28  ;;  %v1185_v28 = vld [vmem:[%s1916_s12] sm:$0x3] }
 0x386   :  { %v1190_v32 = vrot.slane %v1185_v28, %v1616_v15  ;;  %v1194_v37 = vrot.slane %v1185_v28, %v1622_v17 }
 0x387   :  { %v893_v13 = vsel %vm529_vm7, %v879_v27, %v892_v35 }
 0x388   :  { %v894_v39 = vpack.c.b16 %v893_v13, %v886_v36 }
 0x38a   :  { %1302 = vmatmul.mubr.msk.bf16.vlgmr.msra.gmra.mxu1 %vm125_vm0, %v894_v39 }
 0x38b   :  { %1306 = vmatpush3.bf16.msra.mxu1 %v971_v40  ;;  %1307 = vmatprep.mubr.msk.bf16.mxu1 %vm1465_vm11, %v1464_v59  ;;  %v1334_v59 = vld [vmem:[%s1911_s10 + $0x60] ss:$8 sps:$4 sm:$0xff]  }
 0x38c   :  { %1124 = vmatprep.subr.bf16.mxu1 %v1333_v41 }
 0x392   :  { %1308 = vmatmul.mubr.msk.bf16.vlgmr.msra.gmra.mxu1 %vm542_vm9, %v1330_v42 }
 0x393   :  { %1125 = vmatpush1.bf16.msra.mxu1 %v1331_v6  ;;  %1156 = vmatprep.mubr.bf16.mxu1 %v1463_v1 }
 0x394   :  { %1126 = vmatprep.subr.bf16.mxu1 %v1336_v43 }
 0x397   :  { %1127 = vmatpush1.bf16.msra.mxu1 %v1334_v59 }
 0x398   :  { %1128 = vmatprep.subr.bf16.mxu1 %v1339_v44 }
 0x39b   :  { %1129 = vmatpush1.bf16.msra.mxu1 %v1337_v45 }
 0x39c   :  { %1130 = vmatprep.subr.bf16.mxu1 %v1342_v46 }
 0x39f   :  { %1131 = vmatpush1.bf16.msra.mxu1 %v1340_v38 }
 0x3a0   :  { %1132 = vmatprep.subr.bf16.mxu1 %v1345_v47 }
 0x3a3   :  { %1133 = vmatpush1.bf16.msra.mxu1 %v1343_v48 }
 0x3a4   :  { %1134 = vmatprep.subr.bf16.mxu1 %v1348_v49 }
 0x3a7   :  { %1135 = vmatpush1.bf16.msra.mxu1 %v1346_v12 }
 0x3a8   :  { %1136 = vmatprep.subr.bf16.mxu1 %v1351_v9 }
 0x3ab   :  { %1137 = vmatpush1.bf16.msra.mxu1 %v1349_v7 }
 0x3ac   :  { %1138 = vmatprep.subr.bf16.mxu1 %v1354_v51 }
 0x3af   :  { %1139 = vmatpush1.bf16.msra.mxu1 %v1352_v52 }
 0x44a   :  { %v944_v53 = vpop.f32.mrf.mxu1 }
 0x44b   :  { %v1868_v56 = vadd.f32 %v1269_v54, %v944_v53 }
 0x44c   :  { %v1303_v55 = vpop.f32.mrf.mxu1 }
 0x44e   :  { %v947_v18 = vpop.f32.mrf.mxu1 }
 0x44f   :  { %v1870_v57 = vadd.f32 %v1269_v54, %v947_v18 }
 0x450   :  { %v1304_v14 = vpop.f32.mrf.mxu1 }
 0x451   :  { %v1014_v58 = vpack.c.bf16 %v1870_v57, %v1868_v56 }
 0x452   :  { %v1007_v19 = vpop.f32.mrf.mxu1 }
 0x453   :  { %1157 = vmatmul.mubr.bf16.vlgmr.msra.gmra.mxu1 %v1014_v58  ;;  %v1878_v0 = vadd.f32 %v1273_v60, %v1007_v19 }
 0x454   :  { %v1309_v62 = vpop.f32.mrf.mxu1  ;;  %1166 = vmatprep.mubr.bf16.mxu1 %v1463_v1 }
 0x456   :  { %v1010_v63 = vpop.f32.mrf.mxu1 }
 0x457   :  { %v1880_v10 = vadd.f32 %v1273_v60, %v1010_v63 }
 0x458   :  { %v1310_v2 = vpop.f32.mrf.mxu1 }
 0x459   :  { %v1015_v3 = vpack.c.bf16 %v1880_v10, %v1878_v0 }
 0x45b   :  { %1167 = vmatmul.mubr.bf16.gmra.mxu1 %v1015_v3 }
 0x513   :  { %v1158_v20 = vpop.f32.mrf.mxu1 }
 0x514   :  { %v1159_v1 = vadd.f32 %v1158_v20, %v1037_v16 }
 0x515   :  { %v1160_v21 = vpop.f32.mrf.mxu1 }
 0x516   :  { %1435 = vtanh.f32 %v1159_v1  ;;  %v1161_v22 = vadd.f32 %v1160_v21, %v1041_v61 }
 0x517   :  { %v1162_v23 = vpop.f32.mrf.mxu1 }
 0x518   :  { %1437 = vtanh.f32 %v1161_v22  ;;  %v1163_v24 = vadd.f32 %v1162_v23, %v1037_v16 }
 0x519   :  { %v1164_v25 = vpop.f32.mrf.mxu1 }
 0x51a   :  { %1439 = vtanh.f32 %v1163_v24  ;;  %v1165_v26 = vadd.f32 %v1164_v25, %v1041_v61 }
 0x51b   :  { %v1168_v29 = vpop.f32.mrf.mxu1 }
 0x51c   :  { %1441 = vtanh.f32 %v1165_v26  ;;  %v1169_v30 = vadd.f32 %v1168_v29, %v1037_v16 }
 0x51d   :  { %v1170_v31 = vpop.f32.mrf.mxu1 }
 0x51e   :  { %1443 = vtanh.f32 %v1169_v30  ;;  %v1171_v11 = vadd.f32 %v1170_v31, %v1041_v61 }
 0x51f   :  { %v1172_v5 = vpop.f32.mrf.mxu1 }
 0x520   :  { %1445 = vtanh.f32 %v1171_v11  ;;  %v1173_v50 = vadd.f32 %v1172_v5, %v1037_v16 }
 0x521   :  { %v1174_v8 = vpop.f32.mrf.mxu1 }
 0x522   :  { %1447 = vtanh.f32 %v1173_v50  ;;  %v1175_v27 = vadd.f32 %v1174_v8, %v1041_v61 }
 0x523   :  { %v1436_v33 = vpop.eup %1435 }
 0x524   :  { %1449 = vtanh.f32 %v1175_v27  ;;  %v1197_v35 = vmul.f32 %v1436_v33, %v1190_v32 }
 0x525   :  { %v1438_v34 = vpop.eup %1437 }
 0x526   :  { %v1198_v36 = vmul.f32 %v1438_v34, %v1194_v37 }
 0x527   :  { %v1440_v13 = vpop.eup %1439 }
 0x528   :  { %v1205_v39 = vadd.f32 %v1198_v36, %v1197_v35  ;;  %v1199_v41 = vmul.f32 %v1440_v13, %v1190_v32 }
 0x529   :  { %v1442_v40 = vpop.eup %1441 }
 0x52a   :  { %1206 = vadd.xlane.f32.xlu0 %v1205_v39  ;;  %v1200_v42 = vmul.f32 %v1442_v40, %v1194_v37 }
 0x52b   :  { %v1444_v6 = vpop.eup %1443 }
 0x52c   :  { %v1208_v43 = vadd.f32 %v1200_v42, %v1199_v41  ;;  %v1201_v44 = vmul.f32 %v1444_v6, %v1190_v32 }
 0x52d   :  { %v1446_v59 = vpop.eup %1445 }
 0x52e   :  { %1209 = vadd.xlane.f32.xlu1 %v1208_v43  ;;  %v1202_v45 = vmul.f32 %v1446_v59, %v1194_v37 }
 0x52f   :  { %v1448_v15 = vpop.eup %1447 }
 0x530   :  { %v1211_v46 = vadd.f32 %v1202_v45, %v1201_v44  ;;  %v1203_v38 = vmul.f32 %v1448_v15, %v1190_v32 }
 0x531   :  { %v1450_v17 = vpop.eup %1449 }
 0x532   :  { %1212 = vadd.xlane.f32.xlu0 %v1211_v46  ;;  %v1204_v47 = vmul.f32 %v1450_v17, %v1194_v37 }
 0x534   :  { %v1214_v48 = vadd.f32 %v1204_v47, %v1203_v38 }
 0x536   :  { %1215 = vadd.xlane.f32.xlu0 %v1214_v48 }
 0x5b3   :  { %v1207_v49 = vpop.xlane.xlu0 %1206 }
 0x5b7   :  { %v1210_v52 = vpop.xlane.xlu1 %1209 }
 0x5bb   :  { %v1213_v12 = vpop.xlane.xlu0 %1212 }
 0x5bc   :  { %v1217_v9 = vmax.f32 %v1207_v49, %v1213_v12 }
 0x5be   :  { %v1219_v7 = vsub.f32 %v1207_v49, %v1217_v9  ;;  %v1225_v51 = vsub.f32 %v1213_v12, %v1217_v9 }
 0x5bf   :  { %v1216_v53 = vpop.xlane.xlu0 %1215 }
 0x5c0   :  { %v1221_v54 = vmul.f32 1.442695, %v1219_v7  ;;  %v1227_v55 = vmul.f32 1.442695, %v1225_v51  ;;  %v1218_v18 = vmax.f32 %v1210_v52, %v1216_v53 }
 0x5c2   :  { %1451 = vpow2.f32 %v1221_v54  ;;  %v1220_v14 = vsub.f32 %v1210_v52, %v1218_v18  ;;  %v1226_v58 = vsub.f32 %v1216_v53, %v1218_v18 }
 0x5c3   :  { %1453 = vpow2.f32 %v1227_v55 }
 0x5c4   :  { %v1223_v19 = vmul.f32 1.442695, %v1220_v14  ;;  %v1229_v60 = vmul.f32 1.442695, %v1226_v58 }
 0x5c6   :  { %1455 = vpow2.f32 %v1223_v19 }
 0x5c7   :  { %1457 = vpow2.f32 %v1229_v60 }
 0x5cf   :  { %v1452_v62 = vpop.eup %1451 }
 0x5d0   :  { %v1454_v63 = vpop.eup %1453  ;;  %v1231_v61 = vmul.f32 %v1452_v62, %v1868_v56 }
 0x5d1   :  { %v1237_v2 = vadd.f32 %v1454_v63, %v1452_v62  ;;  %v1233_v20 = vmul.f32 %v1454_v63, %v1878_v0 }
 0x5d3   :  { %v1456_v3 = vpop.eup %1455  ;;  %1459 = vrcp.f32 %v1237_v2  ;;  %v1235_v1 = vadd.f32 %v1233_v20, %v1231_v61 }
 0x5d4   :  { %v1458_v4 = vpop.eup %1457  ;;  %v1232_v21 = vmul.f32 %v1456_v3, %v1870_v57 }
 0x5d5   :  { %v1238_v16 = vadd.f32 %v1458_v4, %v1456_v3  ;;  %v1234_v22 = vmul.f32 %v1458_v4, %v1880_v10 }
 0x5d7   :  { %1461 = vrcp.f32 %v1238_v16  ;;  %v1236_v25 = vadd.f32 %v1234_v22, %v1232_v21 }
 0x5e0   :  { %v1460_v23 = vpop.eup %1459 }
 0x5e1   :  { %v1240_v24 = vmul.f32 %v1460_v23, %v1235_v1 }
 0x5e3   :  { %1243 = vst [vmem:[%s1917_s13] sm:$0xff] %v1240_v24 }
 0x5e4   :  { %v1462_v26 = vpop.eup %1461 }
 0x5e5   :  { %v1242_v29 = vmul.f32 %v1462_v26, %v1236_v25 }
 0x5e7   :  { %1244 = vst [vmem:[%s1917_s13 + $0x8] sm:$0xff] %v1242_v29 }

// kernel: small_naml_forward.3
= control target key start
LH: loop header
LB: loop body
LE: loop exit
PB: predicated region body
PF: predicated region fallthrough
CT: control target
= control target key end

     0   :  { %v2404_v1 = vmov 0   ;;  %v61_v10 = vlaneseq  ;;  %v2405_v11 = vmov 1983009808   ;;  %vm321_vm0 = vcmask 1043456   ;;  %s3459_s3 = inlined_call_operand.vmem [shape: bf16[128,256], index: 3, kind: input, shape index: {}]   ;;  %s3460_s0 = inlined_call_operand.vmem [shape: bf16[8,4,128], index: 0, kind: input, shape index: {}]   ;;  %s3461_s4 = inlined_call_operand.vmem [shape: f32[1,256], index: 4, kind: input, shape index: {}]   ;;  %s3462_s5 = inlined_call_operand.vmem [shape: f32[1,256], index: 5, kind: input, shape index: {}]   ;;  %s3463_s1 = inlined_call_operand.vmem [shape: f32[8,4], index: 1, kind: input, shape index: {}]   ;;  %s3464_s2 = inlined_call_operand.vmem [shape: bf16[8,128,128], index: 2, kind: input, shape index: {}]   ;;  %s3465_s6 = inlined_call_operand.vmem [shape: f32[8,128], index: 6, kind: output, shape index: {}]  }
   0x1   :  { %v2358_v0 = vld [vmem:[%s3459_s3 + $0x74] ss:$8 sps:$4 sm:$0xff]   ;;  %204 = vmatprep.mubr.bf16.mxu0 %v2404_v1  ;;  %214 = vmatprep.mubr.bf16.mxu1 %v2404_v1  ;;  %v2360_v2 = vld [vmem:[%s3459_s3 + $0x70] ss:$8 sps:$4 sm:$0xff]   ;;  %v2361_v3 = vld [vmem:[%s3459_s3 + $0x64] ss:$8 sps:$4 sm:$0xff]   ;;  %v59_v12 = vunpack.c.l.s4 %v2405_v11 }
   0x2   :  { %172 = vmatprep.subr.bf16.mxu0 %v2358_v0  ;;  %2340 = vmatprep.subr.bf16.mxu1 %v2358_v0  ;;  %v2363_v4 = vld [vmem:[%s3459_s3 + $0x60] ss:$8 sps:$4 sm:$0xff]   ;;  %v2364_v5 = vld [vmem:[%s3459_s3 + $0x54] ss:$8 sps:$4 sm:$0xff]   ;;  %v2366_v6 = vld [vmem:[%s3459_s3 + $0x50] ss:$8 sps:$4 sm:$0xff]  }
   0x3   :  { %173 = vmatpush1.bf16.msra.mxu0 %v2360_v2  ;;  %2348 = vmatpush1.bf16.msra.mxu1 %v2360_v2  ;;  %v2367_v7 = vld [vmem:[%s3459_s3 + $0x44] ss:$8 sps:$4 sm:$0xff]   ;;  %v2369_v8 = vld [vmem:[%s3459_s3 + $0x40] ss:$8 sps:$4 sm:$0xff]   ;;  %v2370_v9 = vld [vmem:[%s3459_s3 + $0x34] ss:$8 sps:$4 sm:$0xff]   ;;  %v60_v19 = vunpack.c.0.s8 %v59_v12 }
   0x4   :  { %174 = vmatprep.subr.bf16.mxu0 %v2361_v3  ;;  %2341 = vmatprep.subr.bf16.mxu1 %v2361_v3  ;;  %v2372_v13 = vld [vmem:[%s3459_s3 + $0x30] ss:$8 sps:$4 sm:$0xff]   ;;  %v2373_v14 = vld [vmem:[%s3459_s3 + $0x24] ss:$8 sps:$4 sm:$0xff]   ;;  %v2475_v15 = vshrl.u32 %v61_v10, 7  ;;  %vm406_vm1 = vcmask 1041409  }
   0x5   :  { %v2375_v16 = vld [vmem:[%s3459_s3 + $0x20] ss:$8 sps:$4 sm:$0xff]   ;;  %v2493_v20 = vld [vmem:[%s3460_s0 + $0x4] sm:$0x3]  ;;  %v2498_v21 = vld [vmem:[%s3460_s0 + $0x6] sm:$0x3] }
   0x6   :  { %v2483_v17 = vld [vmem:[%s3460_s0] sm:$0x3]  ;;  %v2488_v18 = vld [vmem:[%s3460_s0 + $0x2] sm:$0x3]  ;;  %v2503_v22 = vld [vmem:[%s3460_s0 + $0x8] sm:$0x3]  ;;  %v63_v27 = vsub.s32 %v60_v19, %v2475_v15  ;;  %v57_v29 = vcombine.low %v2493_v20, %v2498_v21 }
   0x7   :  { %175 = vmatpush1.bf16.msra.mxu0 %v2363_v4  ;;  %2349 = vmatpush1.bf16.msra.mxu1 %v2363_v4  ;;  %v2508_v23 = vld [vmem:[%s3460_s0 + $0xa] sm:$0x3]  ;;  %v2513_v24 = vld [vmem:[%s3460_s0 + $0xc] sm:$0x3]  ;;  %v2518_v25 = vld [vmem:[%s3460_s0 + $0xe] sm:$0x3]  ;;  %v56_v28 = vcombine.low %v2483_v17, %v2488_v18 }
   0x8   :  { %176 = vmatprep.subr.bf16.mxu0 %v2364_v5  ;;  %2342 = vmatprep.subr.bf16.mxu1 %v2364_v5  ;;  %v2376_v26 = vld [vmem:[%s3459_s3 + $0x14] ss:$8 sps:$4 sm:$0xff]   ;;  %v73_v30 = vcombine.low %v2503_v22, %v2508_v23  ;;  %v74_v31 = vcombine.low %v2513_v24, %v2518_v25  ;;  %v2378_v32 = vld [vmem:[%s3459_s3 + $0x10] ss:$8 sps:$4 sm:$0xff]   ;;  %v2379_v33 = vld [vmem:[%s3459_s3 + $0x4] ss:$8 sps:$4 sm:$0xff]   ;;  %v71_v35 = vrot.slane %v57_v29, %v63_v27 }
   0x9   :  { %v64_v34 = vrot.slane %v56_v28, %v63_v27  ;;  %v2381_v38 = vld [vmem:[%s3459_s3] ss:$8 sps:$4 sm:$0xff]   ;;  %v2542_v41 = vsub.s32 0, %v2475_v15  ;;  %v2545_v42 = vsub.s32 1, %v2475_v15  ;;  %vm3471_vm2 = vcmask 1042434  }
   0xa   :  { %v81_v36 = vrot.slane %v73_v30, %v63_v27  ;;  %v88_v37 = vrot.slane %v74_v31, %v63_v27  ;;  %v249_v43 = vld [vmem:[%s3461_s4] sm:$0x3]  ;;  %vm3470_vm3 = vcmask 1043459   ;;  %vm3469_vm4 = vcmask 1044484  }
   0xb   :  { %177 = vmatpush1.bf16.msra.mxu0 %v2366_v6  ;;  %2350 = vmatpush1.bf16.msra.mxu1 %v2366_v6  ;;  %v72_v39 = vcombine.low %v64_v34, %v71_v35  ;;  %v254_v44 = vrot.slane %v249_v43, %v2542_v41  ;;  %v258_v45 = vrot.slane %v249_v43, %v2545_v42  ;;  %vm3468_vm5 = vcmask 1045509  }
   0xc   :  { %178 = vmatprep.subr.bf16.mxu0 %v2367_v7  ;;  %2343 = vmatprep.subr.bf16.mxu1 %v2367_v7  ;;  %v89_v40 = vcombine.low %v81_v36, %v88_v37  ;;  %v277_v7 = vld [vmem:[%s3462_s5] sm:$0x3]  ;;  %vm3467_vm6 = vcmask 1046534   ;;  %vm3466_vm7 = vcmask 1047559   ;;  %vm422_vm9 = vcmask 31744  }
   0xd   :  { %v259_v48 = vcombine.low %v254_v44, %v258_v45  ;;  %vm1339_vm10 = vcmask 130112   ;;  %vm1346_vm11 = vcmask 195712   ;;  %vm1353_vm12 = vcmask 261312  }
   0xe   :  { %vm1360_vm13 = vcmask 326912   ;;  %vm1367_vm14 = vcmask 392512   ;;  %vm1374_vm15 = vcmask 458112  }
   0xf   :  { %179 = vmatpush1.bf16.msra.mxu0 %v2369_v8  ;;  %2351 = vmatpush1.bf16.msra.mxu1 %v2369_v8  ;;  %v282_v8 = vrot.slane %v277_v7, %v2542_v41 }
  0x10   :  { %180 = vmatprep.subr.bf16.mxu0 %v2370_v9  ;;  %2344 = vmatprep.subr.bf16.mxu1 %v2370_v9  ;;  %v286_v9 = vrot.slane %v277_v7, %v2545_v42  ;;  %v2574_v7 = vand.u32 127, %v61_v10 }
  0x12   :  { %v287_v11 = vcombine.low %v282_v8, %v286_v9 }
  0x13   :  { %181 = vmatpush1.bf16.msra.mxu0 %v2372_v13  ;;  %2352 = vmatpush1.bf16.msra.mxu1 %v2372_v13 }
  0x14   :  { %182 = vmatprep.subr.bf16.mxu0 %v2373_v14  ;;  %2345 = vmatprep.subr.bf16.mxu1 %v2373_v14 }
  0x17   :  { %183 = vmatpush1.bf16.msra.mxu0 %v2375_v16  ;;  %2353 = vmatpush1.bf16.msra.mxu1 %v2375_v16 }
  0x18   :  { %184 = vmatprep.subr.bf16.mxu0 %v2376_v26  ;;  %2346 = vmatprep.subr.bf16.mxu1 %v2376_v26 }
  0x1b   :  { %185 = vmatpush1.bf16.msra.mxu0 %v2378_v32  ;;  %2354 = vmatpush1.bf16.msra.mxu1 %v2378_v32 }
  0x1c   :  { %186 = vmatprep.subr.bf16.mxu0 %v2379_v33  ;;  %2347 = vmatprep.subr.bf16.mxu1 %v2379_v33 }
  0x1f   :  { %187 = vmatpush1.bf16.msra.mxu0 %v2381_v38  ;;  %2355 = vmatpush1.bf16.msra.mxu1 %v2381_v38 }
  0x22   :  { %205 = vmatmul.mubr.bf16.vlgmr.msra.gmra.mxu0 %v72_v39  ;;  %215 = vmatmul.mubr.bf16.vlgmr.msra.gmra.mxu1 %v89_v40 }
  0xe2   :  { %v206_v46 = vpop.f32.mrf.mxu0  ;;  %v216_v47 = vpop.f32.mrf.mxu1 }
  0xe4   :  { %v208_v49 = vpop.f32.mrf.mxu0  ;;  %v218_v50 = vpop.f32.mrf.mxu1 }
  0xe5   :  { %v233_v51 = vcombine.low %v206_v46, %v208_v49  ;;  %v234_v52 = vcombine.high %v206_v46, %v208_v49  ;;  %v237_v53 = vcombine.low %v216_v47, %v218_v50  ;;  %v238_v54 = vcombine.high %v216_v47, %v218_v50 }
  0xe6   :  { %v210_v55 = vpop.f32.mrf.mxu0  ;;  %v220_v56 = vpop.f32.mrf.mxu1 }
  0xe7   :  { %v261_v57 = vadd.f32 %v259_v48, %v233_v51  ;;  %v262_v58 = vadd.f32 %v259_v48, %v234_v52  ;;  %v265_v59 = vadd.f32 %v259_v48, %v237_v53  ;;  %v266_v60 = vadd.f32 %v259_v48, %v238_v54 }
  0xe8   :  { %v212_v61 = vpop.f32.mrf.mxu0  ;;  %v222_v62 = vpop.f32.mrf.mxu1 }
  0xe9   :  { %2382 = vtanh.f32 %v261_v57  ;;  %v235_v63 = vcombine.low %v210_v55, %v212_v61  ;;  %v236_v0 = vcombine.high %v210_v55, %v212_v61  ;;  %v239_v1 = vcombine.low %v220_v56, %v222_v62 }
  0xea   :  { %2384 = vtanh.f32 %v262_v58  ;;  %v240_v2 = vcombine.high %v220_v56, %v222_v62 }
  0xeb   :  { %2386 = vtanh.f32 %v265_v59  ;;  %v263_v3 = vadd.f32 %v259_v48, %v235_v63  ;;  %v264_v4 = vadd.f32 %v259_v48, %v236_v0  ;;  %v267_v5 = vadd.f32 %v259_v48, %v239_v1 }
  0xec   :  { %2388 = vtanh.f32 %v266_v60  ;;  %v268_v6 = vadd.f32 %v259_v48, %v240_v2 }
  0xed   :  { %2390 = vtanh.f32 %v263_v3 }
  0xee   :  { %2392 = vtanh.f32 %v264_v4 }
  0xef   :  { %2394 = vtanh.f32 %v267_v5 }
  0xf0   :  { %2396 = vtanh.f32 %v268_v6 }
  0xf6   :  { %v2383_v12 = vpop.eup %2382 }
  0xf7   :  { %v2385_v13 = vpop.eup %2384  ;;  %v289_v14 = vmul.f32 %v2383_v12, %v287_v11 }
  0xf8   :  { %v2387_v16 = vpop.eup %2386  ;;  %v290_v19 = vmul.f32 %v2385_v13, %v287_v11 }
  0xf9   :  { %v2389_v26 = vpop.eup %2388  ;;  %v305_v27 = vcombine.high %v289_v14, %v289_v14  ;;  %v293_v28 = vmul.f32 %v2387_v16, %v287_v11  ;;  %v322_v33 = vsel %vm321_vm0, %v289_v14, 0.0 }
  0xfa   :  { %v2391_v29 = vpop.eup %2390  ;;  %v294_v30 = vmul.f32 %v2389_v26, %v287_v11  ;;  %v306_v31 = vcombine.high %v290_v19, %v290_v19  ;;  %v327_v50 = vsel %vm321_vm0, %v290_v19, 0.0 }
  0xfb   :  { %v2393_v32 = vpop.eup %2392  ;;  %v323_v34 = vsel %vm321_vm0, %v305_v27, 0.0  ;;  %v291_v35 = vmul.f32 %v2391_v29, %v287_v11  ;;  %v309_v44 = vcombine.high %v293_v28, %v293_v28  ;;  %v342_v59 = vsel %vm321_vm0, %v293_v28, 0.0 }
  0xfc   :  { %v2395_v36 = vpop.eup %2394  ;;  %v310_v37 = vcombine.high %v294_v30, %v294_v30  ;;  %v324_v38 = vadd.f32 %v323_v34, %v322_v33  ;;  %v328_v40 = vsel %vm321_vm0, %v306_v31, 0.0  ;;  %v347_v45 = vsel %vm321_vm0, %v294_v30, 0.0  ;;  %v362_v33 = vld [vmem:[%s3463_s1] sm:$0xff] }
  0xfd   :  { %v2397_v39 = vpop.eup %2396  ;;  %v307_v43 = vcombine.high %v291_v35, %v291_v35  ;;  %v292_v47 = vmul.f32 %v2393_v32, %v287_v11  ;;  %v295_v48 = vmul.f32 %v2395_v36, %v287_v11  ;;  %v329_v52 = vadd.f32 %v328_v40, %v327_v50 }
  0xfe   :  { %v348_v46 = vsel %vm321_vm0, %v310_v37, 0.0  ;;  %325 = vadd.xlane.f32.xlu0 %v324_v38  ;;  %v332_v53 = vsel %vm321_vm0, %v291_v35, 0.0  ;;  %v296_v55 = vmul.f32 %v2397_v39, %v287_v11  ;;  %v343_v57 = vsel %vm321_vm0, %v309_v44, 0.0 }
  0xff   :  { %v349_v49 = vadd.f32 %v348_v46, %v347_v45  ;;  %v333_v51 = vsel %vm321_vm0, %v307_v43, 0.0  ;;  %v308_v54 = vcombine.high %v292_v47, %v292_v47  ;;  %v311_v58 = vcombine.high %v295_v48, %v295_v48 }
 0x100   :  { %v334_v56 = vadd.f32 %v333_v51, %v332_v53  ;;  %v344_v60 = vadd.f32 %v343_v57, %v342_v59  ;;  %v312_v62 = vcombine.high %v296_v55, %v296_v55  ;;  %v337_v0 = vsel %vm321_vm0, %v292_v47, 0.0 }
 0x101   :  { %350 = vadd.xlane.f32.xlu1 %v349_v49  ;;  %v338_v61 = vsel %vm321_vm0, %v308_v54, 0.0  ;;  %v353_v63 = vsel %vm321_vm0, %v311_v58, 0.0  ;;  %v352_v2 = vsel %vm321_vm0, %v295_v48, 0.0  ;;  %v357_v5 = vsel %vm321_vm0, %v296_v55, 0.0 }
 0x102   :  { %330 = vadd.xlane.f32.xlu0 %v329_v52  ;;  %v339_v1 = vadd.f32 %v338_v61, %v337_v0  ;;  %v354_v3 = vadd.f32 %v353_v63, %v352_v2  ;;  %v358_v4 = vsel %vm321_vm0, %v312_v62, 0.0  ;;  %v2578_v11 = vsub.s32 %v2574_v7, %v2475_v15 }
 0x103   :  { %v359_v6 = vadd.f32 %v358_v4, %v357_v5  ;;  %vm363_vm8 = vcmp.gt.f32.partialorder %v362_v33, 0.0  ;;  %v464_v57 = vsub.s32 4, %v2475_v15  ;;  %v478_v61 = vsub.s32 6, %v2475_v15 }
 0x104   :  { %v485_v0 = vsub.s32 7, %v2475_v15  ;;  %v490_v2 = vunpack.c.l.bf16 %v2483_v17 }
 0x105   :  { %335 = vadd.xlane.f32.xlu1 %v334_v56  ;;  %v450_v56 = vsub.s32 2, %v2475_v15 }
 0x106   :  { %345 = vadd.xlane.f32.xlu0 %v344_v60  ;;  %v457_v60 = vsub.s32 3, %v2475_v15 }
 0x109   :  { %340 = vadd.xlane.f32.xlu1 %v339_v1 }
 0x10a   :  { %355 = vadd.xlane.f32.xlu0 %v354_v3 }
 0x10d   :  { %360 = vadd.xlane.f32.xlu1 %v359_v6 }
 0x187   :  { %v326_v8 = vpop.xlane.xlu0 %325 }
 0x188   :  { %v377_v16 = vrot.slane %v326_v8, %v2578_v11 }
 0x18a   :  { %v351_v9 = vpop.xlane.xlu1 %350 }
 0x18b   :  { %v331_v12 = vpop.xlane.xlu0 %330  ;;  %v397_v34 = vrot.slane %v351_v9, %v2578_v11 }
 0x18c   :  { %v381_v13 = vrot.slane %v331_v12, %v2578_v11 }
 0x18e   :  { %v336_v14 = vpop.xlane.xlu1 %335  ;;  %v407_v27 = vsel %vm406_vm1, %v381_v13, %v377_v16  ;;  %v491_v13 = vunpack.c.l.bf16 %v2488_v18  ;;  %v2277_v18 = vld [vmem:[%s3464_s2 + $0x8] sm:$0xff]  }
 0x18f   :  { %v346_v19 = vpop.xlane.xlu0 %345  ;;  %v385_v26 = vrot.slane %v336_v14, %v2578_v11  ;;  %v2022_v14 = vld [vmem:[%s3464_s2] sm:$0xff]  }
 0x190   :  { %v393_v10 = vrot.slane %v346_v19, %v2578_v11 }
 0x191   :  { %v409_v31 = vsel %vm3471_vm2, %v385_v26, %v407_v27  ;;  %v2024_v27 = vunpack.c.h.bf16 %v2022_v14  ;;  %vm1437_vm2 = vcmask 1048512  }
 0x192   :  { %v341_v28 = vpop.xlane.xlu1 %340 }
 0x193   :  { %v389_v29 = vrot.slane %v341_v28, %v2578_v11  ;;  %v356_v30 = vpop.xlane.xlu0 %355  ;;  %v2278_v28 = vld [vmem:[%s3464_s2 + $0x10] sm:$0xff]  }
 0x194   :  { %v401_v32 = vrot.slane %v356_v30, %v2578_v11 }
 0x195   :  { %v411_v35 = vsel %vm3470_vm3, %v389_v29, %v409_v31  ;;  %v2032_v31 = vunpack.c.h.bf16 %v2278_v28  ;;  %vm1430_vm3 = vcmask 982912  }
 0x196   :  { %v413_v36 = vsel %vm3469_vm4, %v393_v10, %v411_v35  ;;  %v361_v37 = vpop.xlane.xlu1 %360  ;;  %v2023_v10 = vunpack.c.l.bf16 %v2022_v14  ;;  %v2027_v35 = vunpack.c.l.bf16 %v2277_v18  ;;  %vm1423_vm4 = vcmask 917312  }
 0x197   :  { %v405_v38 = vrot.slane %v361_v37, %v2578_v11  ;;  %v415_v39 = vsel %vm3468_vm5, %v397_v34, %v413_v36  ;;  %v2279_v36 = vld [vmem:[%s3464_s2 + $0x18] sm:$0xff]   ;;  %vm1416_vm5 = vcmask 851712  }
 0x198   :  { %v417_v40 = vsel %vm3467_vm6, %v401_v32, %v415_v39  ;;  %v2036_v39 = vunpack.c.h.bf16 %v2279_v36  ;;  %vm1409_vm6 = vcmask 786112  }
 0x199   :  { %v419_v43 = vsel %vm3466_vm7, %v405_v38, %v417_v40  ;;  %vm1402_vm7 = vcmask 720512  }
 0x19a   :  { %v421_v44 = vsel %vm363_vm8, %v419_v43, -1e+30  ;;  %v2028_v43 = vunpack.c.h.bf16 %v2277_v18  ;;  %vm1388_vm8 = vcmask 589312  }
 0x19b   :  { %v423_v45 = vsel %vm422_vm9, %v421_v44, -inf }
 0x19c   :  { %424 = vmax.xlane.f32.xlu0 %v423_v45 }
 0x225   :  { %v425_v46 = vpop.xlane.xlu0 %424 }
 0x226   :  { %v426_v47 = vsub.f32 %v421_v44, %v425_v46  ;;  %v2280_v44 = vld [vmem:[%s3464_s2 + $0x20] sm:$0xff]  }
 0x228   :  { %v427_v48 = vmul.f32 1.442695, %v426_v47 }
 0x22a   :  { %2398 = vpow2.f32 %v427_v48 }
 0x237   :  { %v2399_v49 = vpop.eup %2398 }
 0x238   :  { %v429_v50 = vsel %vm422_vm9, %v2399_v49, 0.0  ;;  %vm1395_vm9 = vcmask 654912  }
 0x239   :  { %430 = vadd.xlane.f32.xlu1 %v429_v50 }
 0x2c2   :  { %v431_v51 = vpop.xlane.xlu1 %430 }
 0x2c3   :  { %2400 = vrcp.f32 %v431_v51  ;;  %v2031_v51 = vunpack.c.l.bf16 %v2278_v28 }
 0x2d0   :  { %v2401_v52 = vpop.eup %2400 }
 0x2d1   :  { %v433_v53 = vmul.f32 %v2401_v52, %v2399_v49  ;;  %v2040_v49 = vunpack.c.h.bf16 %v2280_v44  ;;  %v2281_v52 = vld [vmem:[%s3464_s2 + $0x28] sm:$0xff]  }
 0x2d3   :  { %v444_v54 = vrot.slane %v433_v53, %v2545_v42  ;;  %v437_v55 = vrot.slane %v433_v53, %v2542_v41  ;;  %v451_v58 = vrot.slane %v433_v53, %v450_v56  ;;  %v465_v59 = vrot.slane %v433_v53, %v464_v57 }
 0x2d4   :  { %v458_v62 = vrot.slane %v433_v53, %v457_v60  ;;  %v479_v63 = vrot.slane %v433_v53, %v478_v61  ;;  %v471_v42 = vsub.s32 5, %v2475_v15  ;;  %v486_v1 = vrot.slane %v433_v53, %v485_v0 }
 0x2d5   :  { %446 = vbcast.lane.b32.xlu1 %v444_v54, 256  ;;  %439 = vbcast.lane.b32.xlu0 %v437_v55, 256  ;;  %v496_v54 = vunpack.c.l.bf16 %v2513_v24  ;;  %v497_v57 = vunpack.c.l.bf16 %v2518_v25 }
 0x2d6   :  { %v472_v41 = vrot.slane %v433_v53, %v471_v42  ;;  %v495_v53 = vunpack.c.l.bf16 %v2508_v23 }
 0x2d9   :  { %453 = vbcast.lane.b32.xlu1 %v451_v58, 256  ;;  %467 = vbcast.lane.b32.xlu0 %v465_v59, 256  ;;  %v2044_v59 = vunpack.c.h.bf16 %v2281_v52 }
 0x2dd   :  { %460 = vbcast.lane.b32.xlu1 %v458_v62, 256  ;;  %481 = vbcast.lane.b32.xlu0 %v479_v63, 256  ;;  %v2035_v62 = vunpack.c.l.bf16 %v2279_v36  ;;  %v2282_v63 = vld [vmem:[%s3464_s2 + $0x30] sm:$0xff]  }
 0x2de   :  { %v2048_v25 = vunpack.c.h.bf16 %v2282_v63 }
 0x2e1   :  { %474 = vbcast.lane.b32.xlu1 %v472_v41, 256 }
 0x2e5   :  { %488 = vbcast.lane.b32.xlu1 %v486_v1, 256 }
 0x347   :  { %v440_v3 = vpop.permute.xlu0 %439  ;;  %v447_v8 = vpop.permute.xlu1 %446 }
 0x348   :  { %v498_v4 = vmul.f32 %v490_v2, %v440_v3  ;;  %v499_v17 = vmul.f32 %v491_v13, %v447_v8  ;;  %v2039_v2 = vunpack.c.l.bf16 %v2280_v44  ;;  %v2283_v3 = vld [vmem:[%s3464_s2 + $0x38] sm:$0xff]  }
 0x349   :  { %v2051_v44 = vunpack.c.l.bf16 %v2283_v3 }
 0x34a   :  { %v506_v5 = vsel %vm321_vm0, %v498_v4, 0.0  ;;  %v513_v32 = vsel %vm321_vm0, %v499_v17, 0.0  ;;  %v492_v17 = vunpack.c.l.bf16 %v2493_v20 }
 0x34b   :  { %v507_v6 = vrot.slane %v506_v5, 4  ;;  %v2612_v19 = vpop.permute.xlu1 %453  ;;  %v514_v37 = vrot.slane %v513_v32, 4  ;;  %v2635_v45 = vpop.permute.xlu0 %467 }
 0x34d   :  { %v508_v9 = vadd.f32 %v507_v6, %v506_v5  ;;  %v515_v47 = vadd.f32 %v514_v37, %v513_v32  ;;  %v500_v37 = vmul.f32 %v492_v17, %v2612_v19  ;;  %v2338_v17 = vld [vmem:[%s3464_s2 + $0x1f0] sm:$0xff]  }
 0x34f   :  { %v509_v12 = vrot.slane %v508_v9, 2  ;;  %v2624_v33 = vpop.permute.xlu1 %460  ;;  %v516_v55 = vrot.slane %v515_v47, 2  ;;  %v482_v56 = vpop.permute.xlu0 %481 }
 0x350   :  { %v504_v42 = vmul.f32 %v496_v54, %v482_v56  ;;  %v2686_v54 = vld [vmem:[%s3464_s2 + $0x58] sm:$0xff]  }
 0x351   :  { %v510_v16 = vadd.f32 %v509_v12, %v508_v9  ;;  %v517_v24 = vadd.f32 %v516_v55, %v515_v47  ;;  %v2052_v12 = vunpack.c.h.bf16 %v2283_v3 }
 0x352   :  { %v548_v5 = vsel %vm321_vm0, %v504_v42, 0.0 }
 0x353   :  { %v511_v26 = vrot.slane %v510_v16, 1  ;;  %v475_v46 = vpop.permute.xlu1 %474  ;;  %v518_v6 = vrot.slane %v517_v24, 1 }
 0x354   :  { %v503_v23 = vmul.f32 %v495_v53, %v475_v46  ;;  %v2677_v46 = vld [vmem:[%s3464_s2 + $0x50] sm:$0xff]  }
 0x355   :  { %v2617_v29 = vadd.f32 %v511_v26, %v510_v16  ;;  %v2043_v16 = vunpack.c.l.bf16 %v2281_v52  ;;  %v2284_v26 = vld [vmem:[%s3464_s2 + $0x40] sm:$0xff]   ;;  %v2664_v28 = vadd.f32 %v518_v6, %v517_v24  ;;  %v2725_v6 = vld [vmem:[%s3464_s2 + $0x168] sm:$0xff]  }
 0x356   :  { %v541_v4 = vsel %vm321_vm0, %v503_v23, 0.0  ;;  %v2055_v53 = vunpack.c.l.bf16 %v2284_v26 }
 0x357   :  { %v819_v30 = vmul.f32 %v2024_v27, %v2617_v29  ;;  %v818_v34 = vmul.f32 %v2023_v10, %v2617_v29  ;;  %v823_v38 = vmul.f32 %v2032_v31, %v2617_v29  ;;  %v820_v40 = vmul.f32 %v2027_v35, %v2617_v29  ;;  %v489_v60 = vpop.permute.xlu1 %488  ;;  %v2285_v35 = vld [vmem:[%s3464_s2 + $0x48] sm:$0xff]  }
 0x358   :  { %v825_v48 = vmul.f32 %v2036_v39, %v2617_v29  ;;  %v821_v50 = vmul.f32 %v2028_v43, %v2617_v29  ;;  %v827_v58 = vmul.f32 %v2040_v49, %v2617_v29  ;;  %v822_v61 = vmul.f32 %v2031_v51, %v2617_v29 }
 0x359   :  { %948 = vadd.xlane.f32.xlu1 %v819_v30  ;;  %946 = vadd.xlane.f32.xlu0 %v818_v34  ;;  %v505_v41 = vmul.f32 %v497_v57, %v489_v60  ;;  %v829_v0 = vmul.f32 %v2044_v59, %v2617_v29  ;;  %v824_v1 = vmul.f32 %v2035_v62, %v2617_v29  ;;  %v542_v13 = vrot.slane %v541_v4, 4  ;;  %v2691_v57 = vld [vmem:[%s3464_s2 + $0x60] sm:$0xff]   ;;  %v2703_v62 = vld [vmem:[%s3464_s2 + $0x70] sm:$0xff]  }
 0x35a   :  { %v831_v9 = vmul.f32 %v2048_v25, %v2617_v29  ;;  %v826_v14 = vmul.f32 %v2039_v2, %v2617_v29  ;;  %v549_v27 = vrot.slane %v548_v5, 4  ;;  %v833_v18 = vmul.f32 %v2052_v12, %v2617_v29  ;;  %v2322_v25 = vld [vmem:[%s3464_s2 + $0x170] sm:$0xff]  }
 0x35b   :  { %v555_v8 = vsel %vm321_vm0, %v505_v41, 0.0  ;;  %v2056_v30 = vunpack.c.h.bf16 %v2284_v26  ;;  %v543_v31 = vadd.f32 %v542_v13, %v541_v4  ;;  %v828_v32 = vmul.f32 %v2043_v16, %v2617_v29 }
 0x35c   :  { %v556_v10 = vrot.slane %v555_v8, 4  ;;  %v2047_v34 = vunpack.c.l.bf16 %v2282_v63  ;;  %v550_v36 = vadd.f32 %v549_v27, %v548_v5  ;;  %v2060_v39 = vunpack.c.h.bf16 %v2285_v35  ;;  %v2330_v63 = vld [vmem:[%s3464_s2 + $0x1b0] sm:$0xff]  }
 0x35d   :  { %956 = vadd.xlane.f32.xlu1 %v823_v38  ;;  %950 = vadd.xlane.f32.xlu0 %v820_v40  ;;  %v835_v38 = vmul.f32 %v2056_v30, %v2664_v28  ;;  %v544_v40 = vrot.slane %v543_v31, 2  ;;  %v832_v52 = vmul.f32 %v2051_v44, %v2617_v29  ;;  %v2068_v60 = vunpack.c.h.bf16 %v2686_v54 }
 0x35e   :  { %v557_v20 = vadd.f32 %v556_v10, %v555_v8  ;;  %v830_v43 = vmul.f32 %v2047_v34, %v2617_v29  ;;  %v551_v47 = vrot.slane %v550_v36, 2  ;;  %v837_v19 = vmul.f32 %v2060_v39, %v2664_v28  ;;  %v2696_v29 = vld [vmem:[%s3464_s2 + $0x68] sm:$0xff]  }
 0x35f   :  { %v545_v51 = vadd.f32 %v544_v40, %v543_v31  ;;  %v834_v42 = vmul.f32 %v2055_v53, %v2664_v28  ;;  %v2072_v24 = vunpack.c.h.bf16 %v2691_v57  ;;  %v2063_v41 = vunpack.c.l.bf16 %v2677_v46  ;;  %v2337_v31 = vld [vmem:[%s3464_s2 + $0x1e8] sm:$0xff]  }
 0x360   :  { %v558_v49 = vrot.slane %v557_v20, 2  ;;  %v552_v56 = vadd.f32 %v551_v47, %v550_v36  ;;  %v2076_v4 = vunpack.c.h.bf16 %v2696_v29  ;;  %v2067_v5 = vunpack.c.l.bf16 %v2686_v54 }
 0x361   :  { %960 = vadd.xlane.f32.xlu1 %v825_v48  ;;  %952 = vadd.xlane.f32.xlu0 %v821_v50  ;;  %v520_v48 = vsel %vm321_vm0, %v500_v37, 0.0  ;;  %v2064_v50 = vunpack.c.h.bf16 %v2677_v46  ;;  %v546_v23 = vrot.slane %v545_v51, 1  ;;  %v2071_v12 = vunpack.c.l.bf16 %v2691_v57 }
 0x362   :  { %v521_v55 = vrot.slane %v520_v48, 4  ;;  %v553_v3 = vrot.slane %v552_v56, 1  ;;  %v2239_v13 = vunpack.c.l.bf16 %v2330_v63  ;;  %v841_v16 = vmul.f32 %v2068_v60, %v2664_v28 }
 0x363   :  { %v839_v59 = vmul.f32 %v2064_v50, %v2664_v28  ;;  %v2207_v26 = vunpack.c.l.bf16 %v2322_v25  ;;  %v2271_v40 = vunpack.c.l.bf16 %v2338_v17  ;;  %v843_v46 = vmul.f32 %v2072_v24, %v2664_v28 }
 0x364   :  { %v522_v2 = vadd.f32 %v521_v55, %v520_v48  ;;  %v2746_v37 = vadd.f32 %v553_v3, %v552_v56  ;;  %v2268_v47 = vunpack.c.h.bf16 %v2337_v31  ;;  %v845_v54 = vmul.f32 %v2076_v4, %v2664_v28 }
 0x365   :  { %964 = vadd.xlane.f32.xlu1 %v827_v58  ;;  %954 = vadd.xlane.f32.xlu0 %v822_v61  ;;  %v559_v58 = vadd.f32 %v558_v49, %v557_v20  ;;  %v2059_v61 = vunpack.c.l.bf16 %v2285_v35  ;;  %v2339_v35 = vld [vmem:[%s3464_s2 + $0x1f8] sm:$0xff]   ;;  %v2272_v49 = vunpack.c.h.bf16 %v2338_v17  ;;  %v840_v24 = vmul.f32 %v2067_v5, %v2664_v28 }
 0x366   :  { %v523_v36 = vrot.slane %v522_v2, 2  ;;  %v2276_v48 = vunpack.c.h.bf16 %v2339_v35  ;;  %v2760_v55 = vmul.f32 %v2239_v13, %v2746_v37  ;;  %v842_v5 = vmul.f32 %v2071_v12, %v2664_v28  ;;  %v2292_v13 = vld [vmem:[%s3464_s2 + $0x80] sm:$0xff]  }
 0x367   :  { %v560_v8 = vrot.slane %v559_v58, 1  ;;  %v836_v30 = vmul.f32 %v2059_v61, %v2664_v28  ;;  %v2079_v17 = vunpack.c.l.bf16 %v2703_v62 }
 0x368   :  { %v524_v53 = vadd.f32 %v523_v36, %v522_v2 }
 0x369   :  { %968 = vadd.xlane.f32.xlu1 %v829_v0  ;;  %958 = vadd.xlane.f32.xlu0 %v824_v1  ;;  %v2329_v0 = vld [vmem:[%s3464_s2 + $0x1a8] sm:$0xff]   ;;  %v2331_v1 = vld [vmem:[%s3464_s2 + $0x1b8] sm:$0xff]   ;;  %v2748_v39 = vadd.f32 %v560_v8, %v559_v58  ;;  %v2075_v8 = vunpack.c.l.bf16 %v2696_v29  ;;  %v846_v31 = vmul.f32 %v2079_v17, %v2664_v28 }
 0x36a   :  { %v2236_v27 = vunpack.c.h.bf16 %v2329_v0  ;;  %v2243_v10 = vunpack.c.l.bf16 %v2331_v1  ;;  %v2244_v34 = vunpack.c.h.bf16 %v2331_v1  ;;  %v525_v2 = vrot.slane %v524_v53, 1  ;;  %v2293_v29 = vld [vmem:[%s3464_s2 + $0x88] sm:$0xff]  }
 0x36b   :  { %v2769_v58 = vmul.f32 %v2271_v40, %v2748_v39  ;;  %v2778_v61 = vmul.f32 %v2268_v47, %v2748_v39  ;;  %v2296_v47 = vld [vmem:[%s3464_s2 + $0xa0] sm:$0xff]  }
 0x36c   :  { %v2766_v57 = vmul.f32 %v2236_v27, %v2746_v37  ;;  %v2775_v60 = vmul.f32 %v2243_v10, %v2746_v37  ;;  %v493_v27 = vunpack.c.l.bf16 %v2498_v21  ;;  %v2092_v10 = vunpack.c.h.bf16 %v2293_v29  ;;  %v2294_v21 = vld [vmem:[%s3464_s2 + $0x90] sm:$0xff]  }
 0x36d   :  { %972 = vadd.xlane.f32.xlu1 %v831_v9  ;;  %962 = vadd.xlane.f32.xlu0 %v826_v14  ;;  %v2080_v9 = vunpack.c.h.bf16 %v2703_v62  ;;  %v2323_v14 = vld [vmem:[%s3464_s2 + $0x178] sm:$0xff]  }
 0x36e   :  { %v2211_v20 = vunpack.c.l.bf16 %v2323_v14  ;;  %v2212_v44 = vunpack.c.h.bf16 %v2323_v14  ;;  %v2808_v14 = vadd.f32 %v525_v2, %v524_v53  ;;  %v2297_v53 = vld [vmem:[%s3464_s2 + $0xa8] sm:$0xff]  }
 0x36f   :  { %v847_v3 = vmul.f32 %v2080_v9, %v2664_v28  ;;  %v844_v9 = vmul.f32 %v2075_v8, %v2664_v28 }
 0x370   :  { %v853_v62 = vmul.f32 %v2092_v10, %v2808_v14  ;;  %v2107_v10 = vunpack.c.l.bf16 %v2297_v53 }
 0x371   :  { %976 = vadd.xlane.f32.xlu1 %v833_v18  ;;  %966 = vadd.xlane.f32.xlu0 %v828_v32  ;;  %v2736_v18 = vadd.f32 %v546_v23, %v545_v51  ;;  %v2204_v32 = vunpack.c.h.bf16 %v2725_v6 }
 0x373   :  { %v2753_v50 = vmul.f32 %v2207_v26, %v2736_v18  ;;  %v2756_v51 = vmul.f32 %v2204_v32, %v2736_v18  ;;  %v2763_v56 = vmul.f32 %v2211_v20, %v2736_v18  ;;  %v2794_v0 = vmul.f32 %v2212_v44, %v2736_v18 }
 0x374   :  { %v2088_v26 = vunpack.c.h.bf16 %v2292_v13  ;;  %v2087_v20 = vunpack.c.l.bf16 %v2292_v13 }
 0x375   :  { %980 = vadd.xlane.f32.xlu1 %v835_v38  ;;  %970 = vadd.xlane.f32.xlu0 %v830_v43  ;;  %v2240_v38 = vunpack.c.h.bf16 %v2330_v63  ;;  %v2208_v43 = vunpack.c.h.bf16 %v2322_v25  ;;  %v2781_v63 = vmul.f32 %v2244_v34, %v2746_v37  ;;  %v2797_v25 = vmul.f32 %v2272_v49, %v2748_v39 }
 0x376   :  { %v851_v12 = vmul.f32 %v2088_v26, %v2808_v14  ;;  %v2096_v34 = vunpack.c.h.bf16 %v2294_v21  ;;  %v850_v44 = vmul.f32 %v2087_v20, %v2808_v14  ;;  %v2104_v49 = vunpack.c.h.bf16 %v2296_v47 }
 0x377   :  { %v2784_v23 = vmul.f32 %v2240_v38, %v2746_v37  ;;  %v2103_v26 = vunpack.c.l.bf16 %v2296_v47 }
 0x378   :  { %v855_v40 = vmul.f32 %v2096_v34, %v2808_v14  ;;  %v860_v34 = vmul.f32 %v2107_v10, %v2808_v14 }
 0x379   :  { %984 = vadd.xlane.f32.xlu1 %v837_v19  ;;  %974 = vadd.xlane.f32.xlu0 %v832_v52  ;;  %v838_v19 = vmul.f32 %v2063_v41, %v2664_v28  ;;  %v2275_v52 = vunpack.c.l.bf16 %v2339_v35  ;;  %v2291_v41 = vld [vmem:[%s3464_s2 + $0x78] sm:$0xff]  }
 0x37a   :  { %v2084_v4 = vunpack.c.h.bf16 %v2291_v41  ;;  %v2083_v32 = vunpack.c.l.bf16 %v2291_v41  ;;  %v2108_v41 = vunpack.c.h.bf16 %v2297_v53 }
 0x37b   :  { %v2800_v1 = vmul.f32 %v2275_v52, %v2748_v39  ;;  %v2095_v52 = vunpack.c.l.bf16 %v2294_v21 }
 0x37c   :  { %v848_v36 = vmul.f32 %v2083_v32, %v2664_v28  ;;  %v861_v8 = vmul.f32 %v2108_v41, %v2808_v14 }
 0x37d   :  { %988 = vadd.xlane.f32.xlu1 %v839_v59  ;;  %978 = vadd.xlane.f32.xlu0 %v834_v42  ;;  %v2772_v59 = vmul.f32 %v2208_v43, %v2736_v18  ;;  %v2787_v42 = vmul.f32 %v2276_v48, %v2748_v39  ;;  %v854_v2 = vmul.f32 %v2095_v52, %v2808_v14 }
 0x381   :  { %992 = vadd.xlane.f32.xlu1 %v841_v16  ;;  %982 = vadd.xlane.f32.xlu0 %v836_v30  ;;  %v849_v16 = vmul.f32 %v2084_v4, %v2664_v28  ;;  %v501_v30 = vmul.f32 %v493_v27, %v2624_v33  ;;  %v2295_v33 = vld [vmem:[%s3464_s2 + $0x98] sm:$0xff]   ;;  %v2298_v4 = vld [vmem:[%s3464_s2 + $0xb0] sm:$0xff]  }
 0x382   :  { %v2100_v43 = vunpack.c.h.bf16 %v2295_v33  ;;  %v2112_v13 = vunpack.c.h.bf16 %v2298_v4  ;;  %v2299_v27 = vld [vmem:[%s3464_s2 + $0xb8] sm:$0xff]  }
 0x383   :  { %v527_v35 = vsel %vm321_vm0, %v501_v30, 0.0  ;;  %v2300_v30 = vld [vmem:[%s3464_s2 + $0xc0] sm:$0xff]  }
 0x384   :  { %v528_v38 = vrot.slane %v527_v35, 4  ;;  %v857_v48 = vmul.f32 %v2100_v43, %v2808_v14  ;;  %v863_v17 = vmul.f32 %v2112_v13, %v2808_v14  ;;  %v2120_v21 = vunpack.c.h.bf16 %v2300_v30 }
 0x385   :  { %996 = vadd.xlane.f32.xlu1 %v843_v46  ;;  %986 = vadd.xlane.f32.xlu0 %v838_v19  ;;  %v2091_v46 = vunpack.c.l.bf16 %v2293_v29  ;;  %v2116_v29 = vunpack.c.h.bf16 %v2299_v27  ;;  %v2115_v43 = vunpack.c.l.bf16 %v2299_v27 }
 0x386   :  { %v529_v28 = vadd.f32 %v528_v38, %v527_v35  ;;  %v2111_v35 = vunpack.c.l.bf16 %v2298_v4 }
 0x387   :  { %v852_v19 = vmul.f32 %v2091_v46, %v2808_v14  ;;  %v865_v32 = vmul.f32 %v2116_v29, %v2808_v14 }
 0x389   :  { %1000 = vadd.xlane.f32.xlu1 %v845_v54  ;;  %990 = vadd.xlane.f32.xlu0 %v840_v24  ;;  %v530_v54 = vrot.slane %v529_v28, 2  ;;  %v859_v24 = vmul.f32 %v2104_v49, %v2808_v14 }
 0x38d   :  { %1004 = vadd.xlane.f32.xlu1 %v847_v3  ;;  %994 = vadd.xlane.f32.xlu0 %v842_v5  ;;  %v2099_v3 = vunpack.c.l.bf16 %v2295_v33  ;;  %v531_v5 = vadd.f32 %v530_v54, %v529_v28  ;;  %v864_v28 = vmul.f32 %v2115_v43, %v2808_v14 }
 0x391   :  { %1008 = vadd.xlane.f32.xlu1 %v849_v16  ;;  %998 = vadd.xlane.f32.xlu0 %v844_v9  ;;  %v856_v16 = vmul.f32 %v2099_v3, %v2808_v14  ;;  %v532_v9 = vrot.slane %v531_v5, 1 }
 0x395   :  { %1012 = vadd.xlane.f32.xlu1 %v851_v12  ;;  %1002 = vadd.xlane.f32.xlu0 %v846_v31  ;;  %v858_v12 = vmul.f32 %v2103_v26, %v2808_v14  ;;  %v2854_v31 = vadd.f32 %v532_v9, %v531_v5  ;;  %v2305_v5 = vld [vmem:[%s3464_s2 + $0xe8] sm:$0xff]   ;;  %v2306_v9 = vld [vmem:[%s3464_s2 + $0xf0] sm:$0xff]  }
 0x397   :  { %v867_v20 = vmul.f32 %v2120_v21, %v2854_v31 }
 0x399   :  { %1016 = vadd.xlane.f32.xlu1 %v853_v62  ;;  %1006 = vadd.xlane.f32.xlu0 %v848_v36  ;;  %v494_v62 = vunpack.c.l.bf16 %v2503_v22  ;;  %v2301_v36 = vld [vmem:[%s3464_s2 + $0xc8] sm:$0xff]   ;;  %v2302_v22 = vld [vmem:[%s3464_s2 + $0xd0] sm:$0xff]  }
 0x39a   :  { %v2124_v33 = vunpack.c.h.bf16 %v2301_v36  ;;  %v2128_v46 = vunpack.c.h.bf16 %v2302_v22  ;;  %v2123_v54 = vunpack.c.l.bf16 %v2301_v36  ;;  %v2127_v4 = vunpack.c.l.bf16 %v2302_v22 }
 0x39b   :  { %v502_v38 = vmul.f32 %v494_v62, %v2635_v45  ;;  %v2303_v45 = vld [vmem:[%s3464_s2 + $0xd8] sm:$0xff]   ;;  %v2139_v36 = vunpack.c.l.bf16 %v2305_v5  ;;  %v2143_v22 = vunpack.c.l.bf16 %v2306_v9 }
 0x39c   :  { %v2132_v52 = vunpack.c.h.bf16 %v2303_v45  ;;  %v868_v3 = vmul.f32 %v2123_v54, %v2854_v31  ;;  %v870_v26 = vmul.f32 %v2127_v4, %v2854_v31  ;;  %v2131_v27 = vunpack.c.l.bf16 %v2303_v45  ;;  %v2310_v45 = vld [vmem:[%s3464_s2 + $0x110] sm:$0xff]   ;;  %v2311_v54 = vld [vmem:[%s3464_s2 + $0x118] sm:$0xff]   ;;  %v2312_v4 = vld [vmem:[%s3464_s2 + $0x120] sm:$0xff]  }
 0x39d   :  { %1020 = vadd.xlane.f32.xlu1 %v855_v40  ;;  %1010 = vadd.xlane.f32.xlu0 %v850_v44  ;;  %v862_v40 = vmul.f32 %v2111_v35, %v2808_v14  ;;  %v869_v44 = vmul.f32 %v2124_v33, %v2854_v31  ;;  %v534_v47 = vsel %vm321_vm0, %v502_v38, 0.0  ;;  %v876_v43 = vmul.f32 %v2139_v36, %v2854_v31 }
 0x39e   :  { %v535_v49 = vrot.slane %v534_v47, 4  ;;  %v873_v41 = vmul.f32 %v2132_v52, %v2854_v31  ;;  %v872_v10 = vmul.f32 %v2131_v27, %v2854_v31  ;;  %v1341_v27 = vadd.s32 4294967280, %v2574_v7 }
 0x39f   :  { %vm1381_vm0 = vcmask 523712  }
 0x3a0   :  { %v536_v14 = vadd.f32 %v535_v49, %v534_v47 }
 0x3a1   :  { %1024 = vadd.xlane.f32.xlu1 %v857_v48  ;;  %1014 = vadd.xlane.f32.xlu0 %v852_v19  ;;  %v2119_v48 = vunpack.c.l.bf16 %v2300_v30  ;;  %v871_v19 = vmul.f32 %v2128_v46, %v2854_v31 }
 0x3a3   :  { %v866_v53 = vmul.f32 %v2119_v48, %v2854_v31 }
 0x3a5   :  { %1028 = vadd.xlane.f32.xlu1 %v859_v24  ;;  %1018 = vadd.xlane.f32.xlu0 %v854_v2  ;;  %v2304_v24 = vld [vmem:[%s3464_s2 + $0xe0] sm:$0xff]  }
 0x3a6   :  { %v2136_v2 = vunpack.c.h.bf16 %v2304_v24  ;;  %v2135_v30 = vunpack.c.l.bf16 %v2304_v24 }
 0x3a8   :  { %v875_v13 = vmul.f32 %v2136_v2, %v2854_v31  ;;  %v874_v35 = vmul.f32 %v2135_v30, %v2854_v31  ;;  %v2163_v30 = vunpack.c.l.bf16 %v2311_v54 }
 0x3a9   :  { %1032 = vadd.xlane.f32.xlu1 %v861_v8  ;;  %1022 = vadd.xlane.f32.xlu0 %v856_v16  ;;  %v537_v8 = vrot.slane %v536_v14, 2  ;;  %v2140_v16 = vunpack.c.h.bf16 %v2305_v5 }
 0x3ab   :  { %v877_v29 = vmul.f32 %v2140_v16, %v2854_v31 }
 0x3ad   :  { %1036 = vadd.xlane.f32.xlu1 %v863_v17  ;;  %1026 = vadd.xlane.f32.xlu0 %v858_v12  ;;  %v538_v17 = vadd.f32 %v537_v8, %v536_v14  ;;  %v2144_v12 = vunpack.c.h.bf16 %v2306_v9  ;;  %v2164_v14 = vunpack.c.h.bf16 %v2311_v54  ;;  %v2168_v8 = vunpack.c.h.bf16 %v2312_v4 }
 0x3af   :  { %v539_v21 = vrot.slane %v538_v17, 1  ;;  %v879_v62 = vmul.f32 %v2144_v12, %v2854_v31 }
 0x3b1   :  { %1040 = vadd.xlane.f32.xlu1 %v865_v32  ;;  %1030 = vadd.xlane.f32.xlu0 %v860_v34  ;;  %v2307_v32 = vld [vmem:[%s3464_s2 + $0xf8] sm:$0xff]   ;;  %v2899_v33 = vadd.f32 %v539_v21, %v538_v17 }
 0x3b2   :  { %v2148_v34 = vunpack.c.h.bf16 %v2307_v32  ;;  %v2147_v48 = vunpack.c.l.bf16 %v2307_v32 }
 0x3b4   :  { %v881_v38 = vmul.f32 %v2148_v34, %v2854_v31  ;;  %v880_v52 = vmul.f32 %v2147_v48, %v2854_v31  ;;  %v1348_v34 = vadd.s32 4294967272, %v2574_v7  ;;  %v2953_v48 = vld [vmem:[%s3464_s2 + $0x138] sm:$0xff]  }
 0x3b5   :  { %1044 = vadd.xlane.f32.xlu1 %v867_v20  ;;  %1034 = vadd.xlane.f32.xlu0 %v862_v40  ;;  %v2308_v20 = vld [vmem:[%s3464_s2 + $0x100] sm:$0xff]   ;;  %v2180_v54 = vunpack.c.h.bf16 %v2953_v48 }
 0x3b6   :  { %v2152_v40 = vunpack.c.h.bf16 %v2308_v20 }
 0x3b8   :  { %v883_v46 = vmul.f32 %v2152_v40, %v2899_v33 }
 0x3b9   :  { %1048 = vadd.xlane.f32.xlu1 %v869_v44  ;;  %1038 = vadd.xlane.f32.xlu0 %v864_v28  ;;  %v2309_v44 = vld [vmem:[%s3464_s2 + $0x108] sm:$0xff]   ;;  %v878_v28 = vmul.f32 %v2143_v22, %v2854_v31  ;;  %v889_v31 = vmul.f32 %v2164_v14, %v2899_v33  ;;  %v2167_v22 = vunpack.c.l.bf16 %v2312_v4  ;;  %v2968_v4 = vld [vmem:[%s3464_s2 + $0x140] sm:$0xff]  }
 0x3ba   :  { %v2156_v47 = vunpack.c.h.bf16 %v2309_v44 }
 0x3bc   :  { %v885_v49 = vmul.f32 %v2156_v47, %v2899_v33  ;;  %v2947_v47 = vsub.s32 %v1348_v34, %v2475_v15 }
 0x3bd   :  { %1052 = vadd.xlane.f32.xlu1 %v871_v19  ;;  %1042 = vadd.xlane.f32.xlu0 %v866_v53  ;;  %v2160_v19 = vunpack.c.h.bf16 %v2310_v45  ;;  %v2151_v53 = vunpack.c.l.bf16 %v2308_v20 }
 0x3bf   :  { %v887_v24 = vmul.f32 %v2160_v19, %v2899_v33  ;;  %v882_v2 = vmul.f32 %v2151_v53, %v2899_v33 }
 0x3c1   :  { %1056 = vadd.xlane.f32.xlu1 %v873_v41  ;;  %1046 = vadd.xlane.f32.xlu0 %v868_v3  ;;  %v1334_v41 = vadd.s32 4294967288, %v2574_v7  ;;  %v2155_v3 = vunpack.c.l.bf16 %v2309_v44 }
 0x3c3   :  { %v2924_v5 = vsub.s32 %v1334_v41, %v2475_v15  ;;  %v884_v16 = vmul.f32 %v2155_v3, %v2899_v33  ;;  %v890_v41 = vmul.f32 %v2167_v22, %v2899_v33  ;;  %v1369_v3 = vadd.s32 4294967248, %v2574_v7 }
 0x3c5   :  { %1060 = vadd.xlane.f32.xlu1 %v875_v13  ;;  %1050 = vadd.xlane.f32.xlu0 %v870_v26  ;;  %v2313_v13 = vld [vmem:[%s3464_s2 + $0x128] sm:$0xff]   ;;  %v2159_v26 = vunpack.c.l.bf16 %v2310_v45  ;;  %v1362_v45 = vadd.s32 4294967256, %v2574_v7 }
 0x3c6   :  { %v2172_v17 = vunpack.c.h.bf16 %v2313_v13 }
 0x3c7   :  { %v886_v21 = vmul.f32 %v2159_v26, %v2899_v33 }
 0x3c8   :  { %v893_v40 = vmul.f32 %v2172_v17, %v2899_v33 }
 0x3c9   :  { %1064 = vadd.xlane.f32.xlu1 %v877_v29  ;;  %1054 = vadd.xlane.f32.xlu0 %v872_v10  ;;  %v891_v10 = vmul.f32 %v2168_v8, %v2899_v33  ;;  %v1376_v8 = vadd.s32 4294967240, %v2574_v7 }
 0x3cb   :  { %v2990_v34 = vsub.s32 %v1376_v8, %v2475_v15 }
 0x3cd   :  { %1068 = vadd.xlane.f32.xlu1 %v879_v62  ;;  %1058 = vadd.xlane.f32.xlu0 %v874_v35  ;;  %v2936_v62 = vsub.s32 %v1341_v27, %v2475_v15  ;;  %v2314_v35 = vld [vmem:[%s3464_s2 + $0x130] sm:$0xff]  }
 0x3ce   :  { %v2175_v26 = vunpack.c.l.bf16 %v2314_v35 }
 0x3d1   :  { %1072 = vadd.xlane.f32.xlu1 %v881_v38  ;;  %1062 = vadd.xlane.f32.xlu0 %v876_v43  ;;  %v2176_v43 = vunpack.c.h.bf16 %v2314_v35  ;;  %v1390_v35 = vadd.s32 4294967224, %v2574_v7 }
 0x3d3   :  { %v895_v53 = vmul.f32 %v2176_v43, %v2899_v33  ;;  %v2179_v43 = vunpack.c.l.bf16 %v2953_v48  ;;  %v1397_v48 = vadd.s32 4294967216, %v2574_v7 }
 0x3d5   :  { %1076 = vadd.xlane.f32.xlu1 %v883_v46  ;;  %1066 = vadd.xlane.f32.xlu0 %v878_v28  ;;  %v888_v46 = vmul.f32 %v2163_v30, %v2899_v33  ;;  %v1355_v28 = vadd.s32 4294967264, %v2574_v7  ;;  %v2985_v30 = vsub.s32 %v1369_v3, %v2475_v15 }
 0x3d9   :  { %1080 = vadd.xlane.f32.xlu1 %v885_v49  ;;  %1070 = vadd.xlane.f32.xlu0 %v880_v52 }
 0x3dd   :  { %1084 = vadd.xlane.f32.xlu1 %v887_v24  ;;  %1074 = vadd.xlane.f32.xlu0 %v882_v2  ;;  %v2171_v24 = vunpack.c.l.bf16 %v2313_v13  ;;  %v2962_v2 = vsub.s32 %v1355_v28, %v2475_v15  ;;  %v3002_v28 = vld [vmem:[%s3464_s2 + $0x180] sm:$0xff]  }
 0x3de   :  { %v2216_v3 = vunpack.c.h.bf16 %v3002_v28 }
 0x3df   :  { %v892_v17 = vmul.f32 %v2171_v24, %v2899_v33 }
 0x3e1   :  { %1088 = vadd.xlane.f32.xlu1 %v889_v31  ;;  %1078 = vadd.xlane.f32.xlu0 %v884_v16  ;;  %v2971_v31 = vsub.s32 %v1362_v45, %v2475_v15 }
 0x3e2   :  { %v949_v9 = vpop.xlane.xlu1 %948  ;;  %v947_v12 = vpop.xlane.xlu0 %946 }
 0x3e3   :  { %v1338_v29 = vrot.slane %v949_v9, %v2924_v5  ;;  %v1333_v32 = vrot.slane %v947_v12, %v2578_v11  ;;  %v897_v9 = vmul.f32 %v2180_v54, %v2899_v33  ;;  %v2981_v12 = vld [vmem:[%s3464_s2 + $0x148] sm:$0xff]   ;;  %v1404_v54 = vadd.s32 4294967208, %v2574_v7 }
 0x3e5   :  { %1092 = vadd.xlane.f32.xlu1 %v891_v10  ;;  %v1340_v36 = vsel %vm1339_vm10, %v1338_v29, %v1333_v32  ;;  %1082 = vadd.xlane.f32.xlu0 %v886_v21  ;;  %v2184_v29 = vunpack.c.h.bf16 %v2968_v4  ;;  %v1383_v32 = vadd.s32 4294967232, %v2574_v7 }
 0x3e6   :  { %v957_v20 = vpop.xlane.xlu1 %956  ;;  %v951_v38 = vpop.xlane.xlu0 %950 }
 0x3e7   :  { %v1345_v44 = vrot.slane %v951_v38, %v2936_v62  ;;  %v1366_v21 = vrot.slane %v957_v20, %v2971_v31  ;;  %v899_v20 = vmul.f32 %v2184_v29, %v2736_v18 }
 0x3e9   :  { %1096 = vadd.xlane.f32.xlu1 %v893_v40  ;;  %v1347_v49 = vsel %vm1346_vm11, %v1345_v44, %v1340_v36  ;;  %1086 = vadd.xlane.f32.xlu0 %v888_v46  ;;  %v2188_v40 = vunpack.c.h.bf16 %v2981_v12  ;;  %v894_v46 = vmul.f32 %v2175_v26, %v2899_v33  ;;  %v896_v26 = vmul.f32 %v2179_v43, %v2899_v33 }
 0x3ea   :  { %v961_v19 = vpop.xlane.xlu1 %960  ;;  %v953_v52 = vpop.xlane.xlu0 %952  ;;  %v1418_v33 = vadd.s32 4294967192, %v2574_v7 }
 0x3eb   :  { %v1352_v14 = vrot.slane %v953_v52, %v2947_v47  ;;  %v1380_v52 = vrot.slane %v961_v19, %v2990_v34  ;;  %v901_v19 = vmul.f32 %v2188_v40, %v2736_v18 }
 0x3ed   :  { %1100 = vadd.xlane.f32.xlu1 %v895_v53  ;;  %v1354_v13 = vsel %vm1353_vm12, %v1352_v14, %v1347_v49  ;;  %1090 = vadd.xlane.f32.xlu0 %v890_v41  ;;  %v3006_v49 = vsub.s32 %v1383_v32, %v2475_v15  ;;  %v3011_v53 = vsub.s32 %v1390_v35, %v2475_v15  ;;  %v2183_v41 = vunpack.c.l.bf16 %v2968_v4 }
 0x3ee   :  { %v965_v16 = vpop.xlane.xlu1 %964  ;;  %v955_v27 = vpop.xlane.xlu0 %954  ;;  %v3027_v4 = vsub.s32 %v1397_v48, %v2475_v15  ;;  %v2187_v35 = vunpack.c.l.bf16 %v2981_v12  ;;  %v3049_v12 = vld [vmem:[%s3464_s2 + $0x150] sm:$0xff]   ;;  %v3053_v48 = vsub.s32 %v1418_v33, %v2475_v15 }
 0x3ef   :  { %v1359_v10 = vrot.slane %v955_v27, %v2962_v2  ;;  %v3023_v27 = vld [vmem:[%s3464_s2 + $0x1c0] sm:$0xff]   ;;  %v1394_v29 = vrot.slane %v965_v16, %v3011_v53  ;;  %v898_v16 = vmul.f32 %v2183_v41, %v2736_v18  ;;  %v2215_v41 = vunpack.c.l.bf16 %v3002_v28  ;;  %v3069_v28 = vld [vmem:[%s3464_s2 + $0x1c8] sm:$0xff]  }
 0x3f1   :  { %1104 = vadd.xlane.f32.xlu1 %v897_v9  ;;  %v1361_v36 = vsel %vm1360_vm13, %v1359_v10, %v1354_v13  ;;  %1094 = vadd.xlane.f32.xlu0 %v892_v17  ;;  %v1411_v17 = vadd.s32 4294967200, %v2574_v7  ;;  %v3032_v10 = vsub.s32 %v1404_v54, %v2475_v15 }
 0x3f2   :  { %v969_v38 = vpop.xlane.xlu1 %968  ;;  %v1368_v22 = vsel %vm1367_vm14, %v1366_v21, %v1361_v36  ;;  %v959_v44 = vpop.xlane.xlu0 %958  ;;  %v2247_v36 = vunpack.c.l.bf16 %v3023_v27 }
 0x3f3   :  { %v1373_v45 = vrot.slane %v959_v44, %v2985_v30 }
 0x3f5   :  { %1108 = vadd.xlane.f32.xlu1 %v899_v20  ;;  %v1375_v24 = vsel %vm1374_vm15, %v1373_v45, %v1368_v22  ;;  %1098 = vadd.xlane.f32.xlu0 %v894_v46  ;;  %v915_v22 = vmul.f32 %v2216_v3, %v2746_v37  ;;  %v3043_v20 = vsub.s32 %v1411_v17, %v2475_v15  ;;  %v1425_v46 = vadd.s32 4294967184, %v2574_v7 }
 0x3f6   :  { %v973_v14 = vpop.xlane.xlu1 %972  ;;  %v1382_v8 = vsel %vm1381_vm0, %v1380_v52, %v1375_v24  ;;  %v963_v13 = vpop.xlane.xlu0 %962  ;;  %v1408_v45 = vrot.slane %v969_v38, %v3032_v10  ;;  %v1432_v52 = vadd.s32 4294967176, %v2574_v7  ;;  %v2191_v38 = vunpack.c.l.bf16 %v3049_v12 }
 0x3f7   :  { %v1387_v9 = vrot.slane %v963_v13, %v3006_v49  ;;  %v930_v13 = vmul.f32 %v2247_v36, %v2748_v39  ;;  %v3064_v7 = vsub.s32 %v1425_v46, %v2475_v15 }
 0x3f8   :  { %v3073_v17 = vsub.s32 %v1432_v52, %v2475_v15 }
 0x3f9   :  { %1112 = vadd.xlane.f32.xlu1 %v901_v19  ;;  %v1389_v32 = vsel %vm1388_vm8, %v1387_v9, %v1382_v8  ;;  %1102 = vadd.xlane.f32.xlu0 %v896_v26  ;;  %v900_v26 = vmul.f32 %v2187_v35, %v2736_v18  ;;  %v1422_v9 = vrot.slane %v973_v14, %v3053_v48  ;;  %v2251_v14 = vunpack.c.l.bf16 %v3069_v28 }
 0x3fa   :  { %v977_v21 = vpop.xlane.xlu1 %976  ;;  %v1396_v40 = vsel %vm1395_vm9, %v1394_v29, %v1389_v32  ;;  %v967_v43 = vpop.xlane.xlu0 %966  ;;  %v2325_v29 = vld [vmem:[%s3464_s2 + $0x188] sm:$0xff]  }
 0x3fb   :  { %v1401_v44 = vrot.slane %v967_v43, %v3027_v4  ;;  %v914_v43 = vmul.f32 %v2215_v41, %v2746_v37 }
 0x3fd   :  { %1140 = vadd.xlane.f32.xlu1 %v915_v22  ;;  %v1403_v54 = vsel %vm1402_vm7, %v1401_v44, %v1396_v40  ;;  %1106 = vadd.xlane.f32.xlu0 %v898_v16  ;;  %v902_v40 = vmul.f32 %v2191_v38, %v2736_v18  ;;  %v2219_v16 = vunpack.c.l.bf16 %v2325_v29  ;;  %v3087_v22 = vld [vmem:[%s3464_s2 + $0x190] sm:$0xff]   ;;  %v1436_v44 = vrot.slane %v977_v21, %v3073_v17 }
 0x3fe   :  { %v981_v24 = vpop.xlane.xlu1 %980  ;;  %v1410_v3 = vsel %vm1409_vm6, %v1408_v45, %v1403_v54  ;;  %v971_v8 = vpop.xlane.xlu0 %970  ;;  %v2223_v41 = vunpack.c.l.bf16 %v3087_v22  ;;  %v2248_v21 = vunpack.c.h.bf16 %v3023_v27  ;;  %v2220_v27 = vunpack.c.h.bf16 %v2325_v29 }
 0x3ff   :  { %v1415_v19 = vrot.slane %v971_v8, %v3043_v20  ;;  %v1446_v8 = vrot.slane %v981_v24, %v2924_v5  ;;  %v916_v38 = vmul.f32 %v2219_v16, %v2746_v37 }
 0x401   :  { %1170 = vadd.xlane.f32.xlu1 %v930_v13  ;;  %v1417_v33 = vsel %vm1416_vm5, %v1415_v19, %v1410_v3  ;;  %1110 = vadd.xlane.f32.xlu0 %v900_v26  ;;  %v932_v3 = vmul.f32 %v2251_v14, %v2748_v39  ;;  %v3103_v19 = vld [vmem:[%s3464_s2 + $0x158] sm:$0xff]   ;;  %v3113_v14 = vld [vmem:[%s3464_s2 + $0x1d0] sm:$0xff]  }
 0x402   :  { %v985_v32 = vpop.xlane.xlu1 %984  ;;  %v1424_v35 = vsel %vm1423_vm4, %v1422_v9, %v1417_v33  ;;  %v975_v36 = vpop.xlane.xlu0 %974  ;;  %v2195_v24 = vunpack.c.l.bf16 %v3103_v19 }
 0x403   :  { %v1429_v15 = vrot.slane %v975_v36, %v3064_v7 }
 0x405   :  { %1114 = vadd.xlane.f32.xlu1 %v902_v40  ;;  %v1431_v46 = vsel %vm1430_vm3, %v1429_v15, %v1424_v35  ;;  %1138 = vadd.xlane.f32.xlu0 %v914_v43  ;;  %v918_v35 = vmul.f32 %v2223_v41, %v2746_v37  ;;  %v931_v40 = vmul.f32 %v2248_v21, %v2748_v39 }
 0x406   :  { %v989_v45 = vpop.xlane.xlu1 %988  ;;  %v3092_v52 = vsel %vm1437_vm2, %v1436_v44, %v1431_v46  ;;  %v979_v54 = vpop.xlane.xlu0 %978  ;;  %v1456_v15 = vrot.slane %v985_v32, %v2947_v47  ;;  %v917_v41 = vmul.f32 %v2220_v27, %v2746_v37  ;;  %v3126_v32 = vld [vmem:[%s3464_s2 + $0x198] sm:$0xff]  }
 0x407   :  { %v1442_v13 = vrot.slane %v979_v54, %v2578_v11  ;;  %v904_v54 = vmul.f32 %v2195_v24, %v2736_v18  ;;  %v2227_v24 = vunpack.c.l.bf16 %v3126_v32 }
 0x409   :  { %1174 = vadd.xlane.f32.xlu1 %v932_v3  ;;  %v1447_v26 = vsel %vm1339_vm10, %v1446_v8, %v1442_v13  ;;  %1142 = vadd.xlane.f32.xlu0 %v916_v38  ;;  %v2255_v3 = vunpack.c.l.bf16 %v3113_v14  ;;  %v2192_v8 = vunpack.c.h.bf16 %v3049_v12  ;;  %v1466_v13 = vrot.slane %v989_v45, %v2971_v31  ;;  %v3139_v45 = vld [vmem:[%s3464_s2 + $0x160] sm:$0xff]  }
 0x40a   :  { %v993_v9 = vpop.xlane.xlu1 %992  ;;  %v983_v33 = vpop.xlane.xlu0 %982 }
 0x40b   :  { %v1451_v36 = vrot.slane %v983_v33, %v2936_v62  ;;  %v1476_v27 = vrot.slane %v993_v9, %v2990_v34  ;;  %v3152_v9 = vld [vmem:[%s3464_s2 + $0x1d8] sm:$0xff]  }
 0x40d   :  { %1146 = vadd.xlane.f32.xlu1 %v918_v35  ;;  %v1452_v43 = vsel %vm1346_vm11, %v1451_v36, %v1447_v26  ;;  %1172 = vadd.xlane.f32.xlu0 %v931_v40  ;;  %v934_v35 = vmul.f32 %v2255_v3, %v2748_v39  ;;  %v903_v36 = vmul.f32 %v2192_v8, %v2736_v18  ;;  %v2252_v40 = vunpack.c.h.bf16 %v3069_v28 }
 0x40e   :  { %v997_v16 = vpop.xlane.xlu1 %996  ;;  %v1457_v44 = vsel %vm1353_vm12, %v1456_v15, %v1452_v43  ;;  %v987_v46 = vpop.xlane.xlu0 %986  ;;  %v2199_v3 = vunpack.c.l.bf16 %v3139_v45 }
 0x40f   :  { %v1461_v29 = vrot.slane %v987_v46, %v2962_v2  ;;  %v1486_v8 = vrot.slane %v997_v16, %v3011_v53  ;;  %v3165_v16 = vld [vmem:[%s3464_s2 + $0x1a0] sm:$0xff]  }
 0x411   :  { %1118 = vadd.xlane.f32.xlu1 %v904_v54  ;;  %v1462_v38 = vsel %vm1360_vm13, %v1461_v29, %v1457_v44  ;;  %1144 = vadd.xlane.f32.xlu0 %v917_v41  ;;  %v920_v54 = vmul.f32 %v2227_v24, %v2746_v37  ;;  %v933_v29 = vmul.f32 %v2252_v40, %v2748_v39  ;;  %v2224_v41 = vunpack.c.h.bf16 %v3087_v22 }
 0x412   :  { %v1001_v21 = vpop.xlane.xlu1 %1000  ;;  %v1467_v26 = vsel %vm1367_vm14, %v1466_v13, %v1462_v38  ;;  %v991_v33 = vpop.xlane.xlu0 %990  ;;  %v2259_v24 = vunpack.c.l.bf16 %v3152_v9 }
 0x413   :  { %v1471_v12 = vrot.slane %v991_v33, %v2985_v30  ;;  %v1496_v40 = vrot.slane %v1001_v21, %v3032_v10 }
 0x415   :  { %1178 = vadd.xlane.f32.xlu1 %v934_v35  ;;  %v1472_v15 = vsel %vm1374_vm15, %v1471_v12, %v1467_v26  ;;  %1116 = vadd.xlane.f32.xlu0 %v903_v36  ;;  %v906_v35 = vmul.f32 %v2199_v3, %v2736_v18  ;;  %v919_v12 = vmul.f32 %v2224_v41, %v2746_v37  ;;  %v2196_v36 = vunpack.c.h.bf16 %v3103_v19 }
 0x416   :  { %v1005_v43 = vpop.xlane.xlu1 %1004  ;;  %v1477_v44 = vsel %vm1381_vm0, %v1476_v27, %v1472_v15  ;;  %v995_v46 = vpop.xlane.xlu0 %994  ;;  %v2231_v3 = vunpack.c.l.bf16 %v3165_v16 }
 0x417   :  { %v1481_v28 = vrot.slane %v995_v46, %v3006_v49  ;;  %v1506_v21 = vrot.slane %v1005_v43, %v3053_v48  ;;  %v3186_v43 = vld [vmem:[%s3464_s2 + $0x1e0] sm:$0xff]  }
 0x419   :  { %1150 = vadd.xlane.f32.xlu1 %v920_v54  ;;  %v1482_v13 = vsel %vm1388_vm8, %v1481_v28, %v1477_v44  ;;  %1176 = vadd.xlane.f32.xlu0 %v933_v29  ;;  %v936_v54 = vmul.f32 %v2259_v24, %v2748_v39  ;;  %v905_v28 = vmul.f32 %v2196_v36, %v2736_v18  ;;  %v2256_v29 = vunpack.c.h.bf16 %v3113_v14 }
 0x41a   :  { %v1009_v38 = vpop.xlane.xlu1 %1008  ;;  %v1487_v26 = vsel %vm1395_vm9, %v1486_v8, %v1482_v13  ;;  %v999_v33 = vpop.xlane.xlu0 %998  ;;  %v2228_v14 = vunpack.c.h.bf16 %v3126_v32  ;;  %v2200_v32 = vunpack.c.h.bf16 %v3139_v45  ;;  %v2402_v45 = vld [vmem:[%s3464_s2 + $0x1a8] sm:$0xff]  }
 0x41b   :  { %v1491_v22 = vrot.slane %v999_v33, %v3027_v4  ;;  %v922_v33 = vmul.f32 %v2231_v3, %v2746_v37 }
 0x41d   :  { %1122 = vadd.xlane.f32.xlu1 %v906_v35  ;;  %v1492_v27 = vsel %vm1402_vm7, %v1491_v22, %v1487_v26  ;;  %1148 = vadd.xlane.f32.xlu0 %v919_v12  ;;  %v2203_v35 = vunpack.c.l.bf16 %v2725_v6  ;;  %v935_v22 = vmul.f32 %v2256_v29, %v2748_v39  ;;  %v1516_v12 = vrot.slane %v1009_v38, %v3073_v17 }
 0x41e   :  { %v1013_v15 = vpop.xlane.xlu1 %1012  ;;  %v1497_v44 = vsel %vm1409_vm6, %v1496_v40, %v1492_v27  ;;  %v1003_v46 = vpop.xlane.xlu0 %1002 }
 0x41f   :  { %v1501_v19 = vrot.slane %v1003_v46, %v3043_v20  ;;  %v2263_v46 = vunpack.c.l.bf16 %v3186_v43 }
 0x421   :  { %1182 = vadd.xlane.f32.xlu1 %v936_v54  ;;  %v1502_v41 = vsel %vm1416_vm5, %v1501_v19, %v1497_v44  ;;  %1120 = vadd.xlane.f32.xlu0 %v905_v28  ;;  %v908_v44 = vmul.f32 %v2203_v35, %v2736_v18  ;;  %v1525_v54 = vrot.slane %v1013_v15, %v2924_v5  ;;  %v2235_v15 = vunpack.c.l.bf16 %v2402_v45 }
 0x422   :  { %v1017_v8 = vpop.xlane.xlu1 %1016  ;;  %v1507_v13 = vsel %vm1423_vm4, %v1506_v21, %v1502_v41  ;;  %v1007_v26 = vpop.xlane.xlu0 %1006  ;;  %v921_v19 = vmul.f32 %v2228_v14, %v2746_v37  ;;  %v938_v41 = vmul.f32 %v2263_v46, %v2748_v39 }
 0x423   :  { %v1511_v24 = vrot.slane %v1007_v26, %v3064_v7  ;;  %v2260_v26 = vunpack.c.h.bf16 %v3152_v9 }
 0x425   :  { %1154 = vadd.xlane.f32.xlu1 %v922_v33  ;;  %v1512_v36 = vsel %vm1430_vm3, %v1511_v24, %v1507_v13  ;;  %1180 = vadd.xlane.f32.xlu0 %v935_v22  ;;  %v907_v13 = vmul.f32 %v2200_v32, %v2736_v18  ;;  %v1535_v33 = vrot.slane %v1017_v8, %v2947_v47  ;;  %v2232_v18 = vunpack.c.h.bf16 %v3165_v16  ;;  %v2403_v32 = vld [vmem:[%s3464_s2 + $0x1e8] sm:$0xff]  }
 0x426   :  { %v1021_v40 = vpop.xlane.xlu1 %1020  ;;  %v1517_v6 = vsel %vm1437_vm2, %v1516_v12, %v1512_v36  ;;  %v1011_v27 = vpop.xlane.xlu0 %1010  ;;  %v924_v12 = vmul.f32 %v2235_v15, %v2746_v37 }
 0x427   :  { %v3197_v3 = vsel %vm406_vm1, %v1517_v6, %v3092_v52  ;;  %v1521_v38 = vrot.slane %v1011_v27, %v2578_v11  ;;  %v937_v6 = vmul.f32 %v2260_v26, %v2748_v39  ;;  %v1545_v9 = vrot.slane %v1021_v40, %v2971_v31 }
 0x428   :  { %vm3472_vm1 = vcmask 1042434  }
 0x429   :  { %1126 = vadd.xlane.f32.xlu1 %v908_v44  ;;  %v1526_v28 = vsel %vm1339_vm10, %v1525_v54, %v1521_v38  ;;  %1152 = vadd.xlane.f32.xlu0 %v921_v19  ;;  %v2267_v54 = vunpack.c.l.bf16 %v2403_v32  ;;  %v923_v19 = vmul.f32 %v2232_v18, %v2746_v37 }
 0x42a   :  { %v1025_v29 = vpop.xlane.xlu1 %1024  ;;  %v1015_v21 = vpop.xlane.xlu0 %1014 }
 0x42b   :  { %v1530_v52 = vrot.slane %v1015_v21, %v2936_v62  ;;  %v1555_v16 = vrot.slane %v1025_v29, %v2990_v34  ;;  %v940_v45 = vmul.f32 %v2267_v54, %v2748_v39 }
 0x42d   :  { %1186 = vadd.xlane.f32.xlu1 %v938_v41  ;;  %v1531_v35 = vsel %vm1346_vm11, %v1530_v52, %v1526_v28  ;;  %1124 = vadd.xlane.f32.xlu0 %v907_v13  ;;  %v2264_v52 = vunpack.c.h.bf16 %v3186_v43 }
 0x42e   :  { %v1029_v24 = vpop.xlane.xlu1 %1028  ;;  %v1536_v22 = vsel %vm1353_vm12, %v1535_v33, %v1531_v35  ;;  %v1019_v14 = vpop.xlane.xlu0 %1018 }
 0x42f   :  { %v1540_v36 = vrot.slane %v1019_v14, %v2962_v2  ;;  %v1565_v13 = vrot.slane %v1029_v24, %v3011_v53  ;;  %v939_v35 = vmul.f32 %v2264_v52, %v2748_v39 }
 0x431   :  { %1158 = vadd.xlane.f32.xlu1 %v924_v12  ;;  %v1541_v8 = vsel %vm1360_vm13, %v1540_v36, %v1536_v22  ;;  %1184 = vadd.xlane.f32.xlu0 %v937_v6 }
 0x432   :  { %v1033_v27 = vpop.xlane.xlu1 %1032  ;;  %v1546_v44 = vsel %vm1367_vm14, %v1545_v9, %v1541_v8  ;;  %v1023_v46 = vpop.xlane.xlu0 %1022 }
 0x433   :  { %v1550_v38 = vrot.slane %v1023_v46, %v2985_v30  ;;  %v1575_v22 = vrot.slane %v1033_v27, %v3032_v10 }
 0x435   :  { %1130 = vadd.xlane.f32.xlu1 %v2753_v50  ;;  %v1551_v40 = vsel %vm1374_vm15, %v1550_v38, %v1546_v44  ;;  %1156 = vadd.xlane.f32.xlu0 %v923_v19 }
 0x436   :  { %v1037_v28 = vpop.xlane.xlu1 %1036  ;;  %v1556_v21 = vsel %vm1381_vm0, %v1555_v16, %v1551_v40  ;;  %v1027_v41 = vpop.xlane.xlu0 %1026 }
 0x437   :  { %v1560_v15 = vrot.slane %v1027_v41, %v3006_v49  ;;  %v1585_v36 = vrot.slane %v1037_v28, %v3053_v48 }
 0x439   :  { %1190 = vadd.xlane.f32.xlu1 %v940_v45  ;;  %v1561_v37 = vsel %vm1388_vm8, %v1560_v15, %v1556_v21  ;;  %1128 = vadd.xlane.f32.xlu0 %v2756_v51 }
 0x43a   :  { %v1041_v50 = vpop.xlane.xlu1 %1040  ;;  %v1566_v29 = vsel %vm1395_vm9, %v1565_v13, %v1561_v37  ;;  %v1031_v26 = vpop.xlane.xlu0 %1030 }
 0x43b   :  { %v1570_v33 = vrot.slane %v1031_v26, %v3027_v4  ;;  %v1595_v8 = vrot.slane %v1041_v50, %v3073_v17 }
 0x43d   :  { %1162 = vadd.xlane.f32.xlu1 %v2760_v55  ;;  %v1571_v43 = vsel %vm1402_vm7, %v1570_v33, %v1566_v29  ;;  %1188 = vadd.xlane.f32.xlu0 %v939_v35 }
 0x43e   :  { %v1045_v24 = vpop.xlane.xlu1 %1044  ;;  %v1576_v14 = vsel %vm1409_vm6, %v1575_v22, %v1571_v43  ;;  %v1035_v12 = vpop.xlane.xlu0 %1034 }
 0x43f   :  { %v1580_v51 = vrot.slane %v1035_v12, %v3043_v20 }
 0x441   :  { %1134 = vadd.xlane.f32.xlu1 %v2763_v56  ;;  %v1581_v6 = vsel %vm1416_vm5, %v1580_v51, %v1576_v14  ;;  %1160 = vadd.xlane.f32.xlu0 %v2766_v57  ;;  %v1604_v57 = vrot.slane %v1045_v24, %v2924_v5 }
 0x442   :  { %v1049_v39 = vpop.xlane.xlu1 %1048  ;;  %v1586_v55 = vsel %vm1423_vm4, %v1585_v36, %v1581_v6  ;;  %v1039_v18 = vpop.xlane.xlu0 %1038 }
 0x443   :  { %v1590_v9 = vrot.slane %v1039_v18, %v3064_v7  ;;  %v1614_v16 = vrot.slane %v1049_v39, %v2947_v47 }
 0x445   :  { %1194 = vadd.xlane.f32.xlu1 %v2769_v58  ;;  %v1591_v27 = vsel %vm1430_vm3, %v1590_v9, %v1586_v55  ;;  %1132 = vadd.xlane.f32.xlu0 %v2772_v59 }
 0x446   :  { %v1053_v44 = vpop.xlane.xlu1 %1052  ;;  %v1596_v56 = vsel %vm1437_vm2, %v1595_v8, %v1591_v27  ;;  %v1043_v46 = vpop.xlane.xlu0 %1042 }
 0x447   :  { %v1993_v32 = vsel %vm3472_vm1, %v1596_v56, %v3197_v3  ;;  %v1600_v54 = vrot.slane %v1043_v46, %v2578_v11  ;;  %vm3473_vm1 = vcmask 1043459  }
 0x449   :  { %1166 = vadd.xlane.f32.xlu1 %v2775_v60  ;;  %v1605_v38 = vsel %vm1339_vm10, %v1604_v57, %v1600_v54  ;;  %1192 = vadd.xlane.f32.xlu0 %v2778_v61  ;;  %v1624_v61 = vrot.slane %v1053_v44, %v2971_v31 }
 0x44a   :  { %v1057_v58 = vpop.xlane.xlu1 %1056  ;;  %v1047_v19 = vpop.xlane.xlu0 %1046 }
 0x44b   :  { %v1609_v59 = vrot.slane %v1047_v19, %v2936_v62  ;;  %v1634_v52 = vrot.slane %v1057_v58, %v2990_v34 }
 0x44d   :  { %1168 = vadd.xlane.f32.xlu1 %v2781_v63  ;;  %v1610_v40 = vsel %vm1346_vm11, %v1609_v59, %v1605_v38  ;;  %1164 = vadd.xlane.f32.xlu0 %v2784_v23 }
 0x44e   :  { %v1061_v3 = vpop.xlane.xlu1 %1060  ;;  %v1615_v28 = vsel %vm1353_vm12, %v1614_v16, %v1610_v40  ;;  %v1051_v60 = vpop.xlane.xlu0 %1050 }
 0x44f   :  { %v1619_v21 = vrot.slane %v1051_v60, %v2962_v2 }
 0x451   :  { %1200 = vadd.xlane.f32.xlu1 %v2787_v42  ;;  %v1620_v41 = vsel %vm1360_vm13, %v1619_v21, %v1615_v28  ;;  %1136 = vadd.xlane.f32.xlu0 %v2794_v0  ;;  %v1644_v0 = vrot.slane %v1061_v3, %v3011_v53 }
 0x452   :  { %v1065_v45 = vpop.xlane.xlu1 %1064  ;;  %v1625_v63 = vsel %vm1367_vm14, %v1624_v61, %v1620_v41  ;;  %v1055_v15 = vpop.xlane.xlu0 %1054 }
 0x453   :  { %v1629_v23 = vrot.slane %v1055_v15, %v2985_v30 }
 0x455   :  { %v1630_v13 = vsel %vm1374_vm15, %v1629_v23, %v1625_v63  ;;  %1196 = vadd.xlane.f32.xlu0 %v2797_v25  ;;  %v1654_v25 = vrot.slane %v1065_v45, %v3032_v10 }
 0x456   :  { %v1069_v37 = vpop.xlane.xlu1 %1068  ;;  %v1635_v50 = vsel %vm1381_vm0, %v1634_v52, %v1630_v13  ;;  %v1059_v42 = vpop.xlane.xlu0 %1058 }
 0x457   :  { %v1639_v29 = vrot.slane %v1059_v42, %v3006_v49  ;;  %v1664_v6 = vrot.slane %v1069_v37, %v3053_v48 }
 0x459   :  { %v1640_v26 = vsel %vm1388_vm8, %v1639_v29, %v1635_v50  ;;  %1198 = vadd.xlane.f32.xlu0 %v2800_v1 }
 0x45a   :  { %v1073_v33 = vpop.xlane.xlu1 %1072  ;;  %v1645_v35 = vsel %vm1395_vm9, %v1644_v0, %v1640_v26  ;;  %v1063_v22 = vpop.xlane.xlu0 %1062 }
 0x45b   :  { %v1649_v43 = vrot.slane %v1063_v22, %v3027_v4  ;;  %v1674_v8 = vrot.slane %v1073_v33, %v3073_v17 }
 0x45d   :  { %v1650_v24 = vsel %vm1402_vm7, %v1649_v43, %v1645_v35 }
 0x45e   :  { %v1077_v14 = vpop.xlane.xlu1 %1076  ;;  %v1655_v12 = vsel %vm1409_vm6, %v1654_v25, %v1650_v24  ;;  %v1067_v51 = vpop.xlane.xlu0 %1066 }
 0x45f   :  { %v1659_v36 = vrot.slane %v1067_v51, %v3043_v20  ;;  %v1683_v57 = vrot.slane %v1077_v14, %v2924_v5 }
 0x461   :  { %v1660_v1 = vsel %vm1416_vm5, %v1659_v36, %v1655_v12 }
 0x462   :  { %v1081_v39 = vpop.xlane.xlu1 %1080  ;;  %v1665_v55 = vsel %vm1423_vm4, %v1664_v6, %v1660_v1  ;;  %v1071_v18 = vpop.xlane.xlu0 %1070 }
 0x463   :  { %v1669_v9 = vrot.slane %v1071_v18, %v3064_v7  ;;  %v1693_v40 = vrot.slane %v1081_v39, %v2947_v47 }
 0x465   :  { %v1670_v27 = vsel %vm1430_vm3, %v1669_v9, %v1665_v55 }
 0x466   :  { %v1085_v44 = vpop.xlane.xlu1 %1084  ;;  %v1675_v56 = vsel %vm1437_vm2, %v1674_v8, %v1670_v27  ;;  %v1075_v46 = vpop.xlane.xlu0 %1074 }
 0x467   :  { %v1994_v54 = vsel %vm3473_vm1, %v1675_v56, %v1993_v32  ;;  %v1679_v38 = vrot.slane %v1075_v46, %v2578_v11  ;;  %v1703_v32 = vrot.slane %v1085_v44, %v2971_v31  ;;  %vm3474_vm1 = vcmask 1044484  }
 0x469   :  { %v1684_v58 = vsel %vm1339_vm10, %v1683_v57, %v1679_v38 }
 0x46a   :  { %v1089_v19 = vpop.xlane.xlu1 %1088  ;;  %v1079_v59 = vpop.xlane.xlu0 %1078 }
 0x46b   :  { %v1688_v16 = vrot.slane %v1079_v59, %v2936_v62  ;;  %v1713_v52 = vrot.slane %v1089_v19, %v2990_v34 }
 0x46d   :  { %v1689_v3 = vsel %vm1346_vm11, %v1688_v16, %v1684_v58 }
 0x46e   :  { %v1093_v28 = vpop.xlane.xlu1 %1092  ;;  %v1694_v60 = vsel %vm1353_vm12, %v1693_v40, %v1689_v3  ;;  %v1083_v21 = vpop.xlane.xlu0 %1082 }
 0x46f   :  { %v1698_v61 = vrot.slane %v1083_v21, %v2962_v2  ;;  %v1723_v0 = vrot.slane %v1093_v28, %v3011_v53 }
 0x471   :  { %v1699_v41 = vsel %vm1360_vm13, %v1698_v61, %v1694_v60 }
 0x472   :  { %v1097_v45 = vpop.xlane.xlu1 %1096  ;;  %v1704_v63 = vsel %vm1367_vm14, %v1703_v32, %v1699_v41  ;;  %v1087_v15 = vpop.xlane.xlu0 %1086 }
 0x473   :  { %v1708_v23 = vrot.slane %v1087_v15, %v2985_v30  ;;  %v1733_v25 = vrot.slane %v1097_v45, %v3032_v10 }
 0x475   :  { %v1709_v13 = vsel %vm1374_vm15, %v1708_v23, %v1704_v63 }
 0x476   :  { %v1101_v37 = vpop.xlane.xlu1 %1100  ;;  %v1714_v50 = vsel %vm1381_vm0, %v1713_v52, %v1709_v13  ;;  %v1091_v42 = vpop.xlane.xlu0 %1090 }
 0x477   :  { %v1718_v29 = vrot.slane %v1091_v42, %v3006_v49  ;;  %v1743_v6 = vrot.slane %v1101_v37, %v3053_v48 }
 0x479   :  { %v1719_v26 = vsel %vm1388_vm8, %v1718_v29, %v1714_v50 }
 0x47a   :  { %v1105_v33 = vpop.xlane.xlu1 %1104  ;;  %v1724_v35 = vsel %vm1395_vm9, %v1723_v0, %v1719_v26  ;;  %v1095_v22 = vpop.xlane.xlu0 %1094 }
 0x47b   :  { %v1728_v43 = vrot.slane %v1095_v22, %v3027_v4  ;;  %v1753_v8 = vrot.slane %v1105_v33, %v3073_v17 }
 0x47d   :  { %v1729_v24 = vsel %vm1402_vm7, %v1728_v43, %v1724_v35 }
 0x47e   :  { %v1109_v14 = vpop.xlane.xlu1 %1108  ;;  %v1734_v12 = vsel %vm1409_vm6, %v1733_v25, %v1729_v24  ;;  %v1099_v51 = vpop.xlane.xlu0 %1098 }
 0x47f   :  { %v1738_v36 = vrot.slane %v1099_v51, %v3043_v20  ;;  %v1762_v57 = vrot.slane %v1109_v14, %v2924_v5 }
 0x481   :  { %v1739_v1 = vsel %vm1416_vm5, %v1738_v36, %v1734_v12 }
 0x482   :  { %v1113_v39 = vpop.xlane.xlu1 %1112  ;;  %v1744_v55 = vsel %vm1423_vm4, %v1743_v6, %v1739_v1  ;;  %v1103_v18 = vpop.xlane.xlu0 %1102 }
 0x483   :  { %v1748_v9 = vrot.slane %v1103_v18, %v3064_v7  ;;  %v1772_v3 = vrot.slane %v1113_v39, %v2947_v47 }
 0x485   :  { %v1749_v27 = vsel %vm1430_vm3, %v1748_v9, %v1744_v55 }
 0x486   :  { %v1141_v44 = vpop.xlane.xlu1 %1140  ;;  %v1754_v56 = vsel %vm1437_vm2, %v1753_v8, %v1749_v27  ;;  %v1107_v46 = vpop.xlane.xlu0 %1106 }
 0x487   :  { %v1758_v38 = vrot.slane %v1107_v46, %v2578_v11  ;;  %v3329_v58 = vsel %vm3474_vm1, %v1754_v56, %v1994_v54  ;;  %v1841_v32 = vrot.slane %v1141_v44, %v2924_v5 }
 0x489   :  { %v1763_v19 = vsel %vm1339_vm10, %v1762_v57, %v1758_v38 }
 0x48a   :  { %v1171_v59 = vpop.xlane.xlu1 %1170  ;;  %v1111_v16 = vpop.xlane.xlu0 %1110 }
 0x48b   :  { %v1767_v40 = vrot.slane %v1111_v16, %v2936_v62 }
 0x48d   :  { %v1768_v28 = vsel %vm1346_vm11, %v1767_v40, %v1763_v19 }
 0x48e   :  { %v1115_v60 = vpop.xlane.xlu1 %1114  ;;  %v1773_v21 = vsel %vm1353_vm12, %v1772_v3, %v1768_v28  ;;  %v1139_v61 = vpop.xlane.xlu0 %1138 }
 0x48f   :  { %v1837_v41 = vrot.slane %v1139_v61, %v2578_v11  ;;  %v1777_v27 = vrot.slane %v1115_v60, %v2962_v2 }
 0x491   :  { %v1842_v54 = vsel %vm1339_vm10, %v1841_v32, %v1837_v41  ;;  %v1778_v16 = vsel %vm1360_vm13, %v1777_v27, %v1773_v21 }
 0x492   :  { %v3339_v45 = vpop.xlane.xlu1 %1174  ;;  %v1143_v63 = vpop.xlane.xlu0 %1142 }
 0x493   :  { %v1846_v15 = vrot.slane %v1143_v63, %v2936_v62 }
 0x495   :  { %v1847_v23 = vsel %vm1346_vm11, %v1846_v15, %v1842_v54  ;;  %v1916_v54 = vrot.slane %v1171_v59, %v2578_v11 }
 0x496   :  { %v1147_v52 = vpop.xlane.xlu1 %1146  ;;  %v1173_v13 = vpop.xlane.xlu0 %1172 }
 0x497   :  { %v1856_v38 = vrot.slane %v1147_v52, %v2962_v2  ;;  %v1920_v40 = vrot.slane %v1173_v13, %v2924_v5  ;;  %v1925_v5 = vrot.slane %v3339_v45, %v2936_v62 }
 0x49a   :  { %v1119_v37 = vpop.xlane.xlu1 %1118  ;;  %v1145_v50 = vpop.xlane.xlu0 %1144 }
 0x49b   :  { %v1851_v18 = vrot.slane %v1145_v50, %v2947_v47  ;;  %v1787_v63 = vrot.slane %v1119_v37, %v2985_v30 }
 0x49d   :  { %v1852_v44 = vsel %vm1353_vm12, %v1851_v18, %v1847_v23  ;;  %v1921_v23 = vsel %vm1339_vm10, %v1920_v40, %v1916_v54  ;;  %vm3475_vm10 = vcmask 1045509  }
 0x49e   :  { %v3343_v42 = vpop.xlane.xlu1 %1178  ;;  %v1117_v29 = vpop.xlane.xlu0 %1116  ;;  %v1857_v3 = vsel %vm1360_vm13, %v1856_v38, %v1852_v44 }
 0x49f   :  { %v1782_v56 = vrot.slane %v1117_v29, %v2971_v31 }
 0x4a1   :  { %v1783_v28 = vsel %vm1367_vm14, %v1782_v56, %v1778_v16 }
 0x4a2   :  { %v1151_v0 = vpop.xlane.xlu1 %1150  ;;  %v1177_v26 = vpop.xlane.xlu0 %1176  ;;  %v1788_v13 = vsel %vm1374_vm15, %v1787_v63, %v1783_v28 }
 0x4a3   :  { %v1866_v21 = vrot.slane %v1151_v0, %v2985_v30  ;;  %v1930_v52 = vrot.slane %v1177_v26, %v2947_v47  ;;  %v1935_v47 = vrot.slane %v3343_v42, %v2962_v2  ;;  %v1926_v26 = vsel %vm1346_vm11, %v1925_v5, %v1921_v23 }
 0x4a4   :  { %vm3476_vm11 = vcmask 1046534  }
 0x4a6   :  { %v1123_v33 = vpop.xlane.xlu1 %1122  ;;  %v1149_v35 = vpop.xlane.xlu0 %1148 }
 0x4a7   :  { %v1861_v46 = vrot.slane %v1149_v35, %v2971_v31  ;;  %v1797_v62 = vrot.slane %v1123_v33, %v3006_v49 }
 0x4a9   :  { %v1862_v60 = vsel %vm1367_vm14, %v1861_v46, %v1857_v3 }
 0x4aa   :  { %v3345_v22 = vpop.xlane.xlu1 %1182  ;;  %v1121_v43 = vpop.xlane.xlu0 %1120  ;;  %v1867_v50 = vsel %vm1374_vm15, %v1866_v21, %v1862_v60 }
 0x4ab   :  { %v1792_v61 = vrot.slane %v1121_v43, %v2990_v34  ;;  %v1931_v43 = vsel %vm1353_vm12, %v1930_v52, %v1926_v26 }
 0x4ac   :  { %v1936_v56 = vsel %vm1360_vm13, %v1935_v47, %v1931_v43 }
 0x4ad   :  { %v1793_v29 = vsel %vm1381_vm0, %v1792_v61, %v1788_v13 }
 0x4ae   :  { %v1155_v25 = vpop.xlane.xlu1 %1154  ;;  %v1181_v24 = vpop.xlane.xlu0 %1180 }
 0x4af   :  { %v1876_v45 = vrot.slane %v1155_v25, %v3006_v49 }
 0x4b2   :  { %v1127_v14 = vpop.xlane.xlu1 %1126  ;;  %v1153_v12 = vpop.xlane.xlu0 %1152 }
 0x4b3   :  { %v1871_v32 = vrot.slane %v1153_v12, %v2990_v34  ;;  %v1940_v12 = vrot.slane %v1181_v24, %v2971_v31  ;;  %v1807_v2 = vrot.slane %v1127_v14, %v3027_v4 }
 0x4b5   :  { %v1872_v11 = vsel %vm1381_vm0, %v1871_v32, %v1867_v50  ;;  %v1941_v24 = vsel %vm1367_vm14, %v1940_v12, %v1936_v56 }
 0x4b6   :  { %v3347_v51 = vpop.xlane.xlu1 %1186  ;;  %v1125_v36 = vpop.xlane.xlu0 %1124 }
 0x4b7   :  { %v1802_v59 = vrot.slane %v1125_v36, %v3011_v53  ;;  %v1798_v36 = vsel %vm1388_vm8, %v1797_v62, %v1793_v29  ;;  %v1955_v54 = vrot.slane %v3347_v51, %v3006_v49 }
 0x4b9   :  { %v1803_v18 = vsel %vm1395_vm9, %v1802_v59, %v1798_v36 }
 0x4ba   :  { %v1159_v6 = vpop.xlane.xlu1 %1158  ;;  %v3349_v1 = vpop.xlane.xlu0 %1184  ;;  %v1808_v38 = vsel %vm1402_vm7, %v1807_v2, %v1803_v18 }
 0x4bb   :  { %v1886_v42 = vrot.slane %v1159_v6, %v3027_v4  ;;  %v1950_v46 = vrot.slane %v3349_v1, %v2990_v34 }
 0x4be   :  { %v3351_v39 = vpop.xlane.xlu1 %1130  ;;  %v1157_v55 = vpop.xlane.xlu0 %1156 }
 0x4bf   :  { %v1881_v37 = vrot.slane %v1157_v55, %v3011_v53  ;;  %v1877_v55 = vsel %vm1388_vm8, %v1876_v45, %v1872_v11  ;;  %v1817_v3 = vrot.slane %v3351_v39, %v3043_v20 }
 0x4c1   :  { %v1882_v33 = vsel %vm1395_vm9, %v1881_v37, %v1877_v55 }
 0x4c2   :  { %v3354_v9 = vpop.xlane.xlu1 %1190  ;;  %v1129_v8 = vpop.xlane.xlu0 %1128  ;;  %v1887_v16 = vsel %vm1402_vm7, %v1886_v42, %v1882_v33 }
 0x4c3   :  { %v1812_v25 = vrot.slane %v1129_v8, %v3032_v10  ;;  %v1945_v8 = vrot.slane %v3345_v22, %v2985_v30  ;;  %v1965_v50 = vrot.slane %v3354_v9, %v3027_v4 }
 0x4c5   :  { %v1813_v14 = vsel %vm1409_vm6, %v1812_v25, %v1808_v38  ;;  %v1946_v34 = vsel %vm1374_vm15, %v1945_v8, %v1941_v24 }
 0x4c6   :  { %v1163_v57 = vpop.xlane.xlu1 %1162  ;;  %v3361_v19 = vpop.xlane.xlu0 %1188  ;;  %v1951_v61 = vsel %vm1381_vm0, %v1950_v46, %v1946_v34  ;;  %v1818_v22 = vsel %vm1416_vm5, %v1817_v3, %v1813_v14 }
 0x4c7   :  { %v1896_v28 = vrot.slane %v1163_v57, %v3043_v20  ;;  %v1960_v30 = vrot.slane %v3361_v19, %v3011_v53  ;;  %v1956_v53 = vsel %vm1388_vm8, %v1955_v54, %v1951_v61 }
 0x4c9   :  { %v1961_v52 = vsel %vm1395_vm9, %v1960_v30, %v1956_v53 }
 0x4ca   :  { %v3370_v41 = vpop.xlane.xlu1 %1134  ;;  %v1161_v15 = vpop.xlane.xlu0 %1160  ;;  %v1966_v37 = vsel %vm1402_vm7, %v1965_v50, %v1961_v52 }
 0x4cb   :  { %v1891_v27 = vrot.slane %v1161_v15, %v3032_v10  ;;  %v1827_v15 = vrot.slane %v3370_v41, %v3064_v7 }
 0x4cd   :  { %v1892_v6 = vsel %vm1409_vm6, %v1891_v27, %v1887_v16 }
 0x4ce   :  { %v3385_v0 = vpop.xlane.xlu1 %1194  ;;  %v1133_v35 = vpop.xlane.xlu0 %1132  ;;  %v1897_v32 = vsel %vm1416_vm5, %v1896_v28, %v1892_v6 }
 0x4cf   :  { %v1822_v40 = vrot.slane %v1133_v35, %v3053_v48  ;;  %v1975_v35 = vrot.slane %v3385_v0, %v3043_v20 }
 0x4d1   :  { %v1823_v39 = vsel %vm1423_vm4, %v1822_v40, %v1818_v22 }
 0x4d2   :  { %v1193_v44 = vpop.xlane.xlu0 %1192  ;;  %v1167_v31 = vpop.xlane.xlu1 %1166  ;;  %v1828_v13 = vsel %vm1430_vm3, %v1827_v15, %v1823_v39 }
 0x4d3   :  { %v1906_v57 = vrot.slane %v1167_v31, %v3064_v7  ;;  %v1970_v49 = vrot.slane %v1193_v44, %v3032_v10 }
 0x4d5   :  { %v1971_v10 = vsel %vm1409_vm6, %v1970_v49, %v1966_v37  ;;  %vm3477_vm6 = vcmask 1047559  }
 0x4d6   :  { %v1165_v60 = vpop.xlane.xlu0 %1164  ;;  %v1169_v63 = vpop.xlane.xlu1 %1168  ;;  %v1976_v47 = vsel %vm1416_vm5, %v1975_v35, %v1971_v10 }
 0x4d7   :  { %v1901_v1 = vrot.slane %v1165_v60, %v3053_v48  ;;  %v1911_v51 = vrot.slane %v1169_v63, %v3073_v17 }
 0x4d9   :  { %v1902_v21 = vsel %vm1423_vm4, %v1901_v1, %v1897_v32 }
 0x4da   :  { %v1137_v5 = vpop.xlane.xlu0 %1136  ;;  %v1907_v19 = vsel %vm1430_vm3, %v1906_v57, %v1902_v21  ;;  %v1201_v4 = vpop.xlane.xlu1 %1200 }
 0x4db   :  { %v1832_v23 = vrot.slane %v1137_v5, %v3073_v17  ;;  %v1912_v29 = vsel %vm1437_vm2, %v1911_v51, %v1907_v19 }
 0x4dd   :  { %v1833_v41 = vsel %vm1437_vm2, %v1832_v23, %v1828_v13 }
 0x4de   :  { %v1996_v11 = vsel %vm3475_vm10, %v1833_v41, %v3329_v58  ;;  %v1197_v59 = vpop.xlane.xlu0 %1196  ;;  %v1990_v58 = vrot.slane %v1201_v4, %v3073_v17 }
 0x4df   :  { %v1997_v62 = vsel %vm3476_vm11, %v1912_v29, %v1996_v11  ;;  %v1980_v45 = vrot.slane %v1197_v59, %v3053_v48 }
 0x4e1   :  { %v1981_v43 = vsel %vm1423_vm4, %v1980_v45, %v1976_v47 }
 0x4e2   :  { %v1199_v9 = vpop.xlane.xlu0 %1198 }
 0x4e3   :  { %v1985_v26 = vrot.slane %v1199_v9, %v3064_v7 }
 0x4e5   :  { %v1986_v12 = vsel %vm1430_vm3, %v1985_v26, %v1981_v43 }
 0x4e6   :  { %v1991_v36 = vsel %vm1437_vm2, %v1990_v58, %v1986_v12 }
 0x4e7   :  { %v1998_v55 = vsel %vm3477_vm6, %v1991_v36, %v1997_v62 }
 0x4e8   :  { %2000 = vst [vmem:[%s3465_s6] sm:$0xff] %v1998_v55 }

</bundles_post_ra>
